<compile_context>
chip_gen: v6e
topology: v6e:2x2x1
jax: 0.10.0
libtpu: 0.0.40
codegen_flags: <defaults>
</compile_context>

<pallas_src>
import numpy as np

import jax
import jax.numpy as jnp
from jax.experimental import pallas as pl
from jax.experimental.pallas import tpu as pltpu

_K = 5  # conv kernel size


# ---------------------------------------------------------------------------
# Fused forward kernel
# ---------------------------------------------------------------------------
def _net_fused_kernel(x_ref, w1_ref, b1_ref, w2_ref, b2_ref, s1_ref,
                      w3_ref, b3_ref, w4_ref, b4_ref,
                      out_ref, col1_ref, col2_ref):
    f32 = jnp.float32

    # ---- conv1: 1->6, 5x5 VALID, + bias + ReLU ----------------------------------
    # Input is row-flattened (1, 784); im2col row t=(kh,kw) is the contiguous slice
    # starting at 28*kh+kw.  Output column j = 28*h + w is the valid conv output for
    # w < 24 (columns with w >= 24 hold harmless garbage never read downstream).
    xf = x_ref[...]                                                    # (1, 784)
    for kh in range(_K):
        for kw in range(_K):
            off = 28 * kh + kw
            col1_ref[pl.ds(kh * _K + kw, 1), :] = xf[:, off:off + 668]
    act1 = jnp.dot(w1_ref[...], col1_ref[...],
                   preferred_element_type=f32)                         # (6, 668)
    act1 = jnp.maximum(act1 + b1_ref[...], 0.0)

    # ---- maxpool 2x2 stride 2: 24x24 -> 12x12 ------------------------------------
    # Max of the 4 window taps (flat shifts 0, 1, 28, 29), then a 0/1 selection
    # matmul picks the 144 stride-2 window positions and re-compacts the lanes.
    m1 = jnp.maximum(jnp.maximum(act1[:, 0:639], act1[:, 1:640]),
                     jnp.maximum(act1[:, 28:667], act1[:, 29:668]))    # (6, 639)
    p1 = jnp.dot(m1, s1_ref[...], preferred_element_type=f32)          # (6, 144)

    # ---- conv2: 6->16, 5x5 VALID, + bias + ReLU ----------------------------------
    # p1 rows are flattened 12x12 maps; output column j = 12*h + w (w < 8 valid).
    for i in range(6):
        for kh in range(_K):
            for kw in range(_K):
                t = i * 25 + kh * _K + kw
                off = 12 * kh + kw
                col2_ref[pl.ds(t, 1), :] = p1[i:i + 1, off:off + 92]
    act2 = jnp.dot(w2_ref[...], col2_ref[...],
                   preferred_element_type=f32)                         # (16, 92)
    act2 = jnp.maximum(act2 + b2_ref[...], 0.0)

    # ---- maxpool 2x2 stride 2 (8x8 -> 4x4), folded into fc1 ----------------------
    m2 = jnp.maximum(jnp.maximum(act2[:, 0:79], act2[:, 1:80]),
                     jnp.maximum(act2[:, 12:91], act2[:, 13:92]))      # (16, 79)
    # Dropout2d is identity at inference time.
    # fc1 (256 -> 64): the stride-2 subsample + torch view(1,-1) flatten order are
    # pre-folded into w3 (zero rows at the non-pooled flat positions).
    h = b3_ref[...]                                                    # (1, 64)
    for c in range(16):
        h = h + jnp.dot(m2[c:c + 1, :], w3_ref[c],
                        preferred_element_type=f32)                    # (1, 64)
    h = jnp.maximum(h, 0.0)

    # ---- fc2 (64 -> 1): VPU multiply + lane reduction ----------------------------
    z = jnp.sum(h * w4_ref[...], axis=1, keepdims=True) + b4_ref[...]  # (1, 1)

    # TODO(synk): the qiskit Hybrid quantum-expectation head has no Pallas
    # equivalent; it is treated as an identity pass-through of the fc2 scalar.
    out_ref[:, pl.ds(0, 1)] = z
    out_ref[:, pl.ds(1, 1)] = 1.0 - z


# ---------------------------------------------------------------------------
# Parameters (torch layout) + one-time packing into kernel layout
# ---------------------------------------------------------------------------
def init_params(key):
    ks = jax.random.split(key, 8)

    def unif(k, shape, fan_in):
        bound = 1.0 / jnp.sqrt(jnp.float32(fan_in))
        return jax.random.uniform(k, shape, jnp.float32, -bound, bound)

    return {
        "conv1_w": unif(ks[0], (6, 1, 5, 5), 1 * 5 * 5),
        "conv1_b": unif(ks[1], (6,), 1 * 5 * 5),
        "conv2_w": unif(ks[2], (16, 6, 5, 5), 6 * 5 * 5),
        "conv2_b": unif(ks[3], (16,), 6 * 5 * 5),
        "fc1_w": unif(ks[4], (64, 256), 256),
        "fc1_b": unif(ks[5], (64,), 256),
        "fc2_w": unif(ks[6], (1, 64), 64),
        "fc2_b": unif(ks[7], (1,), 64),
    }


def prepare_params(params):
    """One-time repack of torch-layout weights into the kernel's matmul layout."""
    f32 = jnp.float32
    w1 = params["conv1_w"].reshape(6, 25).astype(f32)        # col = 5*kh + kw
    b1 = params["conv1_b"].reshape(6, 1).astype(f32)
    w2 = params["conv2_w"].reshape(16, 150).astype(f32)      # col = 25*i + 5*kh + kw
    b2 = params["conv2_b"].reshape(16, 1).astype(f32)

    # fc1 weights with the 2x2/stride-2 pool-2 subsample and torch view(1,-1)
    # flatten order folded in: w3[c, 24*p + 2*q, n] = fc1_w[n, 16*c + 4*p + q].
    w3 = params["fc1_w"].reshape(64, 16, 4, 4).astype(f32)
    w3 = jnp.transpose(w3, (1, 2, 3, 0))                      # (16, 4, 4, 64)
    w3p = jnp.zeros((16, 7, 12, 64), f32).at[:, ::2, 0:8:2, :].set(w3)
    w3p = w3p.reshape(16, 84, 64)[:, :79, :]                  # (16, 79, 64)

    b3 = params["fc1_b"].reshape(1, 64).astype(f32)
    w4 = params["fc2_w"].reshape(1, 64).astype(f32)
    b4 = params["fc2_b"].reshape(1, 1).astype(f32)

    # 0/1 selection matrix for pool-1: picks flat position 56*p + 2*q of the
    # (row-stride 28) max map into lane-dense column 12*p + q.
    s1 = np.zeros((639, 144), np.float32)
    for p in range(12):
        for q in range(12):
            s1[56 * p + 2 * q, 12 * p + q] = 1.0

    return {"w1": w1, "b1": b1, "w2": w2, "b2": b2, "s1": jnp.asarray(s1),
            "w3": w3p, "b3": b3, "w4": w4, "b4": b4}


# ---------------------------------------------------------------------------
# Forward: single fused pallas_call
# ---------------------------------------------------------------------------
def net_forward(prep, x_nchw):
    xf = x_nchw.reshape(1, 784).astype(jnp.float32)           # (1, 1, 28, 28) -> (1, 784)
    return pl.pallas_call(
        _net_fused_kernel,
        out_shape=jax.ShapeDtypeStruct((1, 2), jnp.float32),
        grid=(1,),
        in_specs=[
            pl.BlockSpec((1, 784), lambda i: (0, 0)),          # x (flattened)
            pl.BlockSpec((6, 25), lambda i: (0, 0)),           # conv1 weight
            pl.BlockSpec((6, 1), lambda i: (0, 0)),            # conv1 bias
            pl.BlockSpec((16, 150), lambda i: (0, 0)),         # conv2 weight
            pl.BlockSpec((16, 1), lambda i: (0, 0)),           # conv2 bias
            pl.BlockSpec((639, 144), lambda i: (0, 0)),        # pool1 selection
            pl.BlockSpec((16, 79, 64), lambda i: (0, 0, 0)),   # fc1 weight (pool2 folded)
            pl.BlockSpec((1, 64), lambda i: (0, 0)),           # fc1 bias
            pl.BlockSpec((1, 64), lambda i: (0, 0)),           # fc2 weight
            pl.BlockSpec((1, 1), lambda i: (0, 0)),            # fc2 bias
        ],
        out_specs=pl.BlockSpec((1, 2), lambda i: (0, 0)),
        scratch_shapes=[
            pltpu.VMEM((25, 668), jnp.float32),                # conv1 im2col
            pltpu.VMEM((150, 92), jnp.float32),                # conv2 im2col
        ],
        compiler_params=pltpu.CompilerParams(
            # single grid step; for batch > 1 add a leading "parallel" batch axis
            # so v7x's second TensorCore is used.
            dimension_semantics=("arbitrary",)),
    )(xf, prep["w1"], prep["b1"], prep["w2"], prep["b2"], prep["s1"],
      prep["w3"], prep["b3"], prep["w4"], prep["b4"])


if __name__ == "__main__":
    key = jax.random.PRNGKey(0)
    pkey, xkey = jax.random.split(key)
    params = init_params(pkey)
    prep = prepare_params(params)                              # one-time weight packing
    x = jax.random.normal(xkey, (1, 1, 28, 28), dtype=jnp.float32)

    out = jax.jit(net_forward)(prep, x)
    out = jax.block_until_ready(out)

    assert out.shape == (1, 2) and out.dtype == jnp.float32
    assert bool(jnp.all(jnp.isfinite(out)))
    print("KERNEL_OK")
</pallas_src>

<mosaic_0001>
module attributes {stable_mosaic.version = 11 : i64} {
  func.func @_net_fused_kernel(%arg0: i32, %arg1: memref<1x784xf32, #tpu.memory_space<vmem>>, %arg2: memref<6x25xf32, #tpu.memory_space<vmem>>, %arg3: memref<6x1xf32, #tpu.memory_space<vmem>>, %arg4: memref<16x150xf32, #tpu.memory_space<vmem>>, %arg5: memref<16x1xf32, #tpu.memory_space<vmem>>, %arg6: memref<639x144xf32, #tpu.memory_space<vmem>>, %arg7: memref<16x79x64xf32, #tpu.memory_space<vmem>>, %arg8: memref<1x64xf32, #tpu.memory_space<vmem>>, %arg9: memref<1x64xf32, #tpu.memory_space<vmem>>, %arg10: memref<1x1xf32, #tpu.memory_space<vmem>>, %arg11: memref<1x2xf32, #tpu.memory_space<vmem>>, %arg12: memref<25x668xf32, #tpu.memory_space<vmem>>, %arg13: memref<150x92xf32, #tpu.memory_space<vmem>>) attributes {dimension_semantics = [#tpu.dimension_semantics<arbitrary>], iteration_bounds = array<i64: 1>, scalar_prefetch = 0 : i64, scratch_operands = 2 : i64, tpu.core_type = #tpu.core_type<tc>, window_params = [{pipeline_mode = #tpu.pipeline_mode<synchronous>, transform_indices = @transform_0, window_bounds = array<i64: 1, 784>}, {pipeline_mode = #tpu.pipeline_mode<synchronous>, transform_indices = @transform_1, window_bounds = array<i64: 6, 25>}, {pipeline_mode = #tpu.pipeline_mode<synchronous>, transform_indices = @transform_2, window_bounds = array<i64: 6, 1>}, {pipeline_mode = #tpu.pipeline_mode<synchronous>, transform_indices = @transform_3, window_bounds = array<i64: 16, 150>}, {pipeline_mode = #tpu.pipeline_mode<synchronous>, transform_indices = @transform_4, window_bounds = array<i64: 16, 1>}, {pipeline_mode = #tpu.pipeline_mode<synchronous>, transform_indices = @transform_5, window_bounds = array<i64: 639, 144>}, {pipeline_mode = #tpu.pipeline_mode<synchronous>, transform_indices = @transform_6, window_bounds = array<i64: 16, 79, 64>}, {pipeline_mode = #tpu.pipeline_mode<synchronous>, transform_indices = @transform_7, window_bounds = array<i64: 1, 64>}, {pipeline_mode = #tpu.pipeline_mode<synchronous>, transform_indices = @transform_8, window_bounds = array<i64: 1, 64>}, {pipeline_mode = #tpu.pipeline_mode<synchronous>, transform_indices = @transform_9, window_bounds = array<i64: 1, 1>}, {pipeline_mode = #tpu.pipeline_mode<synchronous>, transform_indices = @transform_10, window_bounds = array<i64: 1, 2>}]} {
    %c0 = arith.constant 0 : index
    %c0_0 = arith.constant 0 : index
    %0 = vector.load %arg1[%c0, %c0_0] : memref<1x784xf32, #tpu.memory_space<vmem>>, vector<1x784xf32>
    %1 = vector.extract_strided_slice %0 {offsets = [0, 0], sizes = [1, 668], strides = [1, 1]} : vector<1x784xf32> to vector<1x668xf32>
    %c0_1 = arith.constant 0 : index
    %c0_2 = arith.constant 0 : index
    %2 = vector.load %arg12[%c0_1, %c0_2] : memref<25x668xf32, #tpu.memory_space<vmem>>, vector<1x668xf32>
    tpu.vector_store %arg12[%c0_1, %c0_2], %1 {strides = array<i32>} : memref<25x668xf32, #tpu.memory_space<vmem>>, vector<1x668xf32>,
    %3 = vector.extract_strided_slice %0 {offsets = [0, 1], sizes = [1, 668], strides = [1, 1]} : vector<1x784xf32> to vector<1x668xf32>
    %c1 = arith.constant 1 : index
    %c0_3 = arith.constant 0 : index
    %4 = vector.load %arg12[%c1, %c0_3] : memref<25x668xf32, #tpu.memory_space<vmem>>, vector<1x668xf32>
    tpu.vector_store %arg12[%c1, %c0_3], %3 {strides = array<i32>} : memref<25x668xf32, #tpu.memory_space<vmem>>, vector<1x668xf32>,
    %5 = vector.extract_strided_slice %0 {offsets = [0, 2], sizes = [1, 668], strides = [1, 1]} : vector<1x784xf32> to vector<1x668xf32>
    %c2 = arith.constant 2 : index
    %c0_4 = arith.constant 0 : index
    %6 = vector.load %arg12[%c2, %c0_4] : memref<25x668xf32, #tpu.memory_space<vmem>>, vector<1x668xf32>
    tpu.vector_store %arg12[%c2, %c0_4], %5 {strides = array<i32>} : memref<25x668xf32, #tpu.memory_space<vmem>>, vector<1x668xf32>,
    %7 = vector.extract_strided_slice %0 {offsets = [0, 3], sizes = [1, 668], strides = [1, 1]} : vector<1x784xf32> to vector<1x668xf32>
    %c3 = arith.constant 3 : index
    %c0_5 = arith.constant 0 : index
    %8 = vector.load %arg12[%c3, %c0_5] : memref<25x668xf32, #tpu.memory_space<vmem>>, vector<1x668xf32>
    tpu.vector_store %arg12[%c3, %c0_5], %7 {strides = array<i32>} : memref<25x668xf32, #tpu.memory_space<vmem>>, vector<1x668xf32>,
    %9 = vector.extract_strided_slice %0 {offsets = [0, 4], sizes = [1, 668], strides = [1, 1]} : vector<1x784xf32> to vector<1x668xf32>
    %c4 = arith.constant 4 : index
    %c0_6 = arith.constant 0 : index
    %10 = vector.load %arg12[%c4, %c0_6] : memref<25x668xf32, #tpu.memory_space<vmem>>, vector<1x668xf32>
    tpu.vector_store %arg12[%c4, %c0_6], %9 {strides = array<i32>} : memref<25x668xf32, #tpu.memory_space<vmem>>, vector<1x668xf32>,
    %11 = vector.extract_strided_slice %0 {offsets = [0, 28], sizes = [1, 668], strides = [1, 1]} : vector<1x784xf32> to vector<1x668xf32>
    %c5 = arith.constant 5 : index
    %c0_7 = arith.constant 0 : index
    %12 = vector.load %arg12[%c5, %c0_7] : memref<25x668xf32, #tpu.memory_space<vmem>>, vector<1x668xf32>
    tpu.vector_store %arg12[%c5, %c0_7], %11 {strides = array<i32>} : memref<25x668xf32, #tpu.memory_space<vmem>>, vector<1x668xf32>,
    %13 = vector.extract_strided_slice %0 {offsets = [0, 29], sizes = [1, 668], strides = [1, 1]} : vector<1x784xf32> to vector<1x668xf32>
    %c6 = arith.constant 6 : index
    %c0_8 = arith.constant 0 : index
    %14 = vector.load %arg12[%c6, %c0_8] : memref<25x668xf32, #tpu.memory_space<vmem>>, vector<1x668xf32>
    tpu.vector_store %arg12[%c6, %c0_8], %13 {strides = array<i32>} : memref<25x668xf32, #tpu.memory_space<vmem>>, vector<1x668xf32>,
    %15 = vector.extract_strided_slice %0 {offsets = [0, 30], sizes = [1, 668], strides = [1, 1]} : vector<1x784xf32> to vector<1x668xf32>
    %c7 = arith.constant 7 : index
    %c0_9 = arith.constant 0 : index
    %16 = vector.load %arg12[%c7, %c0_9] : memref<25x668xf32, #tpu.memory_space<vmem>>, vector<1x668xf32>
    tpu.vector_store %arg12[%c7, %c0_9], %15 {strides = array<i32>} : memref<25x668xf32, #tpu.memory_space<vmem>>, vector<1x668xf32>,
    %17 = vector.extract_strided_slice %0 {offsets = [0, 31], sizes = [1, 668], strides = [1, 1]} : vector<1x784xf32> to vector<1x668xf32>
    %c8 = arith.constant 8 : index
    %c0_10 = arith.constant 0 : index
    %18 = vector.load %arg12[%c8, %c0_10] : memref<25x668xf32, #tpu.memory_space<vmem>>, vector<1x668xf32>
    tpu.vector_store %arg12[%c8, %c0_10], %17 {strides = array<i32>} : memref<25x668xf32, #tpu.memory_space<vmem>>, vector<1x668xf32>,
    %19 = vector.extract_strided_slice %0 {offsets = [0, 32], sizes = [1, 668], strides = [1, 1]} : vector<1x784xf32> to vector<1x668xf32>
    %c9 = arith.constant 9 : index
    %c0_11 = arith.constant 0 : index
    %20 = vector.load %arg12[%c9, %c0_11] : memref<25x668xf32, #tpu.memory_space<vmem>>, vector<1x668xf32>
    tpu.vector_store %arg12[%c9, %c0_11], %19 {strides = array<i32>} : memref<25x668xf32, #tpu.memory_space<vmem>>, vector<1x668xf32>,
    %21 = vector.extract_strided_slice %0 {offsets = [0, 56], sizes = [1, 668], strides = [1, 1]} : vector<1x784xf32> to vector<1x668xf32>
    %c10 = arith.constant 10 : index
    %c0_12 = arith.constant 0 : index
    %22 = vector.load %arg12[%c10, %c0_12] : memref<25x668xf32, #tpu.memory_space<vmem>>, vector<1x668xf32>
    tpu.vector_store %arg12[%c10, %c0_12], %21 {strides = array<i32>} : memref<25x668xf32, #tpu.memory_space<vmem>>, vector<1x668xf32>,
    %23 = vector.extract_strided_slice %0 {offsets = [0, 57], sizes = [1, 668], strides = [1, 1]} : vector<1x784xf32> to vector<1x668xf32>
    %c11 = arith.constant 11 : index
    %c0_13 = arith.constant 0 : index
    %24 = vector.load %arg12[%c11, %c0_13] : memref<25x668xf32, #tpu.memory_space<vmem>>, vector<1x668xf32>
    tpu.vector_store %arg12[%c11, %c0_13], %23 {strides = array<i32>} : memref<25x668xf32, #tpu.memory_space<vmem>>, vector<1x668xf32>,
    %25 = vector.extract_strided_slice %0 {offsets = [0, 58], sizes = [1, 668], strides = [1, 1]} : vector<1x784xf32> to vector<1x668xf32>
    %c12 = arith.constant 12 : index
    %c0_14 = arith.constant 0 : index
    %26 = vector.load %arg12[%c12, %c0_14] : memref<25x668xf32, #tpu.memory_space<vmem>>, vector<1x668xf32>
    tpu.vector_store %arg12[%c12, %c0_14], %25 {strides = array<i32>} : memref<25x668xf32, #tpu.memory_space<vmem>>, vector<1x668xf32>,
    %27 = vector.extract_strided_slice %0 {offsets = [0, 59], sizes = [1, 668], strides = [1, 1]} : vector<1x784xf32> to vector<1x668xf32>
    %c13 = arith.constant 13 : index
    %c0_15 = arith.constant 0 : index
    %28 = vector.load %arg12[%c13, %c0_15] : memref<25x668xf32, #tpu.memory_space<vmem>>, vector<1x668xf32>
    tpu.vector_store %arg12[%c13, %c0_15], %27 {strides = array<i32>} : memref<25x668xf32, #tpu.memory_space<vmem>>, vector<1x668xf32>,
    %29 = vector.extract_strided_slice %0 {offsets = [0, 60], sizes = [1, 668], strides = [1, 1]} : vector<1x784xf32> to vector<1x668xf32>
    %c14 = arith.constant 14 : index
    %c0_16 = arith.constant 0 : index
    %30 = vector.load %arg12[%c14, %c0_16] : memref<25x668xf32, #tpu.memory_space<vmem>>, vector<1x668xf32>
    tpu.vector_store %arg12[%c14, %c0_16], %29 {strides = array<i32>} : memref<25x668xf32, #tpu.memory_space<vmem>>, vector<1x668xf32>,
    %31 = vector.extract_strided_slice %0 {offsets = [0, 84], sizes = [1, 668], strides = [1, 1]} : vector<1x784xf32> to vector<1x668xf32>
    %c15 = arith.constant 15 : index
    %c0_17 = arith.constant 0 : index
    %32 = vector.load %arg12[%c15, %c0_17] : memref<25x668xf32, #tpu.memory_space<vmem>>, vector<1x668xf32>
    tpu.vector_store %arg12[%c15, %c0_17], %31 {strides = array<i32>} : memref<25x668xf32, #tpu.memory_space<vmem>>, vector<1x668xf32>,
    %33 = vector.extract_strided_slice %0 {offsets = [0, 85], sizes = [1, 668], strides = [1, 1]} : vector<1x784xf32> to vector<1x668xf32>
    %c16 = arith.constant 16 : index
    %c0_18 = arith.constant 0 : index
    %34 = vector.load %arg12[%c16, %c0_18] : memref<25x668xf32, #tpu.memory_space<vmem>>, vector<1x668xf32>
    tpu.vector_store %arg12[%c16, %c0_18], %33 {strides = array<i32>} : memref<25x668xf32, #tpu.memory_space<vmem>>, vector<1x668xf32>,
    %35 = vector.extract_strided_slice %0 {offsets = [0, 86], sizes = [1, 668], strides = [1, 1]} : vector<1x784xf32> to vector<1x668xf32>
    %c17 = arith.constant 17 : index
    %c0_19 = arith.constant 0 : index
    %36 = vector.load %arg12[%c17, %c0_19] : memref<25x668xf32, #tpu.memory_space<vmem>>, vector<1x668xf32>
    tpu.vector_store %arg12[%c17, %c0_19], %35 {strides = array<i32>} : memref<25x668xf32, #tpu.memory_space<vmem>>, vector<1x668xf32>,
    %37 = vector.extract_strided_slice %0 {offsets = [0, 87], sizes = [1, 668], strides = [1, 1]} : vector<1x784xf32> to vector<1x668xf32>
    %c18 = arith.constant 18 : index
    %c0_20 = arith.constant 0 : index
    %38 = vector.load %arg12[%c18, %c0_20] : memref<25x668xf32, #tpu.memory_space<vmem>>, vector<1x668xf32>
    tpu.vector_store %arg12[%c18, %c0_20], %37 {strides = array<i32>} : memref<25x668xf32, #tpu.memory_space<vmem>>, vector<1x668xf32>,
    %39 = vector.extract_strided_slice %0 {offsets = [0, 88], sizes = [1, 668], strides = [1, 1]} : vector<1x784xf32> to vector<1x668xf32>
    %c19 = arith.constant 19 : index
    %c0_21 = arith.constant 0 : index
    %40 = vector.load %arg12[%c19, %c0_21] : memref<25x668xf32, #tpu.memory_space<vmem>>, vector<1x668xf32>
    tpu.vector_store %arg12[%c19, %c0_21], %39 {strides = array<i32>} : memref<25x668xf32, #tpu.memory_space<vmem>>, vector<1x668xf32>,
    %41 = vector.extract_strided_slice %0 {offsets = [0, 112], sizes = [1, 668], strides = [1, 1]} : vector<1x784xf32> to vector<1x668xf32>
    %c20 = arith.constant 20 : index
    %c0_22 = arith.constant 0 : index
    %42 = vector.load %arg12[%c20, %c0_22] : memref<25x668xf32, #tpu.memory_space<vmem>>, vector<1x668xf32>
    tpu.vector_store %arg12[%c20, %c0_22], %41 {strides = array<i32>} : memref<25x668xf32, #tpu.memory_space<vmem>>, vector<1x668xf32>,
    %43 = vector.extract_strided_slice %0 {offsets = [0, 113], sizes = [1, 668], strides = [1, 1]} : vector<1x784xf32> to vector<1x668xf32>
    %c21 = arith.constant 21 : index
    %c0_23 = arith.constant 0 : index
    %44 = vector.load %arg12[%c21, %c0_23] : memref<25x668xf32, #tpu.memory_space<vmem>>, vector<1x668xf32>
    tpu.vector_store %arg12[%c21, %c0_23], %43 {strides = array<i32>} : memref<25x668xf32, #tpu.memory_space<vmem>>, vector<1x668xf32>,
    %45 = vector.extract_strided_slice %0 {offsets = [0, 114], sizes = [1, 668], strides = [1, 1]} : vector<1x784xf32> to vector<1x668xf32>
    %c22 = arith.constant 22 : index
    %c0_24 = arith.constant 0 : index
    %46 = vector.load %arg12[%c22, %c0_24] : memref<25x668xf32, #tpu.memory_space<vmem>>, vector<1x668xf32>
    tpu.vector_store %arg12[%c22, %c0_24], %45 {strides = array<i32>} : memref<25x668xf32, #tpu.memory_space<vmem>>, vector<1x668xf32>,
    %47 = vector.extract_strided_slice %0 {offsets = [0, 115], sizes = [1, 668], strides = [1, 1]} : vector<1x784xf32> to vector<1x668xf32>
    %c23 = arith.constant 23 : index
    %c0_25 = arith.constant 0 : index
    %48 = vector.load %arg12[%c23, %c0_25] : memref<25x668xf32, #tpu.memory_space<vmem>>, vector<1x668xf32>
    tpu.vector_store %arg12[%c23, %c0_25], %47 {strides = array<i32>} : memref<25x668xf32, #tpu.memory_space<vmem>>, vector<1x668xf32>,
    %49 = vector.extract_strided_slice %0 {offsets = [0, 116], sizes = [1, 668], strides = [1, 1]} : vector<1x784xf32> to vector<1x668xf32>
    %c24 = arith.constant 24 : index
    %c0_26 = arith.constant 0 : index
    %50 = vector.load %arg12[%c24, %c0_26] : memref<25x668xf32, #tpu.memory_space<vmem>>, vector<1x668xf32>
    tpu.vector_store %arg12[%c24, %c0_26], %49 {strides = array<i32>} : memref<25x668xf32, #tpu.memory_space<vmem>>, vector<1x668xf32>,
    %c0_27 = arith.constant 0 : index
    %c0_28 = arith.constant 0 : index
    %51 = vector.load %arg2[%c0_27, %c0_28] : memref<6x25xf32, #tpu.memory_space<vmem>>, vector<6x25xf32>
    %c0_29 = arith.constant 0 : index
    %c0_30 = arith.constant 0 : index
    %52 = vector.load %arg12[%c0_29, %c0_30] : memref<25x668xf32, #tpu.memory_space<vmem>>, vector<25x668xf32>
    %cst = arith.constant dense<0.000000e+00> : vector<6x668xf32>
    %53 = tpu.matmul %51, %52, %cst {dimension_numbers = #tpu.dot_dimension_numbers<[1], [0], [0], [1], [0, 0, 1, 1], [], []>} : vector<6x25xf32>, vector<25x668xf32>, vector<6x668xf32> -> vector<6x668xf32>
    %c0_31 = arith.constant 0 : index
    %c0_32 = arith.constant 0 : index
    %54 = vector.load %arg3[%c0_31, %c0_32] : memref<6x1xf32, #tpu.memory_space<vmem>>, vector<6x1xf32>
    %55 = vector.broadcast %54 : vector<6x1xf32> to vector<6x668xf32>
    %56 = arith.addf %53, %55 : vector<6x668xf32>
    %cst_33 = arith.constant 0.000000e+00 : f32
    %57 = vector.broadcast %cst_33 : f32 to vector<6x668xf32>
    %58 = arith.maximumf %56, %57 : vector<6x668xf32>
    %59 = vector.extract_strided_slice %58 {offsets = [0, 0], sizes = [6, 639], strides = [1, 1]} : vector<6x668xf32> to vector<6x639xf32>
    %60 = vector.extract_strided_slice %58 {offsets = [0, 1], sizes = [6, 639], strides = [1, 1]} : vector<6x668xf32> to vector<6x639xf32>
    %61 = arith.maximumf %59, %60 : vector<6x639xf32>
    %62 = vector.extract_strided_slice %58 {offsets = [0, 28], sizes = [6, 639], strides = [1, 1]} : vector<6x668xf32> to vector<6x639xf32>
    %63 = vector.extract_strided_slice %58 {offsets = [0, 29], sizes = [6, 639], strides = [1, 1]} : vector<6x668xf32> to vector<6x639xf32>
    %64 = arith.maximumf %62, %63 : vector<6x639xf32>
    %65 = arith.maximumf %61, %64 : vector<6x639xf32>
    %c0_34 = arith.constant 0 : index
    %c0_35 = arith.constant 0 : index
    %66 = vector.load %arg6[%c0_34, %c0_35] : memref<639x144xf32, #tpu.memory_space<vmem>>, vector<639x144xf32>
    %cst_36 = arith.constant dense<0.000000e+00> : vector<6x144xf32>
    %67 = tpu.matmul %65, %66, %cst_36 {dimension_numbers = #tpu.dot_dimension_numbers<[1], [0], [0], [1], [0, 0, 1, 1], [], []>} : vector<6x639xf32>, vector<639x144xf32>, vector<6x144xf32> -> vector<6x144xf32>
    %68 = vector.extract_strided_slice %67 {offsets = [0, 0], sizes = [1, 92], strides = [1, 1]} : vector<6x144xf32> to vector<1x92xf32>
    %c0_37 = arith.constant 0 : index
    %c0_38 = arith.constant 0 : index
    %69 = vector.load %arg13[%c0_37, %c0_38] : memref<150x92xf32, #tpu.memory_space<vmem>>, vector<1x92xf32>
    tpu.vector_store %arg13[%c0_37, %c0_38], %68 {strides = array<i32>} : memref<150x92xf32, #tpu.memory_space<vmem>>, vector<1x92xf32>,
    %70 = vector.extract_strided_slice %67 {offsets = [0, 1], sizes = [1, 92], strides = [1, 1]} : vector<6x144xf32> to vector<1x92xf32>
    %c1_39 = arith.constant 1 : index
    %c0_40 = arith.constant 0 : index
    %71 = vector.load %arg13[%c1_39, %c0_40] : memref<150x92xf32, #tpu.memory_space<vmem>>, vector<1x92xf32>
    tpu.vector_store %arg13[%c1_39, %c0_40], %70 {strides = array<i32>} : memref<150x92xf32, #tpu.memory_space<vmem>>, vector<1x92xf32>,
    %72 = vector.extract_strided_slice %67 {offsets = [0, 2], sizes = [1, 92], strides = [1, 1]} : vector<6x144xf32> to vector<1x92xf32>
    %c2_41 = arith.constant 2 : index
    %c0_42 = arith.constant 0 : index
    %73 = vector.load %arg13[%c2_41, %c0_42] : memref<150x92xf32, #tpu.memory_space<vmem>>, vector<1x92xf32>
    tpu.vector_store %arg13[%c2_41, %c0_42], %72 {strides = array<i32>} : memref<150x92xf32, #tpu.memory_space<vmem>>, vector<1x92xf32>,
    %74 = vector.extract_strided_slice %67 {offsets = [0, 3], sizes = [1, 92], strides = [1, 1]} : vector<6x144xf32> to vector<1x92xf32>
    %c3_43 = arith.constant 3 : index
    %c0_44 = arith.constant 0 : index
    %75 = vector.load %arg13[%c3_43, %c0_44] : memref<150x92xf32, #tpu.memory_space<vmem>>, vector<1x92xf32>
    tpu.vector_store %arg13[%c3_43, %c0_44], %74 {strides = array<i32>} : memref<150x92xf32, #tpu.memory_space<vmem>>, vector<1x92xf32>,
    %76 = vector.extract_strided_slice %67 {offsets = [0, 4], sizes = [1, 92], strides = [1, 1]} : vector<6x144xf32> to vector<1x92xf32>
    %c4_45 = arith.constant 4 : index
    %c0_46 = arith.constant 0 : index
    %77 = vector.load %arg13[%c4_45, %c0_46] : memref<150x92xf32, #tpu.memory_space<vmem>>, vector<1x92xf32>
    tpu.vector_store %arg13[%c4_45, %c0_46], %76 {strides = array<i32>} : memref<150x92xf32, #tpu.memory_space<vmem>>, vector<1x92xf32>,
    %78 = vector.extract_strided_slice %67 {offsets = [0, 12], sizes = [1, 92], strides = [1, 1]} : vector<6x144xf32> to vector<1x92xf32>
    %c5_47 = arith.constant 5 : index
    %c0_48 = arith.constant 0 : index
    %79 = vector.load %arg13[%c5_47, %c0_48] : memref<150x92xf32, #tpu.memory_space<vmem>>, vector<1x92xf32>
    tpu.vector_store %arg13[%c5_47, %c0_48], %78 {strides = array<i32>} : memref<150x92xf32, #tpu.memory_space<vmem>>, vector<1x92xf32>,
    %80 = vector.extract_strided_slice %67 {offsets = [0, 13], sizes = [1, 92], strides = [1, 1]} : vector<6x144xf32> to vector<1x92xf32>
    %c6_49 = arith.constant 6 : index
    %c0_50 = arith.constant 0 : index
    %81 = vector.load %arg13[%c6_49, %c0_50] : memref<150x92xf32, #tpu.memory_space<vmem>>, vector<1x92xf32>
    tpu.vector_store %arg13[%c6_49, %c0_50], %80 {strides = array<i32>} : memref<150x92xf32, #tpu.memory_space<vmem>>, vector<1x92xf32>,
    %82 = vector.extract_strided_slice %67 {offsets = [0, 14], sizes = [1, 92], strides = [1, 1]} : vector<6x144xf32> to vector<1x92xf32>
    %c7_51 = arith.constant 7 : index
    %c0_52 = arith.constant 0 : index
    %83 = vector.load %arg13[%c7_51, %c0_52] : memref<150x92xf32, #tpu.memory_space<vmem>>, vector<1x92xf32>
    tpu.vector_store %arg13[%c7_51, %c0_52], %82 {strides = array<i32>} : memref<150x92xf32, #tpu.memory_space<vmem>>, vector<1x92xf32>,
    %84 = vector.extract_strided_slice %67 {offsets = [0, 15], sizes = [1, 92], strides = [1, 1]} : vector<6x144xf32> to vector<1x92xf32>
    %c8_53 = arith.constant 8 : index
    %c0_54 = arith.constant 0 : index
    %85 = vector.load %arg13[%c8_53, %c0_54] : memref<150x92xf32, #tpu.memory_space<vmem>>, vector<1x92xf32>
    tpu.vector_store %arg13[%c8_53, %c0_54], %84 {strides = array<i32>} : memref<150x92xf32, #tpu.memory_space<vmem>>, vector<1x92xf32>,
    %86 = vector.extract_strided_slice %67 {offsets = [0, 16], sizes = [1, 92], strides = [1, 1]} : vector<6x144xf32> to vector<1x92xf32>
    %c9_55 = arith.constant 9 : index
    %c0_56 = arith.constant 0 : index
    %87 = vector.load %arg13[%c9_55, %c0_56] : memref<150x92xf32, #tpu.memory_space<vmem>>, vector<1x92xf32>
    tpu.vector_store %arg13[%c9_55, %c0_56], %86 {strides = array<i32>} : memref<150x92xf32, #tpu.memory_space<vmem>>, vector<1x92xf32>,
    %88 = vector.extract_strided_slice %67 {offsets = [0, 24], sizes = [1, 92], strides = [1, 1]} : vector<6x144xf32> to vector<1x92xf32>
    %c10_57 = arith.constant 10 : index
    %c0_58 = arith.constant 0 : index
    %89 = vector.load %arg13[%c10_57, %c0_58] : memref<150x92xf32, #tpu.memory_space<vmem>>, vector<1x92xf32>
    tpu.vector_store %arg13[%c10_57, %c0_58], %88 {strides = array<i32>} : memref<150x92xf32, #tpu.memory_space<vmem>>, vector<1x92xf32>,
    %90 = vector.extract_strided_slice %67 {offsets = [0, 25], sizes = [1, 92], strides = [1, 1]} : vector<6x144xf32> to vector<1x92xf32>
    %c11_59 = arith.constant 11 : index
    %c0_60 = arith.constant 0 : index
    %91 = vector.load %arg13[%c11_59, %c0_60] : memref<150x92xf32, #tpu.memory_space<vmem>>, vector<1x92xf32>
    tpu.vector_store %arg13[%c11_59, %c0_60], %90 {strides = array<i32>} : memref<150x92xf32, #tpu.memory_space<vmem>>, vector<1x92xf32>,
    %92 = vector.extract_strided_slice %67 {offsets = [0, 26], sizes = [1, 92], strides = [1, 1]} : vector<6x144xf32> to vector<1x92xf32>
    %c12_61 = arith.constant 12 : index
    %c0_62 = arith.constant 0 : index
    %93 = vector.load %arg13[%c12_61, %c0_62] : memref<150x92xf32, #tpu.memory_space<vmem>>, vector<1x92xf32>
    tpu.vector_store %arg13[%c12_61, %c0_62], %92 {strides = array<i32>} : memref<150x92xf32, #tpu.memory_space<vmem>>, vector<1x92xf32>,
    %94 = vector.extract_strided_slice %67 {offsets = [0, 27], sizes = [1, 92], strides = [1, 1]} : vector<6x144xf32> to vector<1x92xf32>
    %c13_63 = arith.constant 13 : index
    %c0_64 = arith.constant 0 : index
    %95 = vector.load %arg13[%c13_63, %c0_64] : memref<150x92xf32, #tpu.memory_space<vmem>>, vector<1x92xf32>
    tpu.vector_store %arg13[%c13_63, %c0_64], %94 {strides = array<i32>} : memref<150x92xf32, #tpu.memory_space<vmem>>, vector<1x92xf32>,
    %96 = vector.extract_strided_slice %67 {offsets = [0, 28], sizes = [1, 92], strides = [1, 1]} : vector<6x144xf32> to vector<1x92xf32>
    %c14_65 = arith.constant 14 : index
    %c0_66 = arith.constant 0 : index
    %97 = vector.load %arg13[%c14_65, %c0_66] : memref<150x92xf32, #tpu.memory_space<vmem>>, vector<1x92xf32>
    tpu.vector_store %arg13[%c14_65, %c0_66], %96 {strides = array<i32>} : memref<150x92xf32, #tpu.memory_space<vmem>>, vector<1x92xf32>,
    %98 = vector.extract_strided_slice %67 {offsets = [0, 36], sizes = [1, 92], strides = [1, 1]} : vector<6x144xf32> to vector<1x92xf32>
    %c15_67 = arith.constant 15 : index
    %c0_68 = arith.constant 0 : index
    %99 = vector.load %arg13[%c15_67, %c0_68] : memref<150x92xf32, #tpu.memory_space<vmem>>, vector<1x92xf32>
    tpu.vector_store %arg13[%c15_67, %c0_68], %98 {strides = array<i32>} : memref<150x92xf32, #tpu.memory_space<vmem>>, vector<1x92xf32>,
    %100 = vector.extract_strided_slice %67 {offsets = [0, 37], sizes = [1, 92], strides = [1, 1]} : vector<6x144xf32> to vector<1x92xf32>
    %c16_69 = arith.constant 16 : index
    %c0_70 = arith.constant 0 : index
    %101 = vector.load %arg13[%c16_69, %c0_70] : memref<150x92xf32, #tpu.memory_space<vmem>>, vector<1x92xf32>
    tpu.vector_store %arg13[%c16_69, %c0_70], %100 {strides = array<i32>} : memref<150x92xf32, #tpu.memory_space<vmem>>, vector<1x92xf32>,
    %102 = vector.extract_strided_slice %67 {offsets = [0, 38], sizes = [1, 92], strides = [1, 1]} : vector<6x144xf32> to vector<1x92xf32>
    %c17_71 = arith.constant 17 : index
    %c0_72 = arith.constant 0 : index
    %103 = vector.load %arg13[%c17_71, %c0_72] : memref<150x92xf32, #tpu.memory_space<vmem>>, vector<1x92xf32>
    tpu.vector_store %arg13[%c17_71, %c0_72], %102 {strides = array<i32>} : memref<150x92xf32, #tpu.memory_space<vmem>>, vector<1x92xf32>,
    %104 = vector.extract_strided_slice %67 {offsets = [0, 39], sizes = [1, 92], strides = [1, 1]} : vector<6x144xf32> to vector<1x92xf32>
    %c18_73 = arith.constant 18 : index
    %c0_74 = arith.constant 0 : index
    %105 = vector.load %arg13[%c18_73, %c0_74] : memref<150x92xf32, #tpu.memory_space<vmem>>, vector<1x92xf32>
    tpu.vector_store %arg13[%c18_73, %c0_74], %104 {strides = array<i32>} : memref<150x92xf32, #tpu.memory_space<vmem>>, vector<1x92xf32>,
    %106 = vector.extract_strided_slice %67 {offsets = [0, 40], sizes = [1, 92], strides = [1, 1]} : vector<6x144xf32> to vector<1x92xf32>
    %c19_75 = arith.constant 19 : index
    %c0_76 = arith.constant 0 : index
    %107 = vector.load %arg13[%c19_75, %c0_76] : memref<150x92xf32, #tpu.memory_space<vmem>>, vector<1x92xf32>
    tpu.vector_store %arg13[%c19_75, %c0_76], %106 {strides = array<i32>} : memref<150x92xf32, #tpu.memory_space<vmem>>, vector<1x92xf32>,
    %108 = vector.extract_strided_slice %67 {offsets = [0, 48], sizes = [1, 92], strides = [1, 1]} : vector<6x144xf32> to vector<1x92xf32>
    %c20_77 = arith.constant 20 : index
    %c0_78 = arith.constant 0 : index
    %109 = vector.load %arg13[%c20_77, %c0_78] : memref<150x92xf32, #tpu.memory_space<vmem>>, vector<1x92xf32>
    tpu.vector_store %arg13[%c20_77, %c0_78], %108 {strides = array<i32>} : memref<150x92xf32, #tpu.memory_space<vmem>>, vector<1x92xf32>,
    %110 = vector.extract_strided_slice %67 {offsets = [0, 49], sizes = [1, 92], strides = [1, 1]} : vector<6x144xf32> to vector<1x92xf32>
    %c21_79 = arith.constant 21 : index
    %c0_80 = arith.constant 0 : index
    %111 = vector.load %arg13[%c21_79, %c0_80] : memref<150x92xf32, #tpu.memory_space<vmem>>, vector<1x92xf32>
    tpu.vector_store %arg13[%c21_79, %c0_80], %110 {strides = array<i32>} : memref<150x92xf32, #tpu.memory_space<vmem>>, vector<1x92xf32>,
    %112 = vector.extract_strided_slice %67 {offsets = [0, 50], sizes = [1, 92], strides = [1, 1]} : vector<6x144xf32> to vector<1x92xf32>
    %c22_81 = arith.constant 22 : index
    %c0_82 = arith.constant 0 : index
    %113 = vector.load %arg13[%c22_81, %c0_82] : memref<150x92xf32, #tpu.memory_space<vmem>>, vector<1x92xf32>
    tpu.vector_store %arg13[%c22_81, %c0_82], %112 {strides = array<i32>} : memref<150x92xf32, #tpu.memory_space<vmem>>, vector<1x92xf32>,
    %114 = vector.extract_strided_slice %67 {offsets = [0, 51], sizes = [1, 92], strides = [1, 1]} : vector<6x144xf32> to vector<1x92xf32>
    %c23_83 = arith.constant 23 : index
    %c0_84 = arith.constant 0 : index
    %115 = vector.load %arg13[%c23_83, %c0_84] : memref<150x92xf32, #tpu.memory_space<vmem>>, vector<1x92xf32>
    tpu.vector_store %arg13[%c23_83, %c0_84], %114 {strides = array<i32>} : memref<150x92xf32, #tpu.memory_space<vmem>>, vector<1x92xf32>,
    %116 = vector.extract_strided_slice %67 {offsets = [0, 52], sizes = [1, 92], strides = [1, 1]} : vector<6x144xf32> to vector<1x92xf32>
    %c24_85 = arith.constant 24 : index
    %c0_86 = arith.constant 0 : index
    %117 = vector.load %arg13[%c24_85, %c0_86] : memref<150x92xf32, #tpu.memory_space<vmem>>, vector<1x92xf32>
    tpu.vector_store %arg13[%c24_85, %c0_86], %116 {strides = array<i32>} : memref<150x92xf32, #tpu.memory_space<vmem>>, vector<1x92xf32>,
    %118 = vector.extract_strided_slice %67 {offsets = [1, 0], sizes = [1, 92], strides = [1, 1]} : vector<6x144xf32> to vector<1x92xf32>
    %c25 = arith.constant 25 : index
    %c0_87 = arith.constant 0 : index
    %119 = vector.load %arg13[%c25, %c0_87] : memref<150x92xf32, #tpu.memory_space<vmem>>, vector<1x92xf32>
    tpu.vector_store %arg13[%c25, %c0_87], %118 {strides = array<i32>} : memref<150x92xf32, #tpu.memory_space<vmem>>, vector<1x92xf32>,
    %120 = vector.extract_strided_slice %67 {offsets = [1, 1], sizes = [1, 92], strides = [1, 1]} : vector<6x144xf32> to vector<1x92xf32>
    %c26 = arith.constant 26 : index
    %c0_88 = arith.constant 0 : index
    %121 = vector.load %arg13[%c26, %c0_88] : memref<150x92xf32, #tpu.memory_space<vmem>>, vector<1x92xf32>
    tpu.vector_store %arg13[%c26, %c0_88], %120 {strides = array<i32>} : memref<150x92xf32, #tpu.memory_space<vmem>>, vector<1x92xf32>,
    %122 = vector.extract_strided_slice %67 {offsets = [1, 2], sizes = [1, 92], strides = [1, 1]} : vector<6x144xf32> to vector<1x92xf32>
    %c27 = arith.constant 27 : index
    %c0_89 = arith.constant 0 : index
    %123 = vector.load %arg13[%c27, %c0_89] : memref<150x92xf32, #tpu.memory_space<vmem>>, vector<1x92xf32>
    tpu.vector_store %arg13[%c27, %c0_89], %122 {strides = array<i32>} : memref<150x92xf32, #tpu.memory_space<vmem>>, vector<1x92xf32>,
    %124 = vector.extract_strided_slice %67 {offsets = [1, 3], sizes = [1, 92], strides = [1, 1]} : vector<6x144xf32> to vector<1x92xf32>
    %c28 = arith.constant 28 : index
    %c0_90 = arith.constant 0 : index
    %125 = vector.load %arg13[%c28, %c0_90] : memref<150x92xf32, #tpu.memory_space<vmem>>, vector<1x92xf32>
    tpu.vector_store %arg13[%c28, %c0_90], %124 {strides = array<i32>} : memref<150x92xf32, #tpu.memory_space<vmem>>, vector<1x92xf32>,
    %126 = vector.extract_strided_slice %67 {offsets = [1, 4], sizes = [1, 92], strides = [1, 1]} : vector<6x144xf32> to vector<1x92xf32>
    %c29 = arith.constant 29 : index
    %c0_91 = arith.constant 0 : index
    %127 = vector.load %arg13[%c29, %c0_91] : memref<150x92xf32, #tpu.memory_space<vmem>>, vector<1x92xf32>
    tpu.vector_store %arg13[%c29, %c0_91], %126 {strides = array<i32>} : memref<150x92xf32, #tpu.memory_space<vmem>>, vector<1x92xf32>,
    %128 = vector.extract_strided_slice %67 {offsets = [1, 12], sizes = [1, 92], strides = [1, 1]} : vector<6x144xf32> to vector<1x92xf32>
    %c30 = arith.constant 30 : index
    %c0_92 = arith.constant 0 : index
    %129 = vector.load %arg13[%c30, %c0_92] : memref<150x92xf32, #tpu.memory_space<vmem>>, vector<1x92xf32>
    tpu.vector_store %arg13[%c30, %c0_92], %128 {strides = array<i32>} : memref<150x92xf32, #tpu.memory_space<vmem>>, vector<1x92xf32>,
    %130 = vector.extract_strided_slice %67 {offsets = [1, 13], sizes = [1, 92], strides = [1, 1]} : vector<6x144xf32> to vector<1x92xf32>
    %c31 = arith.constant 31 : index
    %c0_93 = arith.constant 0 : index
    %131 = vector.load %arg13[%c31, %c0_93] : memref<150x92xf32, #tpu.memory_space<vmem>>, vector<1x92xf32>
    tpu.vector_store %arg13[%c31, %c0_93], %130 {strides = array<i32>} : memref<150x92xf32, #tpu.memory_space<vmem>>, vector<1x92xf32>,
    %132 = vector.extract_strided_slice %67 {offsets = [1, 14], sizes = [1, 92], strides = [1, 1]} : vector<6x144xf32> to vector<1x92xf32>
    %c32 = arith.constant 32 : index
    %c0_94 = arith.constant 0 : index
    %133 = vector.load %arg13[%c32, %c0_94] : memref<150x92xf32, #tpu.memory_space<vmem>>, vector<1x92xf32>
    tpu.vector_store %arg13[%c32, %c0_94], %132 {strides = array<i32>} : memref<150x92xf32, #tpu.memory_space<vmem>>, vector<1x92xf32>,
    %134 = vector.extract_strided_slice %67 {offsets = [1, 15], sizes = [1, 92], strides = [1, 1]} : vector<6x144xf32> to vector<1x92xf32>
    %c33 = arith.constant 33 : index
    %c0_95 = arith.constant 0 : index
    %135 = vector.load %arg13[%c33, %c0_95] : memref<150x92xf32, #tpu.memory_space<vmem>>, vector<1x92xf32>
    tpu.vector_store %arg13[%c33, %c0_95], %134 {strides = array<i32>} : memref<150x92xf32, #tpu.memory_space<vmem>>, vector<1x92xf32>,
    %136 = vector.extract_strided_slice %67 {offsets = [1, 16], sizes = [1, 92], strides = [1, 1]} : vector<6x144xf32> to vector<1x92xf32>
    %c34 = arith.constant 34 : index
    %c0_96 = arith.constant 0 : index
    %137 = vector.load %arg13[%c34, %c0_96] : memref<150x92xf32, #tpu.memory_space<vmem>>, vector<1x92xf32>
    tpu.vector_store %arg13[%c34, %c0_96], %136 {strides = array<i32>} : memref<150x92xf32, #tpu.memory_space<vmem>>, vector<1x92xf32>,
    %138 = vector.extract_strided_slice %67 {offsets = [1, 24], sizes = [1, 92], strides = [1, 1]} : vector<6x144xf32> to vector<1x92xf32>
    %c35 = arith.constant 35 : index
    %c0_97 = arith.constant 0 : index
    %139 = vector.load %arg13[%c35, %c0_97] : memref<150x92xf32, #tpu.memory_space<vmem>>, vector<1x92xf32>
    tpu.vector_store %arg13[%c35, %c0_97], %138 {strides = array<i32>} : memref<150x92xf32, #tpu.memory_space<vmem>>, vector<1x92xf32>,
    %140 = vector.extract_strided_slice %67 {offsets = [1, 25], sizes = [1, 92], strides = [1, 1]} : vector<6x144xf32> to vector<1x92xf32>
    %c36 = arith.constant 36 : index
    %c0_98 = arith.constant 0 : index
    %141 = vector.load %arg13[%c36, %c0_98] : memref<150x92xf32, #tpu.memory_space<vmem>>, vector<1x92xf32>
    tpu.vector_store %arg13[%c36, %c0_98], %140 {strides = array<i32>} : memref<150x92xf32, #tpu.memory_space<vmem>>, vector<1x92xf32>,
    %142 = vector.extract_strided_slice %67 {offsets = [1, 26], sizes = [1, 92], strides = [1, 1]} : vector<6x144xf32> to vector<1x92xf32>
    %c37 = arith.constant 37 : index
    %c0_99 = arith.constant 0 : index
    %143 = vector.load %arg13[%c37, %c0_99] : memref<150x92xf32, #tpu.memory_space<vmem>>, vector<1x92xf32>
    tpu.vector_store %arg13[%c37, %c0_99], %142 {strides = array<i32>} : memref<150x92xf32, #tpu.memory_space<vmem>>, vector<1x92xf32>,
    %144 = vector.extract_strided_slice %67 {offsets = [1, 27], sizes = [1, 92], strides = [1, 1]} : vector<6x144xf32> to vector<1x92xf32>
    %c38 = arith.constant 38 : index
    %c0_100 = arith.constant 0 : index
    %145 = vector.load %arg13[%c38, %c0_100] : memref<150x92xf32, #tpu.memory_space<vmem>>, vector<1x92xf32>
    tpu.vector_store %arg13[%c38, %c0_100], %144 {strides = array<i32>} : memref<150x92xf32, #tpu.memory_space<vmem>>, vector<1x92xf32>,
    %146 = vector.extract_strided_slice %67 {offsets = [1, 28], sizes = [1, 92], strides = [1, 1]} : vector<6x144xf32> to vector<1x92xf32>
    %c39 = arith.constant 39 : index
    %c0_101 = arith.constant 0 : index
    %147 = vector.load %arg13[%c39, %c0_101] : memref<150x92xf32, #tpu.memory_space<vmem>>, vector<1x92xf32>
    tpu.vector_store %arg13[%c39, %c0_101], %146 {strides = array<i32>} : memref<150x92xf32, #tpu.memory_space<vmem>>, vector<1x92xf32>,
    %148 = vector.extract_strided_slice %67 {offsets = [1, 36], sizes = [1, 92], strides = [1, 1]} : vector<6x144xf32> to vector<1x92xf32>
    %c40 = arith.constant 40 : index
    %c0_102 = arith.constant 0 : index
    %149 = vector.load %arg13[%c40, %c0_102] : memref<150x92xf32, #tpu.memory_space<vmem>>, vector<1x92xf32>
    tpu.vector_store %arg13[%c40, %c0_102], %148 {strides = array<i32>} : memref<150x92xf32, #tpu.memory_space<vmem>>, vector<1x92xf32>,
    %150 = vector.extract_strided_slice %67 {offsets = [1, 37], sizes = [1, 92], strides = [1, 1]} : vector<6x144xf32> to vector<1x92xf32>
    %c41 = arith.constant 41 : index
    %c0_103 = arith.constant 0 : index
    %151 = vector.load %arg13[%c41, %c0_103] : memref<150x92xf32, #tpu.memory_space<vmem>>, vector<1x92xf32>
    tpu.vector_store %arg13[%c41, %c0_103], %150 {strides = array<i32>} : memref<150x92xf32, #tpu.memory_space<vmem>>, vector<1x92xf32>,
    %152 = vector.extract_strided_slice %67 {offsets = [1, 38], sizes = [1, 92], strides = [1, 1]} : vector<6x144xf32> to vector<1x92xf32>
    %c42 = arith.constant 42 : index
    %c0_104 = arith.constant 0 : index
    %153 = vector.load %arg13[%c42, %c0_104] : memref<150x92xf32, #tpu.memory_space<vmem>>, vector<1x92xf32>
    tpu.vector_store %arg13[%c42, %c0_104], %152 {strides = array<i32>} : memref<150x92xf32, #tpu.memory_space<vmem>>, vector<1x92xf32>,
    %154 = vector.extract_strided_slice %67 {offsets = [1, 39], sizes = [1, 92], strides = [1, 1]} : vector<6x144xf32> to vector<1x92xf32>
    %c43 = arith.constant 43 : index
    %c0_105 = arith.constant 0 : index
    %155 = vector.load %arg13[%c43, %c0_105] : memref<150x92xf32, #tpu.memory_space<vmem>>, vector<1x92xf32>
    tpu.vector_store %arg13[%c43, %c0_105], %154 {strides = array<i32>} : memref<150x92xf32, #tpu.memory_space<vmem>>, vector<1x92xf32>,
    %156 = vector.extract_strided_slice %67 {offsets = [1, 40], sizes = [1, 92], strides = [1, 1]} : vector<6x144xf32> to vector<1x92xf32>
    %c44 = arith.constant 44 : index
    %c0_106 = arith.constant 0 : index
    %157 = vector.load %arg13[%c44, %c0_106] : memref<150x92xf32, #tpu.memory_space<vmem>>, vector<1x92xf32>
    tpu.vector_store %arg13[%c44, %c0_106], %156 {strides = array<i32>} : memref<150x92xf32, #tpu.memory_space<vmem>>, vector<1x92xf32>,
    %158 = vector.extract_strided_slice %67 {offsets = [1, 48], sizes = [1, 92], strides = [1, 1]} : vector<6x144xf32> to vector<1x92xf32>
    %c45 = arith.constant 45 : index
    %c0_107 = arith.constant 0 : index
    %159 = vector.load %arg13[%c45, %c0_107] : memref<150x92xf32, #tpu.memory_space<vmem>>, vector<1x92xf32>
    tpu.vector_store %arg13[%c45, %c0_107], %158 {strides = array<i32>} : memref<150x92xf32, #tpu.memory_space<vmem>>, vector<1x92xf32>,
    %160 = vector.extract_strided_slice %67 {offsets = [1, 49], sizes = [1, 92], strides = [1, 1]} : vector<6x144xf32> to vector<1x92xf32>
    %c46 = arith.constant 46 : index
    %c0_108 = arith.constant 0 : index
    %161 = vector.load %arg13[%c46, %c0_108] : memref<150x92xf32, #tpu.memory_space<vmem>>, vector<1x92xf32>
    tpu.vector_store %arg13[%c46, %c0_108], %160 {strides = array<i32>} : memref<150x92xf32, #tpu.memory_space<vmem>>, vector<1x92xf32>,
    %162 = vector.extract_strided_slice %67 {offsets = [1, 50], sizes = [1, 92], strides = [1, 1]} : vector<6x144xf32> to vector<1x92xf32>
    %c47 = arith.constant 47 : index
    %c0_109 = arith.constant 0 : index
    %163 = vector.load %arg13[%c47, %c0_109] : memref<150x92xf32, #tpu.memory_space<vmem>>, vector<1x92xf32>
    tpu.vector_store %arg13[%c47, %c0_109], %162 {strides = array<i32>} : memref<150x92xf32, #tpu.memory_space<vmem>>, vector<1x92xf32>,
    %164 = vector.extract_strided_slice %67 {offsets = [1, 51], sizes = [1, 92], strides = [1, 1]} : vector<6x144xf32> to vector<1x92xf32>
    %c48 = arith.constant 48 : index
    %c0_110 = arith.constant 0 : index
    %165 = vector.load %arg13[%c48, %c0_110] : memref<150x92xf32, #tpu.memory_space<vmem>>, vector<1x92xf32>
    tpu.vector_store %arg13[%c48, %c0_110], %164 {strides = array<i32>} : memref<150x92xf32, #tpu.memory_space<vmem>>, vector<1x92xf32>,
    %166 = vector.extract_strided_slice %67 {offsets = [1, 52], sizes = [1, 92], strides = [1, 1]} : vector<6x144xf32> to vector<1x92xf32>
    %c49 = arith.constant 49 : index
    %c0_111 = arith.constant 0 : index
    %167 = vector.load %arg13[%c49, %c0_111] : memref<150x92xf32, #tpu.memory_space<vmem>>, vector<1x92xf32>
    tpu.vector_store %arg13[%c49, %c0_111], %166 {strides = array<i32>} : memref<150x92xf32, #tpu.memory_space<vmem>>, vector<1x92xf32>,
    %168 = vector.extract_strided_slice %67 {offsets = [2, 0], sizes = [1, 92], strides = [1, 1]} : vector<6x144xf32> to vector<1x92xf32>
    %c50 = arith.constant 50 : index
    %c0_112 = arith.constant 0 : index
    %169 = vector.load %arg13[%c50, %c0_112] : memref<150x92xf32, #tpu.memory_space<vmem>>, vector<1x92xf32>
    tpu.vector_store %arg13[%c50, %c0_112], %168 {strides = array<i32>} : memref<150x92xf32, #tpu.memory_space<vmem>>, vector<1x92xf32>,
    %170 = vector.extract_strided_slice %67 {offsets = [2, 1], sizes = [1, 92], strides = [1, 1]} : vector<6x144xf32> to vector<1x92xf32>
    %c51 = arith.constant 51 : index
    %c0_113 = arith.constant 0 : index
    %171 = vector.load %arg13[%c51, %c0_113] : memref<150x92xf32, #tpu.memory_space<vmem>>, vector<1x92xf32>
    tpu.vector_store %arg13[%c51, %c0_113], %170 {strides = array<i32>} : memref<150x92xf32, #tpu.memory_space<vmem>>, vector<1x92xf32>,
    %172 = vector.extract_strided_slice %67 {offsets = [2, 2], sizes = [1, 92], strides = [1, 1]} : vector<6x144xf32> to vector<1x92xf32>
    %c52 = arith.constant 52 : index
    %c0_114 = arith.constant 0 : index
    %173 = vector.load %arg13[%c52, %c0_114] : memref<150x92xf32, #tpu.memory_space<vmem>>, vector<1x92xf32>
    tpu.vector_store %arg13[%c52, %c0_114], %172 {strides = array<i32>} : memref<150x92xf32, #tpu.memory_space<vmem>>, vector<1x92xf32>,
    %174 = vector.extract_strided_slice %67 {offsets = [2, 3], sizes = [1, 92], strides = [1, 1]} : vector<6x144xf32> to vector<1x92xf32>
    %c53 = arith.constant 53 : index
    %c0_115 = arith.constant 0 : index
    %175 = vector.load %arg13[%c53, %c0_115] : memref<150x92xf32, #tpu.memory_space<vmem>>, vector<1x92xf32>
    tpu.vector_store %arg13[%c53, %c0_115], %174 {strides = array<i32>} : memref<150x92xf32, #tpu.memory_space<vmem>>, vector<1x92xf32>,
    %176 = vector.extract_strided_slice %67 {offsets = [2, 4], sizes = [1, 92], strides = [1, 1]} : vector<6x144xf32> to vector<1x92xf32>
    %c54 = arith.constant 54 : index
    %c0_116 = arith.constant 0 : index
    %177 = vector.load %arg13[%c54, %c0_116] : memref<150x92xf32, #tpu.memory_space<vmem>>, vector<1x92xf32>
    tpu.vector_store %arg13[%c54, %c0_116], %176 {strides = array<i32>} : memref<150x92xf32, #tpu.memory_space<vmem>>, vector<1x92xf32>,
    %178 = vector.extract_strided_slice %67 {offsets = [2, 12], sizes = [1, 92], strides = [1, 1]} : vector<6x144xf32> to vector<1x92xf32>
    %c55 = arith.constant 55 : index
    %c0_117 = arith.constant 0 : index
    %179 = vector.load %arg13[%c55, %c0_117] : memref<150x92xf32, #tpu.memory_space<vmem>>, vector<1x92xf32>
    tpu.vector_store %arg13[%c55, %c0_117], %178 {strides = array<i32>} : memref<150x92xf32, #tpu.memory_space<vmem>>, vector<1x92xf32>,
    %180 = vector.extract_strided_slice %67 {offsets = [2, 13], sizes = [1, 92], strides = [1, 1]} : vector<6x144xf32> to vector<1x92xf32>
    %c56 = arith.constant 56 : index
    %c0_118 = arith.constant 0 : index
    %181 = vector.load %arg13[%c56, %c0_118] : memref<150x92xf32, #tpu.memory_space<vmem>>, vector<1x92xf32>
    tpu.vector_store %arg13[%c56, %c0_118], %180 {strides = array<i32>} : memref<150x92xf32, #tpu.memory_space<vmem>>, vector<1x92xf32>,
    %182 = vector.extract_strided_slice %67 {offsets = [2, 14], sizes = [1, 92], strides = [1, 1]} : vector<6x144xf32> to vector<1x92xf32>
    %c57 = arith.constant 57 : index
    %c0_119 = arith.constant 0 : index
    %183 = vector.load %arg13[%c57, %c0_119] : memref<150x92xf32, #tpu.memory_space<vmem>>, vector<1x92xf32>
    tpu.vector_store %arg13[%c57, %c0_119], %182 {strides = array<i32>} : memref<150x92xf32, #tpu.memory_space<vmem>>, vector<1x92xf32>,
    %184 = vector.extract_strided_slice %67 {offsets = [2, 15], sizes = [1, 92], strides = [1, 1]} : vector<6x144xf32> to vector<1x92xf32>
    %c58 = arith.constant 58 : index
    %c0_120 = arith.constant 0 : index
    %185 = vector.load %arg13[%c58, %c0_120] : memref<150x92xf32, #tpu.memory_space<vmem>>, vector<1x92xf32>
    tpu.vector_store %arg13[%c58, %c0_120], %184 {strides = array<i32>} : memref<150x92xf32, #tpu.memory_space<vmem>>, vector<1x92xf32>,
    %186 = vector.extract_strided_slice %67 {offsets = [2, 16], sizes = [1, 92], strides = [1, 1]} : vector<6x144xf32> to vector<1x92xf32>
    %c59 = arith.constant 59 : index
    %c0_121 = arith.constant 0 : index
    %187 = vector.load %arg13[%c59, %c0_121] : memref<150x92xf32, #tpu.memory_space<vmem>>, vector<1x92xf32>
    tpu.vector_store %arg13[%c59, %c0_121], %186 {strides = array<i32>} : memref<150x92xf32, #tpu.memory_space<vmem>>, vector<1x92xf32>,
    %188 = vector.extract_strided_slice %67 {offsets = [2, 24], sizes = [1, 92], strides = [1, 1]} : vector<6x144xf32> to vector<1x92xf32>
    %c60 = arith.constant 60 : index
    %c0_122 = arith.constant 0 : index
    %189 = vector.load %arg13[%c60, %c0_122] : memref<150x92xf32, #tpu.memory_space<vmem>>, vector<1x92xf32>
    tpu.vector_store %arg13[%c60, %c0_122], %188 {strides = array<i32>} : memref<150x92xf32, #tpu.memory_space<vmem>>, vector<1x92xf32>,
    %190 = vector.extract_strided_slice %67 {offsets = [2, 25], sizes = [1, 92], strides = [1, 1]} : vector<6x144xf32> to vector<1x92xf32>
    %c61 = arith.constant 61 : index
    %c0_123 = arith.constant 0 : index
    %191 = vector.load %arg13[%c61, %c0_123] : memref<150x92xf32, #tpu.memory_space<vmem>>, vector<1x92xf32>
    tpu.vector_store %arg13[%c61, %c0_123], %190 {strides = array<i32>} : memref<150x92xf32, #tpu.memory_space<vmem>>, vector<1x92xf32>,
    %192 = vector.extract_strided_slice %67 {offsets = [2, 26], sizes = [1, 92], strides = [1, 1]} : vector<6x144xf32> to vector<1x92xf32>
    %c62 = arith.constant 62 : index
    %c0_124 = arith.constant 0 : index
    %193 = vector.load %arg13[%c62, %c0_124] : memref<150x92xf32, #tpu.memory_space<vmem>>, vector<1x92xf32>
    tpu.vector_store %arg13[%c62, %c0_124], %192 {strides = array<i32>} : memref<150x92xf32, #tpu.memory_space<vmem>>, vector<1x92xf32>,
    %194 = vector.extract_strided_slice %67 {offsets = [2, 27], sizes = [1, 92], strides = [1, 1]} : vector<6x144xf32> to vector<1x92xf32>
    %c63 = arith.constant 63 : index
    %c0_125 = arith.constant 0 : index
    %195 = vector.load %arg13[%c63, %c0_125] : memref<150x92xf32, #tpu.memory_space<vmem>>, vector<1x92xf32>
    tpu.vector_store %arg13[%c63, %c0_125], %194 {strides = array<i32>} : memref<150x92xf32, #tpu.memory_space<vmem>>, vector<1x92xf32>,
    %196 = vector.extract_strided_slice %67 {offsets = [2, 28], sizes = [1, 92], strides = [1, 1]} : vector<6x144xf32> to vector<1x92xf32>
    %c64 = arith.constant 64 : index
    %c0_126 = arith.constant 0 : index
    %197 = vector.load %arg13[%c64, %c0_126] : memref<150x92xf32, #tpu.memory_space<vmem>>, vector<1x92xf32>
    tpu.vector_store %arg13[%c64, %c0_126], %196 {strides = array<i32>} : memref<150x92xf32, #tpu.memory_space<vmem>>, vector<1x92xf32>,
    %198 = vector.extract_strided_slice %67 {offsets = [2, 36], sizes = [1, 92], strides = [1, 1]} : vector<6x144xf32> to vector<1x92xf32>
    %c65 = arith.constant 65 : index
    %c0_127 = arith.constant 0 : index
    %199 = vector.load %arg13[%c65, %c0_127] : memref<150x92xf32, #tpu.memory_space<vmem>>, vector<1x92xf32>
    tpu.vector_store %arg13[%c65, %c0_127], %198 {strides = array<i32>} : memref<150x92xf32, #tpu.memory_space<vmem>>, vector<1x92xf32>,
    %200 = vector.extract_strided_slice %67 {offsets = [2, 37], sizes = [1, 92], strides = [1, 1]} : vector<6x144xf32> to vector<1x92xf32>
    %c66 = arith.constant 66 : index
    %c0_128 = arith.constant 0 : index
    %201 = vector.load %arg13[%c66, %c0_128] : memref<150x92xf32, #tpu.memory_space<vmem>>, vector<1x92xf32>
    tpu.vector_store %arg13[%c66, %c0_128], %200 {strides = array<i32>} : memref<150x92xf32, #tpu.memory_space<vmem>>, vector<1x92xf32>,
    %202 = vector.extract_strided_slice %67 {offsets = [2, 38], sizes = [1, 92], strides = [1, 1]} : vector<6x144xf32> to vector<1x92xf32>
    %c67 = arith.constant 67 : index
    %c0_129 = arith.constant 0 : index
    %203 = vector.load %arg13[%c67, %c0_129] : memref<150x92xf32, #tpu.memory_space<vmem>>, vector<1x92xf32>
    tpu.vector_store %arg13[%c67, %c0_129], %202 {strides = array<i32>} : memref<150x92xf32, #tpu.memory_space<vmem>>, vector<1x92xf32>,
    %204 = vector.extract_strided_slice %67 {offsets = [2, 39], sizes = [1, 92], strides = [1, 1]} : vector<6x144xf32> to vector<1x92xf32>
    %c68 = arith.constant 68 : index
    %c0_130 = arith.constant 0 : index
    %205 = vector.load %arg13[%c68, %c0_130] : memref<150x92xf32, #tpu.memory_space<vmem>>, vector<1x92xf32>
    tpu.vector_store %arg13[%c68, %c0_130], %204 {strides = array<i32>} : memref<150x92xf32, #tpu.memory_space<vmem>>, vector<1x92xf32>,
    %206 = vector.extract_strided_slice %67 {offsets = [2, 40], sizes = [1, 92], strides = [1, 1]} : vector<6x144xf32> to vector<1x92xf32>
    %c69 = arith.constant 69 : index
    %c0_131 = arith.constant 0 : index
    %207 = vector.load %arg13[%c69, %c0_131] : memref<150x92xf32, #tpu.memory_space<vmem>>, vector<1x92xf32>
    tpu.vector_store %arg13[%c69, %c0_131], %206 {strides = array<i32>} : memref<150x92xf32, #tpu.memory_space<vmem>>, vector<1x92xf32>,
    %208 = vector.extract_strided_slice %67 {offsets = [2, 48], sizes = [1, 92], strides = [1, 1]} : vector<6x144xf32> to vector<1x92xf32>
    %c70 = arith.constant 70 : index
    %c0_132 = arith.constant 0 : index
    %209 = vector.load %arg13[%c70, %c0_132] : memref<150x92xf32, #tpu.memory_space<vmem>>, vector<1x92xf32>
    tpu.vector_store %arg13[%c70, %c0_132], %208 {strides = array<i32>} : memref<150x92xf32, #tpu.memory_space<vmem>>, vector<1x92xf32>,
    %210 = vector.extract_strided_slice %67 {offsets = [2, 49], sizes = [1, 92], strides = [1, 1]} : vector<6x144xf32> to vector<1x92xf32>
    %c71 = arith.constant 71 : index
    %c0_133 = arith.constant 0 : index
    %211 = vector.load %arg13[%c71, %c0_133] : memref<150x92xf32, #tpu.memory_space<vmem>>, vector<1x92xf32>
    tpu.vector_store %arg13[%c71, %c0_133], %210 {strides = array<i32>} : memref<150x92xf32, #tpu.memory_space<vmem>>, vector<1x92xf32>,
    %212 = vector.extract_strided_slice %67 {offsets = [2, 50], sizes = [1, 92], strides = [1, 1]} : vector<6x144xf32> to vector<1x92xf32>
    %c72 = arith.constant 72 : index
    %c0_134 = arith.constant 0 : index
    %213 = vector.load %arg13[%c72, %c0_134] : memref<150x92xf32, #tpu.memory_space<vmem>>, vector<1x92xf32>
    tpu.vector_store %arg13[%c72, %c0_134], %212 {strides = array<i32>} : memref<150x92xf32, #tpu.memory_space<vmem>>, vector<1x92xf32>,
    %214 = vector.extract_strided_slice %67 {offsets = [2, 51], sizes = [1, 92], strides = [1, 1]} : vector<6x144xf32> to vector<1x92xf32>
    %c73 = arith.constant 73 : index
    %c0_135 = arith.constant 0 : index
    %215 = vector.load %arg13[%c73, %c0_135] : memref<150x92xf32, #tpu.memory_space<vmem>>, vector<1x92xf32>
    tpu.vector_store %arg13[%c73, %c0_135], %214 {strides = array<i32>} : memref<150x92xf32, #tpu.memory_space<vmem>>, vector<1x92xf32>,
    %216 = vector.extract_strided_slice %67 {offsets = [2, 52], sizes = [1, 92], strides = [1, 1]} : vector<6x144xf32> to vector<1x92xf32>
    %c74 = arith.constant 74 : index
    %c0_136 = arith.constant 0 : index
    %217 = vector.load %arg13[%c74, %c0_136] : memref<150x92xf32, #tpu.memory_space<vmem>>, vector<1x92xf32>
    tpu.vector_store %arg13[%c74, %c0_136], %216 {strides = array<i32>} : memref<150x92xf32, #tpu.memory_space<vmem>>, vector<1x92xf32>,
    %218 = vector.extract_strided_slice %67 {offsets = [3, 0], sizes = [1, 92], strides = [1, 1]} : vector<6x144xf32> to vector<1x92xf32>
    %c75 = arith.constant 75 : index
    %c0_137 = arith.constant 0 : index
    %219 = vector.load %arg13[%c75, %c0_137] : memref<150x92xf32, #tpu.memory_space<vmem>>, vector<1x92xf32>
    tpu.vector_store %arg13[%c75, %c0_137], %218 {strides = array<i32>} : memref<150x92xf32, #tpu.memory_space<vmem>>, vector<1x92xf32>,
    %220 = vector.extract_strided_slice %67 {offsets = [3, 1], sizes = [1, 92], strides = [1, 1]} : vector<6x144xf32> to vector<1x92xf32>
    %c76 = arith.constant 76 : index
    %c0_138 = arith.constant 0 : index
    %221 = vector.load %arg13[%c76, %c0_138] : memref<150x92xf32, #tpu.memory_space<vmem>>, vector<1x92xf32>
    tpu.vector_store %arg13[%c76, %c0_138], %220 {strides = array<i32>} : memref<150x92xf32, #tpu.memory_space<vmem>>, vector<1x92xf32>,
    %222 = vector.extract_strided_slice %67 {offsets = [3, 2], sizes = [1, 92], strides = [1, 1]} : vector<6x144xf32> to vector<1x92xf32>
    %c77 = arith.constant 77 : index
    %c0_139 = arith.constant 0 : index
    %223 = vector.load %arg13[%c77, %c0_139] : memref<150x92xf32, #tpu.memory_space<vmem>>, vector<1x92xf32>
    tpu.vector_store %arg13[%c77, %c0_139], %222 {strides = array<i32>} : memref<150x92xf32, #tpu.memory_space<vmem>>, vector<1x92xf32>,
    %224 = vector.extract_strided_slice %67 {offsets = [3, 3], sizes = [1, 92], strides = [1, 1]} : vector<6x144xf32> to vector<1x92xf32>
    %c78 = arith.constant 78 : index
    %c0_140 = arith.constant 0 : index
    %225 = vector.load %arg13[%c78, %c0_140] : memref<150x92xf32, #tpu.memory_space<vmem>>, vector<1x92xf32>
    tpu.vector_store %arg13[%c78, %c0_140], %224 {strides = array<i32>} : memref<150x92xf32, #tpu.memory_space<vmem>>, vector<1x92xf32>,
    %226 = vector.extract_strided_slice %67 {offsets = [3, 4], sizes = [1, 92], strides = [1, 1]} : vector<6x144xf32> to vector<1x92xf32>
    %c79 = arith.constant 79 : index
    %c0_141 = arith.constant 0 : index
    %227 = vector.load %arg13[%c79, %c0_141] : memref<150x92xf32, #tpu.memory_space<vmem>>, vector<1x92xf32>
    tpu.vector_store %arg13[%c79, %c0_141], %226 {strides = array<i32>} : memref<150x92xf32, #tpu.memory_space<vmem>>, vector<1x92xf32>,
    %228 = vector.extract_strided_slice %67 {offsets = [3, 12], sizes = [1, 92], strides = [1, 1]} : vector<6x144xf32> to vector<1x92xf32>
    %c80 = arith.constant 80 : index
    %c0_142 = arith.constant 0 : index
    %229 = vector.load %arg13[%c80, %c0_142] : memref<150x92xf32, #tpu.memory_space<vmem>>, vector<1x92xf32>
    tpu.vector_store %arg13[%c80, %c0_142], %228 {strides = array<i32>} : memref<150x92xf32, #tpu.memory_space<vmem>>, vector<1x92xf32>,
    %230 = vector.extract_strided_slice %67 {offsets = [3, 13], sizes = [1, 92], strides = [1, 1]} : vector<6x144xf32> to vector<1x92xf32>
    %c81 = arith.constant 81 : index
    %c0_143 = arith.constant 0 : index
    %231 = vector.load %arg13[%c81, %c0_143] : memref<150x92xf32, #tpu.memory_space<vmem>>, vector<1x92xf32>
    tpu.vector_store %arg13[%c81, %c0_143], %230 {strides = array<i32>} : memref<150x92xf32, #tpu.memory_space<vmem>>, vector<1x92xf32>,
    %232 = vector.extract_strided_slice %67 {offsets = [3, 14], sizes = [1, 92], strides = [1, 1]} : vector<6x144xf32> to vector<1x92xf32>
    %c82 = arith.constant 82 : index
    %c0_144 = arith.constant 0 : index
    %233 = vector.load %arg13[%c82, %c0_144] : memref<150x92xf32, #tpu.memory_space<vmem>>, vector<1x92xf32>
    tpu.vector_store %arg13[%c82, %c0_144], %232 {strides = array<i32>} : memref<150x92xf32, #tpu.memory_space<vmem>>, vector<1x92xf32>,
    %234 = vector.extract_strided_slice %67 {offsets = [3, 15], sizes = [1, 92], strides = [1, 1]} : vector<6x144xf32> to vector<1x92xf32>
    %c83 = arith.constant 83 : index
    %c0_145 = arith.constant 0 : index
    %235 = vector.load %arg13[%c83, %c0_145] : memref<150x92xf32, #tpu.memory_space<vmem>>, vector<1x92xf32>
    tpu.vector_store %arg13[%c83, %c0_145], %234 {strides = array<i32>} : memref<150x92xf32, #tpu.memory_space<vmem>>, vector<1x92xf32>,
    %236 = vector.extract_strided_slice %67 {offsets = [3, 16], sizes = [1, 92], strides = [1, 1]} : vector<6x144xf32> to vector<1x92xf32>
    %c84 = arith.constant 84 : index
    %c0_146 = arith.constant 0 : index
    %237 = vector.load %arg13[%c84, %c0_146] : memref<150x92xf32, #tpu.memory_space<vmem>>, vector<1x92xf32>
    tpu.vector_store %arg13[%c84, %c0_146], %236 {strides = array<i32>} : memref<150x92xf32, #tpu.memory_space<vmem>>, vector<1x92xf32>,
    %238 = vector.extract_strided_slice %67 {offsets = [3, 24], sizes = [1, 92], strides = [1, 1]} : vector<6x144xf32> to vector<1x92xf32>
    %c85 = arith.constant 85 : index
    %c0_147 = arith.constant 0 : index
    %239 = vector.load %arg13[%c85, %c0_147] : memref<150x92xf32, #tpu.memory_space<vmem>>, vector<1x92xf32>
    tpu.vector_store %arg13[%c85, %c0_147], %238 {strides = array<i32>} : memref<150x92xf32, #tpu.memory_space<vmem>>, vector<1x92xf32>,
    %240 = vector.extract_strided_slice %67 {offsets = [3, 25], sizes = [1, 92], strides = [1, 1]} : vector<6x144xf32> to vector<1x92xf32>
    %c86 = arith.constant 86 : index
    %c0_148 = arith.constant 0 : index
    %241 = vector.load %arg13[%c86, %c0_148] : memref<150x92xf32, #tpu.memory_space<vmem>>, vector<1x92xf32>
    tpu.vector_store %arg13[%c86, %c0_148], %240 {strides = array<i32>} : memref<150x92xf32, #tpu.memory_space<vmem>>, vector<1x92xf32>,
    %242 = vector.extract_strided_slice %67 {offsets = [3, 26], sizes = [1, 92], strides = [1, 1]} : vector<6x144xf32> to vector<1x92xf32>
    %c87 = arith.constant 87 : index
    %c0_149 = arith.constant 0 : index
    %243 = vector.load %arg13[%c87, %c0_149] : memref<150x92xf32, #tpu.memory_space<vmem>>, vector<1x92xf32>
    tpu.vector_store %arg13[%c87, %c0_149], %242 {strides = array<i32>} : memref<150x92xf32, #tpu.memory_space<vmem>>, vector<1x92xf32>,
    %244 = vector.extract_strided_slice %67 {offsets = [3, 27], sizes = [1, 92], strides = [1, 1]} : vector<6x144xf32> to vector<1x92xf32>
    %c88 = arith.constant 88 : index
    %c0_150 = arith.constant 0 : index
    %245 = vector.load %arg13[%c88, %c0_150] : memref<150x92xf32, #tpu.memory_space<vmem>>, vector<1x92xf32>
    tpu.vector_store %arg13[%c88, %c0_150], %244 {strides = array<i32>} : memref<150x92xf32, #tpu.memory_space<vmem>>, vector<1x92xf32>,
    %246 = vector.extract_strided_slice %67 {offsets = [3, 28], sizes = [1, 92], strides = [1, 1]} : vector<6x144xf32> to vector<1x92xf32>
    %c89 = arith.constant 89 : index
    %c0_151 = arith.constant 0 : index
    %247 = vector.load %arg13[%c89, %c0_151] : memref<150x92xf32, #tpu.memory_space<vmem>>, vector<1x92xf32>
    tpu.vector_store %arg13[%c89, %c0_151], %246 {strides = array<i32>} : memref<150x92xf32, #tpu.memory_space<vmem>>, vector<1x92xf32>,
    %248 = vector.extract_strided_slice %67 {offsets = [3, 36], sizes = [1, 92], strides = [1, 1]} : vector<6x144xf32> to vector<1x92xf32>
    %c90 = arith.constant 90 : index
    %c0_152 = arith.constant 0 : index
    %249 = vector.load %arg13[%c90, %c0_152] : memref<150x92xf32, #tpu.memory_space<vmem>>, vector<1x92xf32>
    tpu.vector_store %arg13[%c90, %c0_152], %248 {strides = array<i32>} : memref<150x92xf32, #tpu.memory_space<vmem>>, vector<1x92xf32>,
    %250 = vector.extract_strided_slice %67 {offsets = [3, 37], sizes = [1, 92], strides = [1, 1]} : vector<6x144xf32> to vector<1x92xf32>
    %c91 = arith.constant 91 : index
    %c0_153 = arith.constant 0 : index
    %251 = vector.load %arg13[%c91, %c0_153] : memref<150x92xf32, #tpu.memory_space<vmem>>, vector<1x92xf32>
    tpu.vector_store %arg13[%c91, %c0_153], %250 {strides = array<i32>} : memref<150x92xf32, #tpu.memory_space<vmem>>, vector<1x92xf32>,
    %252 = vector.extract_strided_slice %67 {offsets = [3, 38], sizes = [1, 92], strides = [1, 1]} : vector<6x144xf32> to vector<1x92xf32>
    %c92 = arith.constant 92 : index
    %c0_154 = arith.constant 0 : index
    %253 = vector.load %arg13[%c92, %c0_154] : memref<150x92xf32, #tpu.memory_space<vmem>>, vector<1x92xf32>
    tpu.vector_store %arg13[%c92, %c0_154], %252 {strides = array<i32>} : memref<150x92xf32, #tpu.memory_space<vmem>>, vector<1x92xf32>,
    %254 = vector.extract_strided_slice %67 {offsets = [3, 39], sizes = [1, 92], strides = [1, 1]} : vector<6x144xf32> to vector<1x92xf32>
    %c93 = arith.constant 93 : index
    %c0_155 = arith.constant 0 : index
    %255 = vector.load %arg13[%c93, %c0_155] : memref<150x92xf32, #tpu.memory_space<vmem>>, vector<1x92xf32>
    tpu.vector_store %arg13[%c93, %c0_155], %254 {strides = array<i32>} : memref<150x92xf32, #tpu.memory_space<vmem>>, vector<1x92xf32>,
    %256 = vector.extract_strided_slice %67 {offsets = [3, 40], sizes = [1, 92], strides = [1, 1]} : vector<6x144xf32> to vector<1x92xf32>
    %c94 = arith.constant 94 : index
    %c0_156 = arith.constant 0 : index
    %257 = vector.load %arg13[%c94, %c0_156] : memref<150x92xf32, #tpu.memory_space<vmem>>, vector<1x92xf32>
    tpu.vector_store %arg13[%c94, %c0_156], %256 {strides = array<i32>} : memref<150x92xf32, #tpu.memory_space<vmem>>, vector<1x92xf32>,
    %258 = vector.extract_strided_slice %67 {offsets = [3, 48], sizes = [1, 92], strides = [1, 1]} : vector<6x144xf32> to vector<1x92xf32>
    %c95 = arith.constant 95 : index
    %c0_157 = arith.constant 0 : index
    %259 = vector.load %arg13[%c95, %c0_157] : memref<150x92xf32, #tpu.memory_space<vmem>>, vector<1x92xf32>
    tpu.vector_store %arg13[%c95, %c0_157], %258 {strides = array<i32>} : memref<150x92xf32, #tpu.memory_space<vmem>>, vector<1x92xf32>,
    %260 = vector.extract_strided_slice %67 {offsets = [3, 49], sizes = [1, 92], strides = [1, 1]} : vector<6x144xf32> to vector<1x92xf32>
    %c96 = arith.constant 96 : index
    %c0_158 = arith.constant 0 : index
    %261 = vector.load %arg13[%c96, %c0_158] : memref<150x92xf32, #tpu.memory_space<vmem>>, vector<1x92xf32>
    tpu.vector_store %arg13[%c96, %c0_158], %260 {strides = array<i32>} : memref<150x92xf32, #tpu.memory_space<vmem>>, vector<1x92xf32>,
    %262 = vector.extract_strided_slice %67 {offsets = [3, 50], sizes = [1, 92], strides = [1, 1]} : vector<6x144xf32> to vector<1x92xf32>
    %c97 = arith.constant 97 : index
    %c0_159 = arith.constant 0 : index
    %263 = vector.load %arg13[%c97, %c0_159] : memref<150x92xf32, #tpu.memory_space<vmem>>, vector<1x92xf32>
    tpu.vector_store %arg13[%c97, %c0_159], %262 {strides = array<i32>} : memref<150x92xf32, #tpu.memory_space<vmem>>, vector<1x92xf32>,
    %264 = vector.extract_strided_slice %67 {offsets = [3, 51], sizes = [1, 92], strides = [1, 1]} : vector<6x144xf32> to vector<1x92xf32>
    %c98 = arith.constant 98 : index
    %c0_160 = arith.constant 0 : index
    %265 = vector.load %arg13[%c98, %c0_160] : memref<150x92xf32, #tpu.memory_space<vmem>>, vector<1x92xf32>
    tpu.vector_store %arg13[%c98, %c0_160], %264 {strides = array<i32>} : memref<150x92xf32, #tpu.memory_space<vmem>>, vector<1x92xf32>,
    %266 = vector.extract_strided_slice %67 {offsets = [3, 52], sizes = [1, 92], strides = [1, 1]} : vector<6x144xf32> to vector<1x92xf32>
    %c99 = arith.constant 99 : index
    %c0_161 = arith.constant 0 : index
    %267 = vector.load %arg13[%c99, %c0_161] : memref<150x92xf32, #tpu.memory_space<vmem>>, vector<1x92xf32>
    tpu.vector_store %arg13[%c99, %c0_161], %266 {strides = array<i32>} : memref<150x92xf32, #tpu.memory_space<vmem>>, vector<1x92xf32>,
    %268 = vector.extract_strided_slice %67 {offsets = [4, 0], sizes = [1, 92], strides = [1, 1]} : vector<6x144xf32> to vector<1x92xf32>
    %c100 = arith.constant 100 : index
    %c0_162 = arith.constant 0 : index
    %269 = vector.load %arg13[%c100, %c0_162] : memref<150x92xf32, #tpu.memory_space<vmem>>, vector<1x92xf32>
    tpu.vector_store %arg13[%c100, %c0_162], %268 {strides = array<i32>} : memref<150x92xf32, #tpu.memory_space<vmem>>, vector<1x92xf32>,
    %270 = vector.extract_strided_slice %67 {offsets = [4, 1], sizes = [1, 92], strides = [1, 1]} : vector<6x144xf32> to vector<1x92xf32>
    %c101 = arith.constant 101 : index
    %c0_163 = arith.constant 0 : index
    %271 = vector.load %arg13[%c101, %c0_163] : memref<150x92xf32, #tpu.memory_space<vmem>>, vector<1x92xf32>
    tpu.vector_store %arg13[%c101, %c0_163], %270 {strides = array<i32>} : memref<150x92xf32, #tpu.memory_space<vmem>>, vector<1x92xf32>,
    %272 = vector.extract_strided_slice %67 {offsets = [4, 2], sizes = [1, 92], strides = [1, 1]} : vector<6x144xf32> to vector<1x92xf32>
    %c102 = arith.constant 102 : index
    %c0_164 = arith.constant 0 : index
    %273 = vector.load %arg13[%c102, %c0_164] : memref<150x92xf32, #tpu.memory_space<vmem>>, vector<1x92xf32>
    tpu.vector_store %arg13[%c102, %c0_164], %272 {strides = array<i32>} : memref<150x92xf32, #tpu.memory_space<vmem>>, vector<1x92xf32>,
    %274 = vector.extract_strided_slice %67 {offsets = [4, 3], sizes = [1, 92], strides = [1, 1]} : vector<6x144xf32> to vector<1x92xf32>
    %c103 = arith.constant 103 : index
    %c0_165 = arith.constant 0 : index
    %275 = vector.load %arg13[%c103, %c0_165] : memref<150x92xf32, #tpu.memory_space<vmem>>, vector<1x92xf32>
    tpu.vector_store %arg13[%c103, %c0_165], %274 {strides = array<i32>} : memref<150x92xf32, #tpu.memory_space<vmem>>, vector<1x92xf32>,
    %276 = vector.extract_strided_slice %67 {offsets = [4, 4], sizes = [1, 92], strides = [1, 1]} : vector<6x144xf32> to vector<1x92xf32>
    %c104 = arith.constant 104 : index
    %c0_166 = arith.constant 0 : index
    %277 = vector.load %arg13[%c104, %c0_166] : memref<150x92xf32, #tpu.memory_space<vmem>>, vector<1x92xf32>
    tpu.vector_store %arg13[%c104, %c0_166], %276 {strides = array<i32>} : memref<150x92xf32, #tpu.memory_space<vmem>>, vector<1x92xf32>,
    %278 = vector.extract_strided_slice %67 {offsets = [4, 12], sizes = [1, 92], strides = [1, 1]} : vector<6x144xf32> to vector<1x92xf32>
    %c105 = arith.constant 105 : index
    %c0_167 = arith.constant 0 : index
    %279 = vector.load %arg13[%c105, %c0_167] : memref<150x92xf32, #tpu.memory_space<vmem>>, vector<1x92xf32>
    tpu.vector_store %arg13[%c105, %c0_167], %278 {strides = array<i32>} : memref<150x92xf32, #tpu.memory_space<vmem>>, vector<1x92xf32>,
    %280 = vector.extract_strided_slice %67 {offsets = [4, 13], sizes = [1, 92], strides = [1, 1]} : vector<6x144xf32> to vector<1x92xf32>
    %c106 = arith.constant 106 : index
    %c0_168 = arith.constant 0 : index
    %281 = vector.load %arg13[%c106, %c0_168] : memref<150x92xf32, #tpu.memory_space<vmem>>, vector<1x92xf32>
    tpu.vector_store %arg13[%c106, %c0_168], %280 {strides = array<i32>} : memref<150x92xf32, #tpu.memory_space<vmem>>, vector<1x92xf32>,
    %282 = vector.extract_strided_slice %67 {offsets = [4, 14], sizes = [1, 92], strides = [1, 1]} : vector<6x144xf32> to vector<1x92xf32>
    %c107 = arith.constant 107 : index
    %c0_169 = arith.constant 0 : index
    %283 = vector.load %arg13[%c107, %c0_169] : memref<150x92xf32, #tpu.memory_space<vmem>>, vector<1x92xf32>
    tpu.vector_store %arg13[%c107, %c0_169], %282 {strides = array<i32>} : memref<150x92xf32, #tpu.memory_space<vmem>>, vector<1x92xf32>,
    %284 = vector.extract_strided_slice %67 {offsets = [4, 15], sizes = [1, 92], strides = [1, 1]} : vector<6x144xf32> to vector<1x92xf32>
    %c108 = arith.constant 108 : index
    %c0_170 = arith.constant 0 : index
    %285 = vector.load %arg13[%c108, %c0_170] : memref<150x92xf32, #tpu.memory_space<vmem>>, vector<1x92xf32>
    tpu.vector_store %arg13[%c108, %c0_170], %284 {strides = array<i32>} : memref<150x92xf32, #tpu.memory_space<vmem>>, vector<1x92xf32>,
    %286 = vector.extract_strided_slice %67 {offsets = [4, 16], sizes = [1, 92], strides = [1, 1]} : vector<6x144xf32> to vector<1x92xf32>
    %c109 = arith.constant 109 : index
    %c0_171 = arith.constant 0 : index
    %287 = vector.load %arg13[%c109, %c0_171] : memref<150x92xf32, #tpu.memory_space<vmem>>, vector<1x92xf32>
    tpu.vector_store %arg13[%c109, %c0_171], %286 {strides = array<i32>} : memref<150x92xf32, #tpu.memory_space<vmem>>, vector<1x92xf32>,
    %288 = vector.extract_strided_slice %67 {offsets = [4, 24], sizes = [1, 92], strides = [1, 1]} : vector<6x144xf32> to vector<1x92xf32>
    %c110 = arith.constant 110 : index
    %c0_172 = arith.constant 0 : index
    %289 = vector.load %arg13[%c110, %c0_172] : memref<150x92xf32, #tpu.memory_space<vmem>>, vector<1x92xf32>
    tpu.vector_store %arg13[%c110, %c0_172], %288 {strides = array<i32>} : memref<150x92xf32, #tpu.memory_space<vmem>>, vector<1x92xf32>,
    %290 = vector.extract_strided_slice %67 {offsets = [4, 25], sizes = [1, 92], strides = [1, 1]} : vector<6x144xf32> to vector<1x92xf32>
    %c111 = arith.constant 111 : index
    %c0_173 = arith.constant 0 : index
    %291 = vector.load %arg13[%c111, %c0_173] : memref<150x92xf32, #tpu.memory_space<vmem>>, vector<1x92xf32>
    tpu.vector_store %arg13[%c111, %c0_173], %290 {strides = array<i32>} : memref<150x92xf32, #tpu.memory_space<vmem>>, vector<1x92xf32>,
    %292 = vector.extract_strided_slice %67 {offsets = [4, 26], sizes = [1, 92], strides = [1, 1]} : vector<6x144xf32> to vector<1x92xf32>
    %c112 = arith.constant 112 : index
    %c0_174 = arith.constant 0 : index
    %293 = vector.load %arg13[%c112, %c0_174] : memref<150x92xf32, #tpu.memory_space<vmem>>, vector<1x92xf32>
    tpu.vector_store %arg13[%c112, %c0_174], %292 {strides = array<i32>} : memref<150x92xf32, #tpu.memory_space<vmem>>, vector<1x92xf32>,
    %294 = vector.extract_strided_slice %67 {offsets = [4, 27], sizes = [1, 92], strides = [1, 1]} : vector<6x144xf32> to vector<1x92xf32>
    %c113 = arith.constant 113 : index
    %c0_175 = arith.constant 0 : index
    %295 = vector.load %arg13[%c113, %c0_175] : memref<150x92xf32, #tpu.memory_space<vmem>>, vector<1x92xf32>
    tpu.vector_store %arg13[%c113, %c0_175], %294 {strides = array<i32>} : memref<150x92xf32, #tpu.memory_space<vmem>>, vector<1x92xf32>,
    %296 = vector.extract_strided_slice %67 {offsets = [4, 28], sizes = [1, 92], strides = [1, 1]} : vector<6x144xf32> to vector<1x92xf32>
    %c114 = arith.constant 114 : index
    %c0_176 = arith.constant 0 : index
    %297 = vector.load %arg13[%c114, %c0_176] : memref<150x92xf32, #tpu.memory_space<vmem>>, vector<1x92xf32>
    tpu.vector_store %arg13[%c114, %c0_176], %296 {strides = array<i32>} : memref<150x92xf32, #tpu.memory_space<vmem>>, vector<1x92xf32>,
    %298 = vector.extract_strided_slice %67 {offsets = [4, 36], sizes = [1, 92], strides = [1, 1]} : vector<6x144xf32> to vector<1x92xf32>
    %c115 = arith.constant 115 : index
    %c0_177 = arith.constant 0 : index
    %299 = vector.load %arg13[%c115, %c0_177] : memref<150x92xf32, #tpu.memory_space<vmem>>, vector<1x92xf32>
    tpu.vector_store %arg13[%c115, %c0_177], %298 {strides = array<i32>} : memref<150x92xf32, #tpu.memory_space<vmem>>, vector<1x92xf32>,
    %300 = vector.extract_strided_slice %67 {offsets = [4, 37], sizes = [1, 92], strides = [1, 1]} : vector<6x144xf32> to vector<1x92xf32>
    %c116 = arith.constant 116 : index
    %c0_178 = arith.constant 0 : index
    %301 = vector.load %arg13[%c116, %c0_178] : memref<150x92xf32, #tpu.memory_space<vmem>>, vector<1x92xf32>
    tpu.vector_store %arg13[%c116, %c0_178], %300 {strides = array<i32>} : memref<150x92xf32, #tpu.memory_space<vmem>>, vector<1x92xf32>,
    %302 = vector.extract_strided_slice %67 {offsets = [4, 38], sizes = [1, 92], strides = [1, 1]} : vector<6x144xf32> to vector<1x92xf32>
    %c117 = arith.constant 117 : index
    %c0_179 = arith.constant 0 : index
    %303 = vector.load %arg13[%c117, %c0_179] : memref<150x92xf32, #tpu.memory_space<vmem>>, vector<1x92xf32>
    tpu.vector_store %arg13[%c117, %c0_179], %302 {strides = array<i32>} : memref<150x92xf32, #tpu.memory_space<vmem>>, vector<1x92xf32>,
    %304 = vector.extract_strided_slice %67 {offsets = [4, 39], sizes = [1, 92], strides = [1, 1]} : vector<6x144xf32> to vector<1x92xf32>
    %c118 = arith.constant 118 : index
    %c0_180 = arith.constant 0 : index
    %305 = vector.load %arg13[%c118, %c0_180] : memref<150x92xf32, #tpu.memory_space<vmem>>, vector<1x92xf32>
    tpu.vector_store %arg13[%c118, %c0_180], %304 {strides = array<i32>} : memref<150x92xf32, #tpu.memory_space<vmem>>, vector<1x92xf32>,
    %306 = vector.extract_strided_slice %67 {offsets = [4, 40], sizes = [1, 92], strides = [1, 1]} : vector<6x144xf32> to vector<1x92xf32>
    %c119 = arith.constant 119 : index
    %c0_181 = arith.constant 0 : index
    %307 = vector.load %arg13[%c119, %c0_181] : memref<150x92xf32, #tpu.memory_space<vmem>>, vector<1x92xf32>
    tpu.vector_store %arg13[%c119, %c0_181], %306 {strides = array<i32>} : memref<150x92xf32, #tpu.memory_space<vmem>>, vector<1x92xf32>,
    %308 = vector.extract_strided_slice %67 {offsets = [4, 48], sizes = [1, 92], strides = [1, 1]} : vector<6x144xf32> to vector<1x92xf32>
    %c120 = arith.constant 120 : index
    %c0_182 = arith.constant 0 : index
    %309 = vector.load %arg13[%c120, %c0_182] : memref<150x92xf32, #tpu.memory_space<vmem>>, vector<1x92xf32>
    tpu.vector_store %arg13[%c120, %c0_182], %308 {strides = array<i32>} : memref<150x92xf32, #tpu.memory_space<vmem>>, vector<1x92xf32>,
    %310 = vector.extract_strided_slice %67 {offsets = [4, 49], sizes = [1, 92], strides = [1, 1]} : vector<6x144xf32> to vector<1x92xf32>
    %c121 = arith.constant 121 : index
    %c0_183 = arith.constant 0 : index
    %311 = vector.load %arg13[%c121, %c0_183] : memref<150x92xf32, #tpu.memory_space<vmem>>, vector<1x92xf32>
    tpu.vector_store %arg13[%c121, %c0_183], %310 {strides = array<i32>} : memref<150x92xf32, #tpu.memory_space<vmem>>, vector<1x92xf32>,
    %312 = vector.extract_strided_slice %67 {offsets = [4, 50], sizes = [1, 92], strides = [1, 1]} : vector<6x144xf32> to vector<1x92xf32>
    %c122 = arith.constant 122 : index
    %c0_184 = arith.constant 0 : index
    %313 = vector.load %arg13[%c122, %c0_184] : memref<150x92xf32, #tpu.memory_space<vmem>>, vector<1x92xf32>
    tpu.vector_store %arg13[%c122, %c0_184], %312 {strides = array<i32>} : memref<150x92xf32, #tpu.memory_space<vmem>>, vector<1x92xf32>,
    %314 = vector.extract_strided_slice %67 {offsets = [4, 51], sizes = [1, 92], strides = [1, 1]} : vector<6x144xf32> to vector<1x92xf32>
    %c123 = arith.constant 123 : index
    %c0_185 = arith.constant 0 : index
    %315 = vector.load %arg13[%c123, %c0_185] : memref<150x92xf32, #tpu.memory_space<vmem>>, vector<1x92xf32>
    tpu.vector_store %arg13[%c123, %c0_185], %314 {strides = array<i32>} : memref<150x92xf32, #tpu.memory_space<vmem>>, vector<1x92xf32>,
    %316 = vector.extract_strided_slice %67 {offsets = [4, 52], sizes = [1, 92], strides = [1, 1]} : vector<6x144xf32> to vector<1x92xf32>
    %c124 = arith.constant 124 : index
    %c0_186 = arith.constant 0 : index
    %317 = vector.load %arg13[%c124, %c0_186] : memref<150x92xf32, #tpu.memory_space<vmem>>, vector<1x92xf32>
    tpu.vector_store %arg13[%c124, %c0_186], %316 {strides = array<i32>} : memref<150x92xf32, #tpu.memory_space<vmem>>, vector<1x92xf32>,
    %318 = vector.extract_strided_slice %67 {offsets = [5, 0], sizes = [1, 92], strides = [1, 1]} : vector<6x144xf32> to vector<1x92xf32>
    %c125 = arith.constant 125 : index
    %c0_187 = arith.constant 0 : index
    %319 = vector.load %arg13[%c125, %c0_187] : memref<150x92xf32, #tpu.memory_space<vmem>>, vector<1x92xf32>
    tpu.vector_store %arg13[%c125, %c0_187], %318 {strides = array<i32>} : memref<150x92xf32, #tpu.memory_space<vmem>>, vector<1x92xf32>,
    %320 = vector.extract_strided_slice %67 {offsets = [5, 1], sizes = [1, 92], strides = [1, 1]} : vector<6x144xf32> to vector<1x92xf32>
    %c126 = arith.constant 126 : index
    %c0_188 = arith.constant 0 : index
    %321 = vector.load %arg13[%c126, %c0_188] : memref<150x92xf32, #tpu.memory_space<vmem>>, vector<1x92xf32>
    tpu.vector_store %arg13[%c126, %c0_188], %320 {strides = array<i32>} : memref<150x92xf32, #tpu.memory_space<vmem>>, vector<1x92xf32>,
    %322 = vector.extract_strided_slice %67 {offsets = [5, 2], sizes = [1, 92], strides = [1, 1]} : vector<6x144xf32> to vector<1x92xf32>
    %c127 = arith.constant 127 : index
    %c0_189 = arith.constant 0 : index
    %323 = vector.load %arg13[%c127, %c0_189] : memref<150x92xf32, #tpu.memory_space<vmem>>, vector<1x92xf32>
    tpu.vector_store %arg13[%c127, %c0_189], %322 {strides = array<i32>} : memref<150x92xf32, #tpu.memory_space<vmem>>, vector<1x92xf32>,
    %324 = vector.extract_strided_slice %67 {offsets = [5, 3], sizes = [1, 92], strides = [1, 1]} : vector<6x144xf32> to vector<1x92xf32>
    %c128 = arith.constant 128 : index
    %c0_190 = arith.constant 0 : index
    %325 = vector.load %arg13[%c128, %c0_190] : memref<150x92xf32, #tpu.memory_space<vmem>>, vector<1x92xf32>
    tpu.vector_store %arg13[%c128, %c0_190], %324 {strides = array<i32>} : memref<150x92xf32, #tpu.memory_space<vmem>>, vector<1x92xf32>,
    %326 = vector.extract_strided_slice %67 {offsets = [5, 4], sizes = [1, 92], strides = [1, 1]} : vector<6x144xf32> to vector<1x92xf32>
    %c129 = arith.constant 129 : index
    %c0_191 = arith.constant 0 : index
    %327 = vector.load %arg13[%c129, %c0_191] : memref<150x92xf32, #tpu.memory_space<vmem>>, vector<1x92xf32>
    tpu.vector_store %arg13[%c129, %c0_191], %326 {strides = array<i32>} : memref<150x92xf32, #tpu.memory_space<vmem>>, vector<1x92xf32>,
    %328 = vector.extract_strided_slice %67 {offsets = [5, 12], sizes = [1, 92], strides = [1, 1]} : vector<6x144xf32> to vector<1x92xf32>
    %c130 = arith.constant 130 : index
    %c0_192 = arith.constant 0 : index
    %329 = vector.load %arg13[%c130, %c0_192] : memref<150x92xf32, #tpu.memory_space<vmem>>, vector<1x92xf32>
    tpu.vector_store %arg13[%c130, %c0_192], %328 {strides = array<i32>} : memref<150x92xf32, #tpu.memory_space<vmem>>, vector<1x92xf32>,
    %330 = vector.extract_strided_slice %67 {offsets = [5, 13], sizes = [1, 92], strides = [1, 1]} : vector<6x144xf32> to vector<1x92xf32>
    %c131 = arith.constant 131 : index
    %c0_193 = arith.constant 0 : index
    %331 = vector.load %arg13[%c131, %c0_193] : memref<150x92xf32, #tpu.memory_space<vmem>>, vector<1x92xf32>
    tpu.vector_store %arg13[%c131, %c0_193], %330 {strides = array<i32>} : memref<150x92xf32, #tpu.memory_space<vmem>>, vector<1x92xf32>,
    %332 = vector.extract_strided_slice %67 {offsets = [5, 14], sizes = [1, 92], strides = [1, 1]} : vector<6x144xf32> to vector<1x92xf32>
    %c132 = arith.constant 132 : index
    %c0_194 = arith.constant 0 : index
    %333 = vector.load %arg13[%c132, %c0_194] : memref<150x92xf32, #tpu.memory_space<vmem>>, vector<1x92xf32>
    tpu.vector_store %arg13[%c132, %c0_194], %332 {strides = array<i32>} : memref<150x92xf32, #tpu.memory_space<vmem>>, vector<1x92xf32>,
    %334 = vector.extract_strided_slice %67 {offsets = [5, 15], sizes = [1, 92], strides = [1, 1]} : vector<6x144xf32> to vector<1x92xf32>
    %c133 = arith.constant 133 : index
    %c0_195 = arith.constant 0 : index
    %335 = vector.load %arg13[%c133, %c0_195] : memref<150x92xf32, #tpu.memory_space<vmem>>, vector<1x92xf32>
    tpu.vector_store %arg13[%c133, %c0_195], %334 {strides = array<i32>} : memref<150x92xf32, #tpu.memory_space<vmem>>, vector<1x92xf32>,
    %336 = vector.extract_strided_slice %67 {offsets = [5, 16], sizes = [1, 92], strides = [1, 1]} : vector<6x144xf32> to vector<1x92xf32>
    %c134 = arith.constant 134 : index
    %c0_196 = arith.constant 0 : index
    %337 = vector.load %arg13[%c134, %c0_196] : memref<150x92xf32, #tpu.memory_space<vmem>>, vector<1x92xf32>
    tpu.vector_store %arg13[%c134, %c0_196], %336 {strides = array<i32>} : memref<150x92xf32, #tpu.memory_space<vmem>>, vector<1x92xf32>,
    %338 = vector.extract_strided_slice %67 {offsets = [5, 24], sizes = [1, 92], strides = [1, 1]} : vector<6x144xf32> to vector<1x92xf32>
    %c135 = arith.constant 135 : index
    %c0_197 = arith.constant 0 : index
    %339 = vector.load %arg13[%c135, %c0_197] : memref<150x92xf32, #tpu.memory_space<vmem>>, vector<1x92xf32>
    tpu.vector_store %arg13[%c135, %c0_197], %338 {strides = array<i32>} : memref<150x92xf32, #tpu.memory_space<vmem>>, vector<1x92xf32>,
    %340 = vector.extract_strided_slice %67 {offsets = [5, 25], sizes = [1, 92], strides = [1, 1]} : vector<6x144xf32> to vector<1x92xf32>
    %c136 = arith.constant 136 : index
    %c0_198 = arith.constant 0 : index
    %341 = vector.load %arg13[%c136, %c0_198] : memref<150x92xf32, #tpu.memory_space<vmem>>, vector<1x92xf32>
    tpu.vector_store %arg13[%c136, %c0_198], %340 {strides = array<i32>} : memref<150x92xf32, #tpu.memory_space<vmem>>, vector<1x92xf32>,
    %342 = vector.extract_strided_slice %67 {offsets = [5, 26], sizes = [1, 92], strides = [1, 1]} : vector<6x144xf32> to vector<1x92xf32>
    %c137 = arith.constant 137 : index
    %c0_199 = arith.constant 0 : index
    %343 = vector.load %arg13[%c137, %c0_199] : memref<150x92xf32, #tpu.memory_space<vmem>>, vector<1x92xf32>
    tpu.vector_store %arg13[%c137, %c0_199], %342 {strides = array<i32>} : memref<150x92xf32, #tpu.memory_space<vmem>>, vector<1x92xf32>,
    %344 = vector.extract_strided_slice %67 {offsets = [5, 27], sizes = [1, 92], strides = [1, 1]} : vector<6x144xf32> to vector<1x92xf32>
    %c138 = arith.constant 138 : index
    %c0_200 = arith.constant 0 : index
    %345 = vector.load %arg13[%c138, %c0_200] : memref<150x92xf32, #tpu.memory_space<vmem>>, vector<1x92xf32>
    tpu.vector_store %arg13[%c138, %c0_200], %344 {strides = array<i32>} : memref<150x92xf32, #tpu.memory_space<vmem>>, vector<1x92xf32>,
    %346 = vector.extract_strided_slice %67 {offsets = [5, 28], sizes = [1, 92], strides = [1, 1]} : vector<6x144xf32> to vector<1x92xf32>
    %c139 = arith.constant 139 : index
    %c0_201 = arith.constant 0 : index
    %347 = vector.load %arg13[%c139, %c0_201] : memref<150x92xf32, #tpu.memory_space<vmem>>, vector<1x92xf32>
    tpu.vector_store %arg13[%c139, %c0_201], %346 {strides = array<i32>} : memref<150x92xf32, #tpu.memory_space<vmem>>, vector<1x92xf32>,
    %348 = vector.extract_strided_slice %67 {offsets = [5, 36], sizes = [1, 92], strides = [1, 1]} : vector<6x144xf32> to vector<1x92xf32>
    %c140 = arith.constant 140 : index
    %c0_202 = arith.constant 0 : index
    %349 = vector.load %arg13[%c140, %c0_202] : memref<150x92xf32, #tpu.memory_space<vmem>>, vector<1x92xf32>
    tpu.vector_store %arg13[%c140, %c0_202], %348 {strides = array<i32>} : memref<150x92xf32, #tpu.memory_space<vmem>>, vector<1x92xf32>,
    %350 = vector.extract_strided_slice %67 {offsets = [5, 37], sizes = [1, 92], strides = [1, 1]} : vector<6x144xf32> to vector<1x92xf32>
    %c141 = arith.constant 141 : index
    %c0_203 = arith.constant 0 : index
    %351 = vector.load %arg13[%c141, %c0_203] : memref<150x92xf32, #tpu.memory_space<vmem>>, vector<1x92xf32>
    tpu.vector_store %arg13[%c141, %c0_203], %350 {strides = array<i32>} : memref<150x92xf32, #tpu.memory_space<vmem>>, vector<1x92xf32>,
    %352 = vector.extract_strided_slice %67 {offsets = [5, 38], sizes = [1, 92], strides = [1, 1]} : vector<6x144xf32> to vector<1x92xf32>
    %c142 = arith.constant 142 : index
    %c0_204 = arith.constant 0 : index
    %353 = vector.load %arg13[%c142, %c0_204] : memref<150x92xf32, #tpu.memory_space<vmem>>, vector<1x92xf32>
    tpu.vector_store %arg13[%c142, %c0_204], %352 {strides = array<i32>} : memref<150x92xf32, #tpu.memory_space<vmem>>, vector<1x92xf32>,
    %354 = vector.extract_strided_slice %67 {offsets = [5, 39], sizes = [1, 92], strides = [1, 1]} : vector<6x144xf32> to vector<1x92xf32>
    %c143 = arith.constant 143 : index
    %c0_205 = arith.constant 0 : index
    %355 = vector.load %arg13[%c143, %c0_205] : memref<150x92xf32, #tpu.memory_space<vmem>>, vector<1x92xf32>
    tpu.vector_store %arg13[%c143, %c0_205], %354 {strides = array<i32>} : memref<150x92xf32, #tpu.memory_space<vmem>>, vector<1x92xf32>,
    %356 = vector.extract_strided_slice %67 {offsets = [5, 40], sizes = [1, 92], strides = [1, 1]} : vector<6x144xf32> to vector<1x92xf32>
    %c144 = arith.constant 144 : index
    %c0_206 = arith.constant 0 : index
    %357 = vector.load %arg13[%c144, %c0_206] : memref<150x92xf32, #tpu.memory_space<vmem>>, vector<1x92xf32>
    tpu.vector_store %arg13[%c144, %c0_206], %356 {strides = array<i32>} : memref<150x92xf32, #tpu.memory_space<vmem>>, vector<1x92xf32>,
    %358 = vector.extract_strided_slice %67 {offsets = [5, 48], sizes = [1, 92], strides = [1, 1]} : vector<6x144xf32> to vector<1x92xf32>
    %c145 = arith.constant 145 : index
    %c0_207 = arith.constant 0 : index
    %359 = vector.load %arg13[%c145, %c0_207] : memref<150x92xf32, #tpu.memory_space<vmem>>, vector<1x92xf32>
    tpu.vector_store %arg13[%c145, %c0_207], %358 {strides = array<i32>} : memref<150x92xf32, #tpu.memory_space<vmem>>, vector<1x92xf32>,
    %360 = vector.extract_strided_slice %67 {offsets = [5, 49], sizes = [1, 92], strides = [1, 1]} : vector<6x144xf32> to vector<1x92xf32>
    %c146 = arith.constant 146 : index
    %c0_208 = arith.constant 0 : index
    %361 = vector.load %arg13[%c146, %c0_208] : memref<150x92xf32, #tpu.memory_space<vmem>>, vector<1x92xf32>
    tpu.vector_store %arg13[%c146, %c0_208], %360 {strides = array<i32>} : memref<150x92xf32, #tpu.memory_space<vmem>>, vector<1x92xf32>,
    %362 = vector.extract_strided_slice %67 {offsets = [5, 50], sizes = [1, 92], strides = [1, 1]} : vector<6x144xf32> to vector<1x92xf32>
    %c147 = arith.constant 147 : index
    %c0_209 = arith.constant 0 : index
    %363 = vector.load %arg13[%c147, %c0_209] : memref<150x92xf32, #tpu.memory_space<vmem>>, vector<1x92xf32>
    tpu.vector_store %arg13[%c147, %c0_209], %362 {strides = array<i32>} : memref<150x92xf32, #tpu.memory_space<vmem>>, vector<1x92xf32>,
    %364 = vector.extract_strided_slice %67 {offsets = [5, 51], sizes = [1, 92], strides = [1, 1]} : vector<6x144xf32> to vector<1x92xf32>
    %c148 = arith.constant 148 : index
    %c0_210 = arith.constant 0 : index
    %365 = vector.load %arg13[%c148, %c0_210] : memref<150x92xf32, #tpu.memory_space<vmem>>, vector<1x92xf32>
    tpu.vector_store %arg13[%c148, %c0_210], %364 {strides = array<i32>} : memref<150x92xf32, #tpu.memory_space<vmem>>, vector<1x92xf32>,
    %366 = vector.extract_strided_slice %67 {offsets = [5, 52], sizes = [1, 92], strides = [1, 1]} : vector<6x144xf32> to vector<1x92xf32>
    %c149 = arith.constant 149 : index
    %c0_211 = arith.constant 0 : index
    %367 = vector.load %arg13[%c149, %c0_211] : memref<150x92xf32, #tpu.memory_space<vmem>>, vector<1x92xf32>
    tpu.vector_store %arg13[%c149, %c0_211], %366 {strides = array<i32>} : memref<150x92xf32, #tpu.memory_space<vmem>>, vector<1x92xf32>,
    %c0_212 = arith.constant 0 : index
    %c0_213 = arith.constant 0 : index
    %368 = vector.load %arg4[%c0_212, %c0_213] : memref<16x150xf32, #tpu.memory_space<vmem>>, vector<16x150xf32>
    %c0_214 = arith.constant 0 : index
    %c0_215 = arith.constant 0 : index
    %369 = vector.load %arg13[%c0_214, %c0_215] : memref<150x92xf32, #tpu.memory_space<vmem>>, vector<150x92xf32>
    %cst_216 = arith.constant dense<0.000000e+00> : vector<16x92xf32>
    %370 = tpu.matmul %368, %369, %cst_216 {dimension_numbers = #tpu.dot_dimension_numbers<[1], [0], [0], [1], [0, 0, 1, 1], [], []>} : vector<16x150xf32>, vector<150x92xf32>, vector<16x92xf32> -> vector<16x92xf32>
    %c0_217 = arith.constant 0 : index
    %c0_218 = arith.constant 0 : index
    %371 = vector.load %arg5[%c0_217, %c0_218] : memref<16x1xf32, #tpu.memory_space<vmem>>, vector<16x1xf32>
    %372 = vector.broadcast %371 : vector<16x1xf32> to vector<16x92xf32>
    %373 = arith.addf %370, %372 : vector<16x92xf32>
    %cst_219 = arith.constant 0.000000e+00 : f32
    %374 = vector.broadcast %cst_219 : f32 to vector<16x92xf32>
    %375 = arith.maximumf %373, %374 : vector<16x92xf32>
    %376 = vector.extract_strided_slice %375 {offsets = [0, 0], sizes = [16, 79], strides = [1, 1]} : vector<16x92xf32> to vector<16x79xf32>
    %377 = vector.extract_strided_slice %375 {offsets = [0, 1], sizes = [16, 79], strides = [1, 1]} : vector<16x92xf32> to vector<16x79xf32>
    %378 = arith.maximumf %376, %377 : vector<16x79xf32>
    %379 = vector.extract_strided_slice %375 {offsets = [0, 12], sizes = [16, 79], strides = [1, 1]} : vector<16x92xf32> to vector<16x79xf32>
    %380 = vector.extract_strided_slice %375 {offsets = [0, 13], sizes = [16, 79], strides = [1, 1]} : vector<16x92xf32> to vector<16x79xf32>
    %381 = arith.maximumf %379, %380 : vector<16x79xf32>
    %382 = arith.maximumf %378, %381 : vector<16x79xf32>
    %c0_220 = arith.constant 0 : index
    %c0_221 = arith.constant 0 : index
    %383 = vector.load %arg8[%c0_220, %c0_221] : memref<1x64xf32, #tpu.memory_space<vmem>>, vector<1x64xf32>
    %384 = vector.extract_strided_slice %382 {offsets = [0, 0], sizes = [1, 79], strides = [1, 1]} : vector<16x79xf32> to vector<1x79xf32>
    %c0_222 = arith.constant 0 : index
    %c0_223 = arith.constant 0 : index
    %c0_224 = arith.constant 0 : index
    %385 = vector.load %arg7[%c0_222, %c0_223, %c0_224] : memref<16x79x64xf32, #tpu.memory_space<vmem>>, vector<1x79x64xf32>
    %386 = vector.shape_cast %385 : vector<1x79x64xf32> to vector<79x64xf32>
    %cst_225 = arith.constant dense<0.000000e+00> : vector<1x64xf32>
    %387 = tpu.matmul %384, %386, %cst_225 {dimension_numbers = #tpu.dot_dimension_numbers<[1], [0], [0], [1], [0, 0, 1, 1], [], []>} : vector<1x79xf32>, vector<79x64xf32>, vector<1x64xf32> -> vector<1x64xf32>
    %388 = arith.addf %383, %387 : vector<1x64xf32>
    %389 = vector.extract_strided_slice %382 {offsets = [1, 0], sizes = [1, 79], strides = [1, 1]} : vector<16x79xf32> to vector<1x79xf32>
    %c1_226 = arith.constant 1 : index
    %c0_227 = arith.constant 0 : index
    %c0_228 = arith.constant 0 : index
    %390 = vector.load %arg7[%c1_226, %c0_227, %c0_228] : memref<16x79x64xf32, #tpu.memory_space<vmem>>, vector<1x79x64xf32>
    %391 = vector.shape_cast %390 : vector<1x79x64xf32> to vector<79x64xf32>
    %cst_229 = arith.constant dense<0.000000e+00> : vector<1x64xf32>
    %392 = tpu.matmul %389, %391, %cst_229 {dimension_numbers = #tpu.dot_dimension_numbers<[1], [0], [0], [1], [0, 0, 1, 1], [], []>} : vector<1x79xf32>, vector<79x64xf32>, vector<1x64xf32> -> vector<1x64xf32>
    %393 = arith.addf %388, %392 : vector<1x64xf32>
    %394 = vector.extract_strided_slice %382 {offsets = [2, 0], sizes = [1, 79], strides = [1, 1]} : vector<16x79xf32> to vector<1x79xf32>
    %c2_230 = arith.constant 2 : index
    %c0_231 = arith.constant 0 : index
    %c0_232 = arith.constant 0 : index
    %395 = vector.load %arg7[%c2_230, %c0_231, %c0_232] : memref<16x79x64xf32, #tpu.memory_space<vmem>>, vector<1x79x64xf32>
    %396 = vector.shape_cast %395 : vector<1x79x64xf32> to vector<79x64xf32>
    %cst_233 = arith.constant dense<0.000000e+00> : vector<1x64xf32>
    %397 = tpu.matmul %394, %396, %cst_233 {dimension_numbers = #tpu.dot_dimension_numbers<[1], [0], [0], [1], [0, 0, 1, 1], [], []>} : vector<1x79xf32>, vector<79x64xf32>, vector<1x64xf32> -> vector<1x64xf32>
    %398 = arith.addf %393, %397 : vector<1x64xf32>
    %399 = vector.extract_strided_slice %382 {offsets = [3, 0], sizes = [1, 79], strides = [1, 1]} : vector<16x79xf32> to vector<1x79xf32>
    %c3_234 = arith.constant 3 : index
    %c0_235 = arith.constant 0 : index
    %c0_236 = arith.constant 0 : index
    %400 = vector.load %arg7[%c3_234, %c0_235, %c0_236] : memref<16x79x64xf32, #tpu.memory_space<vmem>>, vector<1x79x64xf32>
    %401 = vector.shape_cast %400 : vector<1x79x64xf32> to vector<79x64xf32>
    %cst_237 = arith.constant dense<0.000000e+00> : vector<1x64xf32>
    %402 = tpu.matmul %399, %401, %cst_237 {dimension_numbers = #tpu.dot_dimension_numbers<[1], [0], [0], [1], [0, 0, 1, 1], [], []>} : vector<1x79xf32>, vector<79x64xf32>, vector<1x64xf32> -> vector<1x64xf32>
    %403 = arith.addf %398, %402 : vector<1x64xf32>
    %404 = vector.extract_strided_slice %382 {offsets = [4, 0], sizes = [1, 79], strides = [1, 1]} : vector<16x79xf32> to vector<1x79xf32>
    %c4_238 = arith.constant 4 : index
    %c0_239 = arith.constant 0 : index
    %c0_240 = arith.constant 0 : index
    %405 = vector.load %arg7[%c4_238, %c0_239, %c0_240] : memref<16x79x64xf32, #tpu.memory_space<vmem>>, vector<1x79x64xf32>
    %406 = vector.shape_cast %405 : vector<1x79x64xf32> to vector<79x64xf32>
    %cst_241 = arith.constant dense<0.000000e+00> : vector<1x64xf32>
    %407 = tpu.matmul %404, %406, %cst_241 {dimension_numbers = #tpu.dot_dimension_numbers<[1], [0], [0], [1], [0, 0, 1, 1], [], []>} : vector<1x79xf32>, vector<79x64xf32>, vector<1x64xf32> -> vector<1x64xf32>
    %408 = arith.addf %403, %407 : vector<1x64xf32>
    %409 = vector.extract_strided_slice %382 {offsets = [5, 0], sizes = [1, 79], strides = [1, 1]} : vector<16x79xf32> to vector<1x79xf32>
    %c5_242 = arith.constant 5 : index
    %c0_243 = arith.constant 0 : index
    %c0_244 = arith.constant 0 : index
    %410 = vector.load %arg7[%c5_242, %c0_243, %c0_244] : memref<16x79x64xf32, #tpu.memory_space<vmem>>, vector<1x79x64xf32>
    %411 = vector.shape_cast %410 : vector<1x79x64xf32> to vector<79x64xf32>
    %cst_245 = arith.constant dense<0.000000e+00> : vector<1x64xf32>
    %412 = tpu.matmul %409, %411, %cst_245 {dimension_numbers = #tpu.dot_dimension_numbers<[1], [0], [0], [1], [0, 0, 1, 1], [], []>} : vector<1x79xf32>, vector<79x64xf32>, vector<1x64xf32> -> vector<1x64xf32>
    %413 = arith.addf %408, %412 : vector<1x64xf32>
    %414 = vector.extract_strided_slice %382 {offsets = [6, 0], sizes = [1, 79], strides = [1, 1]} : vector<16x79xf32> to vector<1x79xf32>
    %c6_246 = arith.constant 6 : index
    %c0_247 = arith.constant 0 : index
    %c0_248 = arith.constant 0 : index
    %415 = vector.load %arg7[%c6_246, %c0_247, %c0_248] : memref<16x79x64xf32, #tpu.memory_space<vmem>>, vector<1x79x64xf32>
    %416 = vector.shape_cast %415 : vector<1x79x64xf32> to vector<79x64xf32>
    %cst_249 = arith.constant dense<0.000000e+00> : vector<1x64xf32>
    %417 = tpu.matmul %414, %416, %cst_249 {dimension_numbers = #tpu.dot_dimension_numbers<[1], [0], [0], [1], [0, 0, 1, 1], [], []>} : vector<1x79xf32>, vector<79x64xf32>, vector<1x64xf32> -> vector<1x64xf32>
    %418 = arith.addf %413, %417 : vector<1x64xf32>
    %419 = vector.extract_strided_slice %382 {offsets = [7, 0], sizes = [1, 79], strides = [1, 1]} : vector<16x79xf32> to vector<1x79xf32>
    %c7_250 = arith.constant 7 : index
    %c0_251 = arith.constant 0 : index
    %c0_252 = arith.constant 0 : index
    %420 = vector.load %arg7[%c7_250, %c0_251, %c0_252] : memref<16x79x64xf32, #tpu.memory_space<vmem>>, vector<1x79x64xf32>
    %421 = vector.shape_cast %420 : vector<1x79x64xf32> to vector<79x64xf32>
    %cst_253 = arith.constant dense<0.000000e+00> : vector<1x64xf32>
    %422 = tpu.matmul %419, %421, %cst_253 {dimension_numbers = #tpu.dot_dimension_numbers<[1], [0], [0], [1], [0, 0, 1, 1], [], []>} : vector<1x79xf32>, vector<79x64xf32>, vector<1x64xf32> -> vector<1x64xf32>
    %423 = arith.addf %418, %422 : vector<1x64xf32>
    %424 = vector.extract_strided_slice %382 {offsets = [8, 0], sizes = [1, 79], strides = [1, 1]} : vector<16x79xf32> to vector<1x79xf32>
    %c8_254 = arith.constant 8 : index
    %c0_255 = arith.constant 0 : index
    %c0_256 = arith.constant 0 : index
    %425 = vector.load %arg7[%c8_254, %c0_255, %c0_256] : memref<16x79x64xf32, #tpu.memory_space<vmem>>, vector<1x79x64xf32>
    %426 = vector.shape_cast %425 : vector<1x79x64xf32> to vector<79x64xf32>
    %cst_257 = arith.constant dense<0.000000e+00> : vector<1x64xf32>
    %427 = tpu.matmul %424, %426, %cst_257 {dimension_numbers = #tpu.dot_dimension_numbers<[1], [0], [0], [1], [0, 0, 1, 1], [], []>} : vector<1x79xf32>, vector<79x64xf32>, vector<1x64xf32> -> vector<1x64xf32>
    %428 = arith.addf %423, %427 : vector<1x64xf32>
    %429 = vector.extract_strided_slice %382 {offsets = [9, 0], sizes = [1, 79], strides = [1, 1]} : vector<16x79xf32> to vector<1x79xf32>
    %c9_258 = arith.constant 9 : index
    %c0_259 = arith.constant 0 : index
    %c0_260 = arith.constant 0 : index
    %430 = vector.load %arg7[%c9_258, %c0_259, %c0_260] : memref<16x79x64xf32, #tpu.memory_space<vmem>>, vector<1x79x64xf32>
    %431 = vector.shape_cast %430 : vector<1x79x64xf32> to vector<79x64xf32>
    %cst_261 = arith.constant dense<0.000000e+00> : vector<1x64xf32>
    %432 = tpu.matmul %429, %431, %cst_261 {dimension_numbers = #tpu.dot_dimension_numbers<[1], [0], [0], [1], [0, 0, 1, 1], [], []>} : vector<1x79xf32>, vector<79x64xf32>, vector<1x64xf32> -> vector<1x64xf32>
    %433 = arith.addf %428, %432 : vector<1x64xf32>
    %434 = vector.extract_strided_slice %382 {offsets = [10, 0], sizes = [1, 79], strides = [1, 1]} : vector<16x79xf32> to vector<1x79xf32>
    %c10_262 = arith.constant 10 : index
    %c0_263 = arith.constant 0 : index
    %c0_264 = arith.constant 0 : index
    %435 = vector.load %arg7[%c10_262, %c0_263, %c0_264] : memref<16x79x64xf32, #tpu.memory_space<vmem>>, vector<1x79x64xf32>
    %436 = vector.shape_cast %435 : vector<1x79x64xf32> to vector<79x64xf32>
    %cst_265 = arith.constant dense<0.000000e+00> : vector<1x64xf32>
    %437 = tpu.matmul %434, %436, %cst_265 {dimension_numbers = #tpu.dot_dimension_numbers<[1], [0], [0], [1], [0, 0, 1, 1], [], []>} : vector<1x79xf32>, vector<79x64xf32>, vector<1x64xf32> -> vector<1x64xf32>
    %438 = arith.addf %433, %437 : vector<1x64xf32>
    %439 = vector.extract_strided_slice %382 {offsets = [11, 0], sizes = [1, 79], strides = [1, 1]} : vector<16x79xf32> to vector<1x79xf32>
    %c11_266 = arith.constant 11 : index
    %c0_267 = arith.constant 0 : index
    %c0_268 = arith.constant 0 : index
    %440 = vector.load %arg7[%c11_266, %c0_267, %c0_268] : memref<16x79x64xf32, #tpu.memory_space<vmem>>, vector<1x79x64xf32>
    %441 = vector.shape_cast %440 : vector<1x79x64xf32> to vector<79x64xf32>
    %cst_269 = arith.constant dense<0.000000e+00> : vector<1x64xf32>
    %442 = tpu.matmul %439, %441, %cst_269 {dimension_numbers = #tpu.dot_dimension_numbers<[1], [0], [0], [1], [0, 0, 1, 1], [], []>} : vector<1x79xf32>, vector<79x64xf32>, vector<1x64xf32> -> vector<1x64xf32>
    %443 = arith.addf %438, %442 : vector<1x64xf32>
    %444 = vector.extract_strided_slice %382 {offsets = [12, 0], sizes = [1, 79], strides = [1, 1]} : vector<16x79xf32> to vector<1x79xf32>
    %c12_270 = arith.constant 12 : index
    %c0_271 = arith.constant 0 : index
    %c0_272 = arith.constant 0 : index
    %445 = vector.load %arg7[%c12_270, %c0_271, %c0_272] : memref<16x79x64xf32, #tpu.memory_space<vmem>>, vector<1x79x64xf32>
    %446 = vector.shape_cast %445 : vector<1x79x64xf32> to vector<79x64xf32>
    %cst_273 = arith.constant dense<0.000000e+00> : vector<1x64xf32>
    %447 = tpu.matmul %444, %446, %cst_273 {dimension_numbers = #tpu.dot_dimension_numbers<[1], [0], [0], [1], [0, 0, 1, 1], [], []>} : vector<1x79xf32>, vector<79x64xf32>, vector<1x64xf32> -> vector<1x64xf32>
    %448 = arith.addf %443, %447 : vector<1x64xf32>
    %449 = vector.extract_strided_slice %382 {offsets = [13, 0], sizes = [1, 79], strides = [1, 1]} : vector<16x79xf32> to vector<1x79xf32>
    %c13_274 = arith.constant 13 : index
    %c0_275 = arith.constant 0 : index
    %c0_276 = arith.constant 0 : index
    %450 = vector.load %arg7[%c13_274, %c0_275, %c0_276] : memref<16x79x64xf32, #tpu.memory_space<vmem>>, vector<1x79x64xf32>
    %451 = vector.shape_cast %450 : vector<1x79x64xf32> to vector<79x64xf32>
    %cst_277 = arith.constant dense<0.000000e+00> : vector<1x64xf32>
    %452 = tpu.matmul %449, %451, %cst_277 {dimension_numbers = #tpu.dot_dimension_numbers<[1], [0], [0], [1], [0, 0, 1, 1], [], []>} : vector<1x79xf32>, vector<79x64xf32>, vector<1x64xf32> -> vector<1x64xf32>
    %453 = arith.addf %448, %452 : vector<1x64xf32>
    %454 = vector.extract_strided_slice %382 {offsets = [14, 0], sizes = [1, 79], strides = [1, 1]} : vector<16x79xf32> to vector<1x79xf32>
    %c14_278 = arith.constant 14 : index
    %c0_279 = arith.constant 0 : index
    %c0_280 = arith.constant 0 : index
    %455 = vector.load %arg7[%c14_278, %c0_279, %c0_280] : memref<16x79x64xf32, #tpu.memory_space<vmem>>, vector<1x79x64xf32>
    %456 = vector.shape_cast %455 : vector<1x79x64xf32> to vector<79x64xf32>
    %cst_281 = arith.constant dense<0.000000e+00> : vector<1x64xf32>
    %457 = tpu.matmul %454, %456, %cst_281 {dimension_numbers = #tpu.dot_dimension_numbers<[1], [0], [0], [1], [0, 0, 1, 1], [], []>} : vector<1x79xf32>, vector<79x64xf32>, vector<1x64xf32> -> vector<1x64xf32>
    %458 = arith.addf %453, %457 : vector<1x64xf32>
    %459 = vector.extract_strided_slice %382 {offsets = [15, 0], sizes = [1, 79], strides = [1, 1]} : vector<16x79xf32> to vector<1x79xf32>
    %c15_282 = arith.constant 15 : index
    %c0_283 = arith.constant 0 : index
    %c0_284 = arith.constant 0 : index
    %460 = vector.load %arg7[%c15_282, %c0_283, %c0_284] : memref<16x79x64xf32, #tpu.memory_space<vmem>>, vector<1x79x64xf32>
    %461 = vector.shape_cast %460 : vector<1x79x64xf32> to vector<79x64xf32>
    %cst_285 = arith.constant dense<0.000000e+00> : vector<1x64xf32>
    %462 = tpu.matmul %459, %461, %cst_285 {dimension_numbers = #tpu.dot_dimension_numbers<[1], [0], [0], [1], [0, 0, 1, 1], [], []>} : vector<1x79xf32>, vector<79x64xf32>, vector<1x64xf32> -> vector<1x64xf32>
    %463 = arith.addf %458, %462 : vector<1x64xf32>
    %cst_286 = arith.constant 0.000000e+00 : f32
    %464 = vector.broadcast %cst_286 : f32 to vector<1x64xf32>
    %465 = arith.maximumf %463, %464 : vector<1x64xf32>
    %c0_287 = arith.constant 0 : index
    %c0_288 = arith.constant 0 : index
    %466 = vector.load %arg9[%c0_287, %c0_288] : memref<1x64xf32, #tpu.memory_space<vmem>>, vector<1x64xf32>
    %467 = arith.mulf %465, %466 : vector<1x64xf32>
    %cst_289 = arith.constant dense<0.000000e+00> : vector<1xf32>
    %468 = vector.multi_reduction <add>, %467, %cst_289 [1] : vector<1x64xf32> to vector<1xf32>
    %469 = vector.shape_cast %468 : vector<1xf32> to vector<1x1xf32>
    %c0_290 = arith.constant 0 : index
    %c0_291 = arith.constant 0 : index
    %470 = vector.load %arg10[%c0_290, %c0_291] : memref<1x1xf32, #tpu.memory_space<vmem>>, vector<1x1xf32>
    %471 = arith.addf %469, %470 : vector<1x1xf32>
    %c0_292 = arith.constant 0 : index
    %c0_293 = arith.constant 0 : index
    %472 = vector.load %arg11[%c0_292, %c0_293] : memref<1x2xf32, #tpu.memory_space<vmem>>, vector<1x1xf32>
    tpu.vector_store %arg11[%c0_292, %c0_293], %471 {strides = array<i32>} : memref<1x2xf32, #tpu.memory_space<vmem>>, vector<1x1xf32>,
    %cst_294 = arith.constant 1.000000e+00 : f32
    %473 = vector.broadcast %cst_294 : f32 to vector<1x1xf32>
    %474 = arith.subf %473, %471 : vector<1x1xf32>
    %c0_295 = arith.constant 0 : index
    %c1_296 = arith.constant 1 : index
    %475 = vector.load %arg11[%c0_295, %c1_296] : memref<1x2xf32, #tpu.memory_space<vmem>>, vector<1x1xf32>
    tpu.vector_store %arg11[%c0_295, %c1_296], %474 {strides = array<i32>} : memref<1x2xf32, #tpu.memory_space<vmem>>, vector<1x1xf32>,
    return
  }
  func.func @transform_0(%arg0: i32) -> (i32, i32) {
    %c0_i32 = arith.constant 0 : i32
    %c0_i32_0 = arith.constant 0 : i32
    %c0_i32_1 = arith.constant 0 : i32
    return %c0_i32, %c0_i32_0 : i32, i32
  }
  func.func @transform_1(%arg0: i32) -> (i32, i32) {
    %c0_i32 = arith.constant 0 : i32
    %c0_i32_0 = arith.constant 0 : i32
    %c0_i32_1 = arith.constant 0 : i32
    return %c0_i32, %c0_i32_0 : i32, i32
  }
  func.func @transform_2(%arg0: i32) -> (i32, i32) {
    %c0_i32 = arith.constant 0 : i32
    %c0_i32_0 = arith.constant 0 : i32
    %c0_i32_1 = arith.constant 0 : i32
    return %c0_i32, %c0_i32_0 : i32, i32
  }
  func.func @transform_3(%arg0: i32) -> (i32, i32) {
    %c0_i32 = arith.constant 0 : i32
    %c0_i32_0 = arith.constant 0 : i32
    %c0_i32_1 = arith.constant 0 : i32
    return %c0_i32, %c0_i32_0 : i32, i32
  }
  func.func @transform_4(%arg0: i32) -> (i32, i32) {
    %c0_i32 = arith.constant 0 : i32
    %c0_i32_0 = arith.constant 0 : i32
    %c0_i32_1 = arith.constant 0 : i32
    return %c0_i32, %c0_i32_0 : i32, i32
  }
  func.func @transform_5(%arg0: i32) -> (i32, i32) {
    %c0_i32 = arith.constant 0 : i32
    %c0_i32_0 = arith.constant 0 : i32
    %c0_i32_1 = arith.constant 0 : i32
    return %c0_i32, %c0_i32_0 : i32, i32
  }
  func.func @transform_6(%arg0: i32) -> (i32, i32, i32) {
    %c0_i32 = arith.constant 0 : i32
    %c0_i32_0 = arith.constant 0 : i32
    %c0_i32_1 = arith.constant 0 : i32
    %c0_i32_2 = arith.constant 0 : i32
    return %c0_i32, %c0_i32_0, %c0_i32_1 : i32, i32, i32
  }
  func.func @transform_7(%arg0: i32) -> (i32, i32) {
    %c0_i32 = arith.constant 0 : i32
    %c0_i32_0 = arith.constant 0 : i32
    %c0_i32_1 = arith.constant 0 : i32
    return %c0_i32, %c0_i32_0 : i32, i32
  }
  func.func @transform_8(%arg0: i32) -> (i32, i32) {
    %c0_i32 = arith.constant 0 : i32
    %c0_i32_0 = arith.constant 0 : i32
    %c0_i32_1 = arith.constant 0 : i32
    return %c0_i32, %c0_i32_0 : i32, i32
  }
  func.func @transform_9(%arg0: i32) -> (i32, i32) {
    %c0_i32 = arith.constant 0 : i32
    %c0_i32_0 = arith.constant 0 : i32
    %c0_i32_1 = arith.constant 0 : i32
    return %c0_i32, %c0_i32_0 : i32, i32
  }
  func.func @transform_10(%arg0: i32) -> (i32, i32) {
    %c0_i32 = arith.constant 0 : i32
    %c0_i32_0 = arith.constant 0 : i32
    %c0_i32_1 = arith.constant 0 : i32
    return %c0_i32, %c0_i32_0 : i32, i32
  }
}

</mosaic_0001>

<bundles_post_ra>
// kernel: net_forward.1
= control target key start
LH: loop header
LB: loop body
LE: loop exit
PB: predicated region body
PF: predicated region fallthrough
CT: control target
= control target key end

     0   :  { %s5414_s0 = inlined_call_operand.vmem [shape: f32[1,784], index: 0, kind: input, shape index: {}]   ;;  %s5415_s1 = inlined_call_operand.vmem [shape: f32[6,25], index: 1, kind: input, shape index: {}]   ;;  %s5416_s2 = inlined_call_operand.vmem [shape: f32[6,1], index: 2, kind: input, shape index: {}]   ;;  %s5417_s3 = inlined_call_operand.vmem [shape: f32[16,150], index: 3, kind: input, shape index: {}]   ;;  %s5418_s4 = inlined_call_operand.vmem [shape: f32[16,1], index: 4, kind: input, shape index: {}]   ;;  %s5419_s5 = inlined_call_operand.vmem [shape: f32[639,144], index: 5, kind: input, shape index: {}]   ;;  %s5420_s6 = inlined_call_operand.vmem [shape: f32[16,79,64], index: 6, kind: input, shape index: {}]   ;;  %s5421_s7 = inlined_call_operand.vmem [shape: f32[1,64], index: 7, kind: input, shape index: {}]   ;;  %s5422_s8 = inlined_call_operand.vmem [shape: f32[1,64], index: 8, kind: input, shape index: {}]   ;;  %s5423_s9 = inlined_call_operand.<no memory space> [shape: f32[1,1], index: 9, kind: input, shape index: {}]   ;;  %s5424_s10 = inlined_call_operand.hbm [shape: f32[1,2], index: 10, kind: output, shape index: {}]  }
   0x1   :  { %v15_v0 = vstv %s5423_s9 }
   0x2   :  { %16 = vst [vmem:[#allocation4] sm:$0x1] %v15_v0 }
   0x3   :  { %v38_v1 = vld [vmem:[%s5414_s0] sm:$0x7f]  ;;  %v39_v2 = vlaneseq  ;;  %s3664_s17 = smov 42   ;;  %s3665_s18 = smov 12  }
   0x4   :  { %190 = vrot.lane.b32.xlu1 %v38_v1, %s3664_s17  ;;  %253 = vrot.lane.b32.xlu0 %v38_v1, %s3665_s18 }
   0x5   :  { %vm3773_vm0 = vcmp.lt.s32.totalorder %v39_v2, 668 }
   0x6   :  { %43 = vst.msk [vmem:[#allocation2] ss:$8 sm:$0xf] %vm3773_vm0, %v38_v1  ;;  %44 = vst.msk [vmem:[#allocation2] ss:$8 sm:$0x30] %vm3773_vm0, %v38_v1 }
   0x7   :  { %17 = vsyncpa [#allocation6], 0  ;;  %s3666_s9 = smov 41   ;;  %s3667_s19 = smov 43   ;;  %v3688_v4 = vmov 0.0   ;;  %v3689_v6 = vmov 0  }
   0x8   :  { %199 = vrot.lane.b32.xlu1 %v38_v1, %s3666_s9  ;;  %181 = vrot.lane.b32.xlu0 %v38_v1, %s3667_s19  ;;  %s3668_s0 = smov 16   ;;  %s3669_s20 = smov 40   ;;  %v287_v5 = vld [vmem:[%s5416_s2] sm:$0x3f]  ;;  %vm193_vm1 = vcmask 343040   ;;  %vm256_vm2 = vcmask 97280  }
   0x9   :  { %s3670_s21 = smov 14   ;;  %s3671_s22 = smov 15   ;;  %380 = vmatprep.mubr.f32.mxu1 %v3688_v4  ;;  %522 = vmatprep.mubr.f32.mxu0 %v3688_v4  ;;  %vm202_vm3 = vcmask 334848   ;;  %vm184_vm4 = vcmask 351232   ;;  %vm220_vm5 = vcmask 130048   ;;  %vm211_vm6 = vcmask 326656  }
   0xa   :  { %s3672_s23 = smov 97   ;;  %s3673_s24 = smov 13   ;;  %3626 = vset.pattern.permute.xlu0 %v3689_v6  ;;  %vm297_vm7 = vcmask 1040384   ;;  %vm238_vm8 = vcmask 113664   ;;  %vm229_vm9 = vcmask 121856   ;;  %vm112_vm10 = vcmask 793600  }
   0xb   :  { %s3674_s25 = smov 72   ;;  %s3675_s26 = smov 96   ;;  %vm247_vm11 = vcmask 105472   ;;  %vm130_vm12 = vcmask 588800   ;;  %vm121_vm13 = vcmask 785408   ;;  %vm148_vm14 = vcmask 572416  }
   0xc   :  { %217 = vrot.lane.b32.xlu1 %v38_v1, %s3668_s0  ;;  %208 = vrot.lane.b32.xlu0 %v38_v1, %s3669_s20  ;;  %s3676_s27 = smov 70   ;;  %s3677_s28 = smov 71   ;;  %vm139_vm15 = vcmask 580608  }
   0xd   :  { %s3678_s29 = smov 68   ;;  %s3679_s30 = smov 69  }
   0xe   :  { %s3680_s11 = smov 127   ;;  %s3681_s12 = smov 44  }
   0xf   :  { %s3682_s13 = smov 125   ;;  %s3683_s14 = smov 126  }
  0x10   :  { %235 = vrot.lane.b32.xlu1 %v38_v1, %s3670_s21  ;;  %226 = vrot.lane.b32.xlu0 %v38_v1, %s3671_s22  ;;  %s3684_s15 = smov 100   ;;  %s3685_s16 = smov 124  }
  0x11   :  { %s3686_s17 = smov 98   ;;  %s3687_s18 = smov 99  }
  0x12   :  { %s3691_s19 = smov 101   ;;  %s3692_s2 = smov 79  }
  0x13   :  { %s3694_s0 = smov 78   ;;  %s3696_s20 = smov 77  }
  0x14   :  { %109 = vrot.lane.b32.xlu1 %v38_v1, %s3672_s23  ;;  %244 = vrot.lane.b32.xlu0 %v38_v1, %s3673_s24  ;;  %s3697_s21 = smov 114   ;;  %s3698_s22 = smov 76  }
  0x15   :  { %s3699_s23 = smov 112   ;;  %s3700_s24 = smov 91  }
  0x18   :  { %127 = vrot.lane.b32.xlu1 %v38_v1, %s3674_s25  ;;  %118 = vrot.lane.b32.xlu0 %v38_v1, %s3675_s26  ;;  %s3701_s25 = smov 90   ;;  %s3702_s26 = smov 89  }
  0x1c   :  { %145 = vrot.lane.b32.xlu1 %v38_v1, %s3676_s27  ;;  %136 = vrot.lane.b32.xlu0 %v38_v1, %s3677_s28  ;;  %s3703_s27 = smov 88   ;;  %s3704_s28 = smov 102  }
  0x20   :  { %163 = vrot.lane.b32.xlu1 %v38_v1, %s3678_s29  ;;  %154 = vrot.lane.b32.xlu0 %v38_v1, %s3679_s30  ;;  %s3705_s29 = smov 115   ;;  %s3706_s30 = smov 113  }
  0x24   :  { %46 = vrot.lane.b32.xlu1 %v38_v1, %s3680_s11  ;;  %172 = vrot.lane.b32.xlu0 %v38_v1, %s3681_s12  ;;  %s3707_s12 = smov 104  }
  0x28   :  { %64 = vrot.lane.b32.xlu1 %v38_v1, %s3682_s13  ;;  %55 = vrot.lane.b32.xlu0 %v38_v1, %s3683_s14 }
  0x2c   :  { %82 = vrot.lane.b32.xlu1 %v38_v1, %s3684_s15  ;;  %73 = vrot.lane.b32.xlu0 %v38_v1, %s3685_s16 }
  0x30   :  { %100 = vrot.lane.b32.xlu1 %v38_v1, %s3686_s17  ;;  %91 = vrot.lane.b32.xlu0 %v38_v1, %s3687_s18  ;;  %s3708_s17 = smov 103  }
  0x34   :  { %290 = vperm.xlu0 %3626, %v287_v5  }
  0x76   :  { %v191_v7 = vpop.permute.xlu1 %190  ;;  %v254_v8 = vpop.permute.xlu0 %253 }
  0x77   :  { %v192_v9 = vrot.slane %v191_v7, 1  ;;  %v255_v10 = vrot.slane %v254_v8, 1 }
  0x79   :  { %v194_v11 = vsel %vm193_vm1, %v191_v7, %v192_v9  ;;  %v257_v12 = vsel %vm256_vm2, %v254_v8, %v255_v10  ;;  %vm166_vm1 = vcmask 556032   ;;  %vm157_vm2 = vcmask 564224  }
  0x7a   :  { %197 = vst.msk [vmem:[#allocation2 + $0x61] ss:$8 sm:$0xf] %vm3773_vm0, %v194_v11  ;;  %198 = vst.msk [vmem:[#allocation2 + $0x61] ss:$8 sm:$0x30] %vm3773_vm0, %v194_v11  ;;  %v200_v13 = vpop.permute.xlu1 %199  ;;  %v182_v14 = vpop.permute.xlu0 %181 }
  0x7b   :  { %260 = vst.msk [vmem:[#allocation2 + $0x90] ss:$8 sm:$0xf] %vm3773_vm0, %v257_v12  ;;  %261 = vst.msk [vmem:[#allocation2 + $0x90] ss:$8 sm:$0x30] %vm3773_vm0, %v257_v12 }
  0x7c   :  { %v201_v15 = vrot.slane %v200_v13, 1  ;;  %v183_v16 = vrot.slane %v182_v14, 1 }
  0x7e   :  { %v203_v17 = vsel %vm202_vm3, %v200_v13, %v201_v15  ;;  %v185_v18 = vsel %vm184_vm4, %v182_v14, %v183_v16  ;;  %v218_v19 = vpop.permute.xlu1 %217  ;;  %v209_v20 = vpop.permute.xlu0 %208  ;;  %vm49_vm3 = vcmask 1039360   ;;  %vm175_vm4 = vcmask 359424  }
  0x7f   :  { %206 = vst.msk [vmem:[#allocation2 + $0x62] ss:$8 sm:$0xf] %vm3773_vm0, %v203_v17  ;;  %207 = vst.msk [vmem:[#allocation2 + $0x62] ss:$8 sm:$0x30] %vm3773_vm0, %v203_v17 }
  0x80   :  { %188 = vst.msk [vmem:[#allocation2 + $0x60] ss:$8 sm:$0xf] %vm3773_vm0, %v185_v18  ;;  %189 = vst.msk [vmem:[#allocation2 + $0x60] ss:$8 sm:$0x30] %vm3773_vm0, %v185_v18 }
  0x81   :  { %v219_v21 = vrot.slane %v218_v19, 1  ;;  %v210_v22 = vrot.slane %v209_v20, 1 }
  0x82   :  { %v282_v25 = vld [vmem:[#allocation2 + $0x98] sm:$0x1]  ;;  %v281_v27 = vld [vmem:[#allocation2 + $0x90] sm:$0x1]  ;;  %v236_v28 = vpop.permute.xlu1 %235  ;;  %v227_v29 = vpop.permute.xlu0 %226  ;;  %v283_v3 = vld [vmem:[#allocation2 + $0xa0] sm:$0x1] }
  0x83   :  { %v221_v23 = vsel %vm220_vm5, %v218_v19, %v219_v21  ;;  %v212_v24 = vsel %vm211_vm6, %v209_v20, %v210_v22  ;;  %v286_v26 = vld [vmem:[#allocation2 + $0xb8] sm:$0x1]  ;;  %2837 = vmatprep.subr.msk.mxu1 %vm297_vm7, %v282_v25  ;;  %v285_v30 = vld [vmem:[#allocation2 + $0xb0] sm:$0x1]  ;;  %v237_v31 = vrot.slane %v236_v28, 1  ;;  %v228_v32 = vrot.slane %v227_v29, 1 }
  0x84   :  { %224 = vst.msk [vmem:[#allocation2 + $0x64] ss:$8 sm:$0xf] %vm3773_vm0, %v221_v23  ;;  %225 = vst.msk [vmem:[#allocation2 + $0x64] ss:$8 sm:$0x30] %vm3773_vm0, %v221_v23  ;;  %2843 = vmatprep.subr.msk.mxu0 %vm297_vm7, %v286_v26  ;;  %2838 = vmatpush1.msk.msra.mxu1 %vm297_vm7, %v281_v27 }
  0x85   :  { %215 = vst.msk [vmem:[#allocation2 + $0x63] ss:$8 sm:$0xf] %vm3773_vm0, %v212_v24  ;;  %216 = vst.msk [vmem:[#allocation2 + $0x63] ss:$8 sm:$0x30] %vm3773_vm0, %v212_v24  ;;  %2844 = vmatpush1.msk.msra.mxu0 %vm297_vm7, %v285_v30  ;;  %v239_v33 = vsel %vm238_vm8, %v236_v28, %v237_v31  ;;  %v230_v34 = vsel %vm229_vm9, %v227_v29, %v228_v32 }
  0x86   :  { %242 = vst.msk [vmem:[#allocation2 + $0x66] ss:$8 sm:$0xf] %vm3773_vm0, %v239_v33  ;;  %243 = vst.msk [vmem:[#allocation2 + $0x66] ss:$8 sm:$0x30] %vm3773_vm0, %v239_v33  ;;  %v110_v35 = vpop.permute.xlu1 %109  ;;  %v245_v36 = vpop.permute.xlu0 %244 }
  0x87   :  { %233 = vst.msk [vmem:[#allocation2 + $0x65] ss:$8 sm:$0xf] %vm3773_vm0, %v230_v34  ;;  %234 = vst.msk [vmem:[#allocation2 + $0x65] ss:$8 sm:$0x30] %vm3773_vm0, %v230_v34 }
  0x88   :  { %v111_v37 = vrot.slane %v110_v35, 1  ;;  %v246_v38 = vrot.slane %v245_v36, 1  ;;  %vm67_vm5 = vcmask 1022976   ;;  %vm58_vm6 = vcmask 1031168   ;;  %v262_v29 = vld [vmem:[%s5415_s1] sm:$0x3f] }
  0x89   :  { %vm85_vm8 = vcmask 818176   ;;  %vm76_vm9 = vcmask 1014784   ;;  %v284_v34 = vld [vmem:[#allocation2 + $0xa8] sm:$0x1]  ;;  %s3695_s1 = smov 116  }
  0x8a   :  { %v113_v39 = vsel %vm112_vm10, %v110_v35, %v111_v37  ;;  %v248_v40 = vsel %vm247_vm11, %v245_v36, %v246_v38  ;;  %v128_v41 = vpop.permute.xlu1 %127  ;;  %v119_v42 = vpop.permute.xlu0 %118  ;;  %vm103_vm10 = vcmask 801792   ;;  %vm94_vm11 = vcmask 809984  }
  0x8b   :  { %116 = vst.msk [vmem:[#allocation2 + $0x30] ss:$8 sm:$0xf] %vm3773_vm0, %v113_v39  ;;  %117 = vst.msk [vmem:[#allocation2 + $0x30] ss:$8 sm:$0x30] %vm3773_vm0, %v113_v39 }
  0x8c   :  { %251 = vst.msk [vmem:[#allocation2 + $0x67] ss:$8 sm:$0xf] %vm3773_vm0, %v248_v40  ;;  %252 = vst.msk [vmem:[#allocation2 + $0x67] ss:$8 sm:$0x30] %vm3773_vm0, %v248_v40 }
  0x8d   :  { %v129_v43 = vrot.slane %v128_v41, 1  ;;  %v120_v44 = vrot.slane %v119_v42, 1 }
  0x8e   :  { %v146_v47 = vpop.permute.xlu1 %145  ;;  %v137_v48 = vpop.permute.xlu0 %136 }
  0x8f   :  { %v131_v45 = vsel %vm130_vm12, %v128_v41, %v129_v43  ;;  %v122_v46 = vsel %vm121_vm13, %v119_v42, %v120_v44  ;;  %v147_v49 = vrot.slane %v146_v47, 1  ;;  %v138_v50 = vrot.slane %v137_v48, 1 }
  0x90   :  { %134 = vst.msk [vmem:[#allocation2 + $0x32] ss:$8 sm:$0xf] %vm3773_vm0, %v131_v45  ;;  %135 = vst.msk [vmem:[#allocation2 + $0x32] ss:$8 sm:$0x30] %vm3773_vm0, %v131_v45 }
  0x91   :  { %125 = vst.msk [vmem:[#allocation2 + $0x31] ss:$8 sm:$0xf] %vm3773_vm0, %v122_v46  ;;  %126 = vst.msk [vmem:[#allocation2 + $0x31] ss:$8 sm:$0x30] %vm3773_vm0, %v122_v46  ;;  %v149_v51 = vsel %vm148_vm14, %v146_v47, %v147_v49  ;;  %v140_v52 = vsel %vm139_vm15, %v137_v48, %v138_v50 }
  0x92   :  { %152 = vst.msk [vmem:[#allocation2 + $0x34] ss:$8 sm:$0xf] %vm3773_vm0, %v149_v51  ;;  %153 = vst.msk [vmem:[#allocation2 + $0x34] ss:$8 sm:$0x30] %vm3773_vm0, %v149_v51  ;;  %v164_v56 = vpop.permute.xlu1 %163  ;;  %v155_v57 = vpop.permute.xlu0 %154 }
  0x93   :  { %v276_v53 = vld [vmem:[#allocation2 + $0x68] sm:$0xff]  ;;  %v275_v55 = vld [vmem:[#allocation2 + $0x60] sm:$0xff]  ;;  %143 = vst.msk [vmem:[#allocation2 + $0x33] ss:$8 sm:$0xf] %vm3773_vm0, %v140_v52  ;;  %v165_v59 = vrot.slane %v164_v56, 1 }
  0x94   :  { %v280_v54 = vld [vmem:[#allocation2 + $0x88] sm:$0xff]  ;;  %144 = vst.msk [vmem:[#allocation2 + $0x33] ss:$8 sm:$0x30] %vm3773_vm0, %v140_v52  ;;  %342 = vmatprep.subr.mxu1 %v276_v53  ;;  %v279_v58 = vld [vmem:[#allocation2 + $0x80] sm:$0xff]  ;;  %v156_v60 = vrot.slane %v155_v57, 1 }
  0x95   :  { %484 = vmatprep.subr.mxu0 %v280_v54  ;;  %343 = vmatpush1.msra.mxu1 %v275_v55  ;;  %v167_v61 = vsel %vm166_vm1, %v164_v56, %v165_v59  ;;  %vm293_vm12 = vcmask 203776   ;;  %v278_v35 = vld [vmem:[#allocation2 + $0x78] sm:$0xff]  ;;  %v277_v36 = vld [vmem:[#allocation2 + $0x70] sm:$0xff]  ;;  %vm1124_vm13 = vcmask 746497   ;;  %vm1150_vm14 = vcmask 747522  }
  0x96   :  { %485 = vmatpush1.msra.mxu0 %v279_v58  ;;  %v158_v62 = vsel %vm157_vm2, %v155_v57, %v156_v60  ;;  %170 = vst.msk [vmem:[#allocation2 + $0x36] ss:$8 sm:$0xf] %vm3773_vm0, %v167_v61  ;;  %171 = vst.msk [vmem:[#allocation2 + $0x36] ss:$8 sm:$0x30] %vm3773_vm0, %v167_v61  ;;  %v47_v63 = vpop.permute.xlu1 %46  ;;  %v173_v0 = vpop.permute.xlu0 %172 }
  0x97   :  { %161 = vst.msk [vmem:[#allocation2 + $0x35] ss:$8 sm:$0xf] %vm3773_vm0, %v158_v62  ;;  %162 = vst.msk [vmem:[#allocation2 + $0x35] ss:$8 sm:$0x30] %vm3773_vm0, %v158_v62 }
  0x98   :  { %v48_v1 = vrot.slane %v47_v63, 1  ;;  %v174_v2 = vrot.slane %v173_v0, 1  ;;  %v636_v62 = vld [vmem:[%s5419_s5 + $0xf8] sm:$0xff]  ;;  %vm1176_vm15 = vcmask 748547   ;;  %vm1202_vm1 = vcmask 749572  }
  0x99   :  { %vm1228_vm2 = vcmask 750597  }
  0x9a   :  { %v50_v5 = vsel %vm49_vm3, %v47_v63, %v48_v1  ;;  %v176_v6 = vsel %vm175_vm4, %v173_v0, %v174_v2  ;;  %v65_v7 = vpop.permute.xlu1 %64  ;;  %v56_v8 = vpop.permute.xlu0 %55  ;;  %v635_v63 = vld [vmem:[%s5419_s5 + $0xf0] sm:$0xff]  ;;  %v634_v0 = vld [vmem:[%s5419_s5 + $0xe8] sm:$0xff]  ;;  %v633_v1 = vld [vmem:[%s5419_s5 + $0xe0] sm:$0xff]  ;;  %vm1088_vm4 = vcmask 654336  }
  0x9b   :  { %53 = vst.msk [vmem:[#allocation2 + $0x1] ss:$8 sm:$0xf] %vm3773_vm0, %v50_v5  ;;  %54 = vst.msk [vmem:[#allocation2 + $0x1] ss:$8 sm:$0x30] %vm3773_vm0, %v50_v5 }
  0x9c   :  { %179 = vst.msk [vmem:[#allocation2 + $0x37] ss:$8 sm:$0xf] %vm3773_vm0, %v176_v6  ;;  %180 = vst.msk [vmem:[#allocation2 + $0x37] ss:$8 sm:$0x30] %vm3773_vm0, %v176_v6 }
  0x9d   :  { %v66_v9 = vrot.slane %v65_v7, 1  ;;  %v57_v10 = vrot.slane %v56_v8, 1  ;;  %v700_v2 = vld [vmem:[%s5419_s5 + $0x2f8] sm:$0xff]  ;;  %v699_v6 = vld [vmem:[%s5419_s5 + $0x2f0] sm:$0xff] }
  0x9e   :  { %v83_v13 = vpop.permute.xlu1 %82  ;;  %v74_v14 = vpop.permute.xlu0 %73  ;;  %v632_v5 = vld [vmem:[%s5419_s5 + $0xd8] sm:$0xff] }
  0x9f   :  { %v68_v11 = vsel %vm67_vm5, %v65_v7, %v66_v9  ;;  %v59_v12 = vsel %vm58_vm6, %v56_v8, %v57_v10  ;;  %v84_v15 = vrot.slane %v83_v13, 1  ;;  %v75_v16 = vrot.slane %v74_v14, 1  ;;  %v698_v7 = vld [vmem:[%s5419_s5 + $0x2e8] sm:$0xff]  ;;  %v631_v8 = vld [vmem:[%s5419_s5 + $0xd0] sm:$0xff]  ;;  %v697_v9 = vld [vmem:[%s5419_s5 + $0x2e0] sm:$0xff] }
  0xa0   :  { %71 = vst.msk [vmem:[#allocation2 + $0x3] ss:$8 sm:$0xf] %vm3773_vm0, %v68_v11  ;;  %72 = vst.msk [vmem:[#allocation2 + $0x3] ss:$8 sm:$0x30] %vm3773_vm0, %v68_v11 }
  0xa1   :  { %62 = vst.msk [vmem:[#allocation2 + $0x2] ss:$8 sm:$0xf] %vm3773_vm0, %v59_v12  ;;  %63 = vst.msk [vmem:[#allocation2 + $0x2] ss:$8 sm:$0x30] %vm3773_vm0, %v59_v12  ;;  %v86_v17 = vsel %vm85_vm8, %v83_v13, %v84_v15  ;;  %v77_v18 = vsel %vm76_vm9, %v74_v14, %v75_v16 }
  0xa2   :  { %89 = vst.msk [vmem:[#allocation2 + $0x5] ss:$8 sm:$0xf] %vm3773_vm0, %v86_v17  ;;  %90 = vst.msk [vmem:[#allocation2 + $0x5] ss:$8 sm:$0x30] %vm3773_vm0, %v86_v17  ;;  %v101_v22 = vpop.permute.xlu1 %100  ;;  %v92_v23 = vpop.permute.xlu0 %91 }
  0xa3   :  { %v270_v19 = vld [vmem:[#allocation2 + $0x38] sm:$0xff]  ;;  %v269_v21 = vld [vmem:[#allocation2 + $0x30] sm:$0xff]  ;;  %80 = vst.msk [vmem:[#allocation2 + $0x4] ss:$8 sm:$0xf] %vm3773_vm0, %v77_v18  ;;  %v102_v25 = vrot.slane %v101_v22, 1 }
  0xa4   :  { %v274_v20 = vld [vmem:[#allocation2 + $0x58] sm:$0xff]  ;;  %81 = vst.msk [vmem:[#allocation2 + $0x4] ss:$8 sm:$0x30] %vm3773_vm0, %v77_v18  ;;  %344 = vmatprep.subr.mxu1 %v270_v19  ;;  %v273_v24 = vld [vmem:[#allocation2 + $0x50] sm:$0xff]  ;;  %v93_v26 = vrot.slane %v92_v23, 1 }
  0xa5   :  { %486 = vmatprep.subr.mxu0 %v274_v20  ;;  %345 = vmatpush1.msra.mxu1 %v269_v21  ;;  %v104_v27 = vsel %vm103_vm10, %v101_v22, %v102_v25  ;;  %v272_v37 = vld [vmem:[#allocation2 + $0x48] sm:$0xff]  ;;  %v271_v38 = vld [vmem:[#allocation2 + $0x40] sm:$0xff]  ;;  %v696_v11 = vld [vmem:[%s5419_s5 + $0x2d8] sm:$0xff]  ;;  %vm1096_vm5 = vcmask 646144   ;;  %vm1104_vm6 = vcmask 637952   ;;  %vm1120_vm9 = vcmask 621568  }
  0xa6   :  { %487 = vmatpush1.msra.mxu0 %v273_v24  ;;  %v95_v28 = vsel %vm94_vm11, %v92_v23, %v93_v26  ;;  %107 = vst.msk [vmem:[#allocation2 + $0x7] ss:$8 sm:$0xf] %vm3773_vm0, %v104_v27  ;;  %108 = vst.msk [vmem:[#allocation2 + $0x7] ss:$8 sm:$0x30] %vm3773_vm0, %v104_v27 }
  0xa7   :  { %98 = vst.msk [vmem:[#allocation2 + $0x6] ss:$8 sm:$0xf] %vm3773_vm0, %v95_v28  ;;  %99 = vst.msk [vmem:[#allocation2 + $0x6] ss:$8 sm:$0x30] %vm3773_vm0, %v95_v28 }
  0xa8   :  { %v630_v10 = vld [vmem:[%s5419_s5 + $0xc8] sm:$0xff]  ;;  %v629_v12 = vld [vmem:[%s5419_s5 + $0xc0] sm:$0xff]  ;;  %v695_v13 = vld [vmem:[%s5419_s5 + $0x2d0] sm:$0xff]  ;;  %vm768_vm0 = vcmask 1046528   ;;  %vm1056_vm10 = vcmask 744448   ;;  %vm1064_vm11 = vcmask 736256  }
  0xa9   :  { %v628_v14 = vld [vmem:[%s5419_s5 + $0xb8] sm:$0xff]  ;;  %v694_v15 = vld [vmem:[%s5419_s5 + $0x2c8] sm:$0xff]  ;;  %v627_v16 = vld [vmem:[%s5419_s5 + $0xb0] sm:$0xff] }
  0xaa   :  { %v693_v17 = vld [vmem:[%s5419_s5 + $0x2c0] sm:$0xff]  ;;  %v626_v18 = vld [vmem:[%s5419_s5 + $0xa8] sm:$0xff]  ;;  %v692_v19 = vld [vmem:[%s5419_s5 + $0x2b8] sm:$0xff] }
  0xab   :  { %v625_v20 = vld [vmem:[%s5419_s5 + $0xa0] sm:$0xff]  ;;  %v691_v21 = vld [vmem:[%s5419_s5 + $0x2b0] sm:$0xff]  ;;  %v624_v22 = vld [vmem:[%s5419_s5 + $0x98] sm:$0xff] }
  0xac   :  { %v690_v23 = vld [vmem:[%s5419_s5 + $0x2a8] sm:$0xff]  ;;  %v623_v24 = vld [vmem:[%s5419_s5 + $0x90] sm:$0xff]  ;;  %v689_v25 = vld [vmem:[%s5419_s5 + $0x2a0] sm:$0xff] }
  0xad   :  { %v622_v26 = vld [vmem:[%s5419_s5 + $0x88] sm:$0xff]  ;;  %v688_v27 = vld [vmem:[%s5419_s5 + $0x298] sm:$0xff]  ;;  %v621_v28 = vld [vmem:[%s5419_s5 + $0x80] sm:$0xff] }
  0xae   :  { %v264_v30 = vld [vmem:[#allocation2 + $0x8] sm:$0xff]  ;;  %v263_v32 = vld [vmem:[#allocation2] sm:$0xff]  ;;  %v266_v39 = vld [vmem:[#allocation2 + $0x18] sm:$0xff] }
  0xaf   :  { %v268_v31 = vld [vmem:[#allocation2 + $0x28] sm:$0xff]  ;;  %346 = vmatprep.subr.mxu1 %v264_v30  ;;  %v267_v33 = vld [vmem:[#allocation2 + $0x20] sm:$0xff]  ;;  %v265_v40 = vld [vmem:[#allocation2 + $0x10] sm:$0xff]  ;;  %v291_v41 = vpop.permute.xlu0 %290 }
  0xb0   :  { %488 = vmatprep.subr.mxu0 %v268_v31  ;;  %347 = vmatpush1.msra.mxu1 %v263_v32  ;;  %v620_v30 = vld [vmem:[%s5419_s5 + $0x78] sm:$0xff]  ;;  %v686_v31 = vld [vmem:[%s5419_s5 + $0x288] sm:$0xff]  ;;  %v619_v32 = vld [vmem:[%s5419_s5 + $0x70] sm:$0xff] }
  0xb1   :  { %489 = vmatpush1.msra.mxu0 %v267_v33  ;;  %2839 = vmatmul.mubr.msk.f32.vlgmr.msra.gmra.mxu1 %vm293_vm12, %v262_v29  ;;  %v685_v33 = vld [vmem:[%s5419_s5 + $0x280] sm:$0xff] }
  0xb2   :  { %2840 = vmatprep.subr.msk.mxu1 %vm297_vm7, %v284_v34  ;;  %2845 = vmatmul.mubr.msk.f32.vlgmr.msra.gmra.mxu0 %vm293_vm12, %v262_v29  ;;  %v618_v34 = vld [vmem:[%s5419_s5 + $0x68] sm:$0xff] }
  0xb3   :  { %2841 = vmatpush1.msk.msra.mxu1 %vm297_vm7, %v283_v3  ;;  %451 = vmatprep.mubr.f32.mxu1 %v3688_v4  ;;  %v684_v3 = vld [vmem:[%s5419_s5 + $0x278] sm:$0xff]  ;;  %vm988_vm7 = vcmask 745472  }
  0xb4   :  { %413 = vmatprep.subr.mxu1 %v278_v35  ;;  %846 = vmatprep.subr.mxu0 %v700_v2  ;;  %v617_v35 = vld [vmem:[%s5419_s5 + $0x60] sm:$0xff]  ;;  %v607_v2 = vld [vmem:[%s5419_s5 + $0x10] sm:$0xff] }
  0xb5   :  { %414 = vmatpush1.msra.mxu1 %v277_v36  ;;  %847 = vmatpush1.msra.mxu0 %v699_v6  ;;  %v683_v36 = vld [vmem:[%s5419_s5 + $0x270] sm:$0xff]  ;;  %v606_v6 = vld [vmem:[%s5419_s5 + $0x8] sm:$0xff] }
  0xb6   :  { %415 = vmatprep.subr.mxu1 %v272_v37  ;;  %848 = vmatprep.subr.mxu0 %v698_v7  ;;  %v616_v37 = vld [vmem:[%s5419_s5 + $0x58] sm:$0xff] }
  0xb7   :  { %416 = vmatpush1.msra.mxu1 %v271_v38  ;;  %849 = vmatpush1.msra.mxu0 %v697_v9  ;;  %v682_v38 = vld [vmem:[%s5419_s5 + $0x268] sm:$0xff]  ;;  %v672_v7 = vld [vmem:[%s5419_s5 + $0x218] sm:$0xff]  ;;  %v671_v9 = vld [vmem:[%s5419_s5 + $0x210] sm:$0xff] }
  0xb8   :  { %417 = vmatprep.subr.mxu1 %v266_v39  ;;  %850 = vmatprep.subr.mxu0 %v696_v11  ;;  %v615_v39 = vld [vmem:[%s5419_s5 + $0x50] sm:$0xff]  ;;  %v670_v11 = vld [vmem:[%s5419_s5 + $0x208] sm:$0xff] }
  0xb9   :  { %418 = vmatpush1.msra.mxu1 %v265_v40  ;;  %851 = vmatpush1.msra.mxu0 %v695_v13  ;;  %v681_v40 = vld [vmem:[%s5419_s5 + $0x260] sm:$0xff] }
  0xba   :  { %2842 = vmatmul.mubr.msk.f32.vlgmr.msra.gmra.mxu1 %vm293_vm12, %v262_v29  ;;  %775 = vmatprep.subr.mxu1 %v636_v62  ;;  %v687_v29 = vld [vmem:[%s5419_s5 + $0x290] sm:$0xff]  ;;  %v609_v62 = vld [vmem:[%s5419_s5 + $0x20] sm:$0xff]  ;;  %vm1072_vm12 = vcmask 728064  }
  0xbb   :  { %776 = vmatpush1.msra.mxu1 %v635_v63  ;;  %852 = vmatprep.subr.mxu0 %v694_v15  ;;  %v675_v63 = vld [vmem:[%s5419_s5 + $0x230] sm:$0xff]  ;;  %v669_v13 = vld [vmem:[%s5419_s5 + $0x200] sm:$0xff]  ;;  %v732_v15 = vld [vmem:[%s5419_s5 + $0x3f8] sm:$0xff] }
  0xbc   :  { %777 = vmatprep.subr.mxu1 %v634_v0  ;;  %853 = vmatpush1.msra.mxu0 %v693_v17  ;;  %v608_v0 = vld [vmem:[%s5419_s5 + $0x18] sm:$0xff]  ;;  %v731_v17 = vld [vmem:[%s5419_s5 + $0x3f0] sm:$0xff] }
  0xbd   :  { %778 = vmatpush1.msra.mxu1 %v633_v1  ;;  %854 = vmatprep.subr.mxu0 %v692_v19  ;;  %v674_v1 = vld [vmem:[%s5419_s5 + $0x228] sm:$0xff] }
  0xbe   :  { %779 = vmatprep.subr.mxu1 %v632_v5  ;;  %855 = vmatpush1.msra.mxu0 %v691_v21  ;;  %v673_v5 = vld [vmem:[%s5419_s5 + $0x220] sm:$0xff]  ;;  %v730_v19 = vld [vmem:[%s5419_s5 + $0x3e8] sm:$0xff] }
  0xbf   :  { %780 = vmatpush1.msra.mxu1 %v631_v8  ;;  %856 = vmatprep.subr.mxu0 %v690_v23  ;;  %v605_v8 = vld [vmem:[%s5419_s5] sm:$0xff]  ;;  %v728_v23 = vld [vmem:[%s5419_s5 + $0x3d8] sm:$0xff] }
  0xc0   :  { %781 = vmatprep.subr.mxu1 %v630_v10  ;;  %857 = vmatpush1.msra.mxu0 %v689_v25  ;;  %v668_v10 = vld [vmem:[%s5419_s5 + $0x1f8] sm:$0xff]  ;;  %v729_v21 = vld [vmem:[%s5419_s5 + $0x3e0] sm:$0xff]  ;;  %v727_v25 = vld [vmem:[%s5419_s5 + $0x3d0] sm:$0xff] }
  0xc1   :  { %782 = vmatpush1.msra.mxu1 %v629_v12  ;;  %858 = vmatprep.subr.mxu0 %v688_v27  ;;  %v667_v12 = vld [vmem:[%s5419_s5 + $0x1f0] sm:$0xff]  ;;  %v726_v27 = vld [vmem:[%s5419_s5 + $0x3c8] sm:$0xff] }
  0xc2   :  { %783 = vmatprep.subr.mxu1 %v628_v14  ;;  %859 = vmatpush1.msra.mxu0 %v687_v29  ;;  %v666_v14 = vld [vmem:[%s5419_s5 + $0x1e8] sm:$0xff]  ;;  %v725_v29 = vld [vmem:[%s5419_s5 + $0x3c0] sm:$0xff] }
  0xc3   :  { %784 = vmatpush1.msra.mxu1 %v627_v16  ;;  %860 = vmatprep.subr.mxu0 %v686_v31  ;;  %v665_v16 = vld [vmem:[%s5419_s5 + $0x1e0] sm:$0xff]  ;;  %v724_v31 = vld [vmem:[%s5419_s5 + $0x3b8] sm:$0xff] }
  0xc4   :  { %785 = vmatprep.subr.mxu1 %v626_v18  ;;  %861 = vmatpush1.msra.mxu0 %v685_v33  ;;  %v664_v18 = vld [vmem:[%s5419_s5 + $0x1d8] sm:$0xff]  ;;  %v723_v33 = vld [vmem:[%s5419_s5 + $0x3b0] sm:$0xff] }
  0xc5   :  { %786 = vmatpush1.msra.mxu1 %v625_v20  ;;  %862 = vmatprep.subr.mxu0 %v684_v3  ;;  %v663_v20 = vld [vmem:[%s5419_s5 + $0x1d0] sm:$0xff]  ;;  %v722_v3 = vld [vmem:[%s5419_s5 + $0x3a8] sm:$0xff] }
  0xc6   :  { %787 = vmatprep.subr.mxu1 %v624_v22  ;;  %863 = vmatpush1.msra.mxu0 %v683_v36  ;;  %v662_v22 = vld [vmem:[%s5419_s5 + $0x1c8] sm:$0xff]  ;;  %v721_v36 = vld [vmem:[%s5419_s5 + $0x3a0] sm:$0xff] }
  0xc7   :  { %788 = vmatpush1.msra.mxu1 %v623_v24  ;;  %864 = vmatprep.subr.mxu0 %v682_v38  ;;  %v661_v24 = vld [vmem:[%s5419_s5 + $0x1c0] sm:$0xff]  ;;  %v720_v38 = vld [vmem:[%s5419_s5 + $0x398] sm:$0xff] }
  0xc8   :  { %789 = vmatprep.subr.mxu1 %v622_v26  ;;  %865 = vmatpush1.msra.mxu0 %v681_v40  ;;  %v660_v26 = vld [vmem:[%s5419_s5 + $0x1b8] sm:$0xff]  ;;  %v719_v40 = vld [vmem:[%s5419_s5 + $0x390] sm:$0xff] }
  0xc9   :  { %790 = vmatpush1.msra.mxu1 %v621_v28  ;;  %v659_v28 = vld [vmem:[%s5419_s5 + $0x1b0] sm:$0xff] }
  0xca   :  { %791 = vmatprep.subr.mxu1 %v620_v30  ;;  %v658_v30 = vld [vmem:[%s5419_s5 + $0x1a8] sm:$0xff] }
  0xcb   :  { %792 = vmatpush1.msra.mxu1 %v619_v32  ;;  %v657_v32 = vld [vmem:[%s5419_s5 + $0x1a0] sm:$0xff] }
  0xcc   :  { %793 = vmatprep.subr.mxu1 %v618_v34  ;;  %v656_v34 = vld [vmem:[%s5419_s5 + $0x198] sm:$0xff] }
  0xcd   :  { %794 = vmatpush1.msra.mxu1 %v617_v35  ;;  %v655_v35 = vld [vmem:[%s5419_s5 + $0x190] sm:$0xff] }
  0xce   :  { %795 = vmatprep.subr.mxu1 %v616_v37  ;;  %v654_v37 = vld [vmem:[%s5419_s5 + $0x188] sm:$0xff] }
  0xcf   :  { %796 = vmatpush1.msra.mxu1 %v615_v39  ;;  %v653_v39 = vld [vmem:[%s5419_s5 + $0x180] sm:$0xff] }
 0x171   :  { %v382_v42 = vpop.f32.mrf.mxu1 }
 0x172   :  { %v524_v43 = vpop.f32.mrf.mxu0  ;;  %v3910_v51 = vadd.f32 %v382_v42, %v291_v41  ;;  %v680_v42 = vld [vmem:[%s5419_s5 + $0x258] sm:$0xff] }
 0x173   :  { %v525_v44 = vadd.f32 %v524_v43, %v291_v41  ;;  %v384_v46 = vpop.f32.mrf.mxu1  ;;  %v613_v43 = vld [vmem:[%s5419_s5 + $0x40] sm:$0xff]  ;;  %866 = vmatprep.subr.mxu0 %v680_v42  ;;  %v718_v42 = vld [vmem:[%s5419_s5 + $0x388] sm:$0xff] }
 0x174   :  { %v3906_v47 = vadd.f32 %v384_v46, %v291_v41  ;;  %v526_v57 = vpop.f32.mrf.mxu0  ;;  %v529_v58 = vmax.f32 %v3910_v51, 0.0  ;;  %v612_v46 = vld [vmem:[%s5419_s5 + $0x38] sm:$0xff] }
 0x175   :  { %v3902_v45 = vmax.f32 %v525_v44, 0.0  ;;  %v3923_v59 = vadd.f32 %v526_v57, %v291_v41  ;;  %v679_v44 = vld [vmem:[%s5419_s5 + $0x250] sm:$0xff]  ;;  %v610_v57 = vld [vmem:[%s5419_s5 + $0x28] sm:$0xff] }
 0x176   :  { %v530_v52 = vmax.f32 %v3906_v47, 0.0  ;;  %867 = vmatpush1.msra.mxu0 %v679_v44  ;;  %v717_v44 = vld [vmem:[%s5419_s5 + $0x380] sm:$0xff] }
 0x177   :  { %548 = vrot.lane.b32.xlu0 %v3902_v45, %s3680_s11  ;;  %v534_v61 = vmax.f32 %v3923_v59, 0.0 }
 0x17a   :  { %v453_v48 = vpop.f32.mrf.mxu1 }
 0x17b   :  { %v3908_v49 = vadd.f32 %v453_v48, %v291_v41  ;;  %v678_v48 = vld [vmem:[%s5419_s5 + $0x248] sm:$0xff] }
 0x17c   :  { %v455_v50 = vpop.f32.mrf.mxu1  ;;  %868 = vmatprep.subr.mxu0 %v678_v48  ;;  %v716_v48 = vld [vmem:[%s5419_s5 + $0x378] sm:$0xff] }
 0x17d   :  { %v531_v53 = vmax.f32 %v3908_v49, 0.0  ;;  %v3914_v54 = vadd.f32 %v455_v50, %v291_v41  ;;  %v614_v41 = vld [vmem:[%s5419_s5 + $0x48] sm:$0xff]  ;;  %v611_v50 = vld [vmem:[%s5419_s5 + $0x30] sm:$0xff] }
 0x17e   :  { %797 = vmatprep.subr.mxu1 %v614_v41  ;;  %v652_v41 = vld [vmem:[%s5419_s5 + $0x178] sm:$0xff] }
 0x17f   :  { %v3627_v55 = vpack.i.bf16 %v531_v53, %v530_v52  ;;  %v532_v56 = vmax.f32 %v3914_v54, 0.0  ;;  %798 = vmatpush1.msra.mxu1 %v613_v43  ;;  %v651_v43 = vld [vmem:[%s5419_s5 + $0x170] sm:$0xff] }
 0x180   :  { %799 = vmatprep.subr.mxu1 %v612_v46  ;;  %v650_v46 = vld [vmem:[%s5419_s5 + $0x168] sm:$0xff] }
 0x181   :  { %3628 = vrot.lane.b32.xlu1 %v3627_v55, %s3680_s11  ;;  %v3632_v60 = vpack.i.bf16 %v529_v58, %v532_v56  ;;  %v677_v55 = vld [vmem:[%s5419_s5 + $0x240] sm:$0xff]  ;;  %800 = vmatpush1.msra.mxu1 %v611_v50 }
 0x182   :  { %869 = vmatpush1.msra.mxu0 %v677_v55  ;;  %801 = vmatprep.subr.mxu1 %v610_v57  ;;  %v649_v50 = vld [vmem:[%s5419_s5 + $0x160] sm:$0xff]  ;;  %v715_v55 = vld [vmem:[%s5419_s5 + $0x370] sm:$0xff]  ;;  %v648_v57 = vld [vmem:[%s5419_s5 + $0x158] sm:$0xff] }
 0x183   :  { %802 = vmatpush1.msra.mxu1 %v609_v62  ;;  %v647_v62 = vld [vmem:[%s5419_s5 + $0x150] sm:$0xff] }
 0x184   :  { %803 = vmatprep.subr.mxu1 %v608_v0  ;;  %v646_v0 = vld [vmem:[%s5419_s5 + $0x148] sm:$0xff] }
 0x185   :  { %3633 = vrot.lane.b32.xlu1 %v3632_v60, %s3680_s11  ;;  %v676_v60 = vld [vmem:[%s5419_s5 + $0x238] sm:$0xff]  ;;  %804 = vmatpush1.msra.mxu1 %v607_v2  ;;  %v645_v2 = vld [vmem:[%s5419_s5 + $0x140] sm:$0xff] }
 0x186   :  { %870 = vmatprep.subr.mxu0 %v676_v60  ;;  %805 = vmatprep.subr.mxu1 %v606_v6  ;;  %v714_v60 = vld [vmem:[%s5419_s5 + $0x368] sm:$0xff]  ;;  %v644_v6 = vld [vmem:[%s5419_s5 + $0x138] sm:$0xff] }
 0x187   :  { %871 = vmatpush1.msra.mxu0 %v675_v63  ;;  %806 = vmatpush1.msra.mxu1 %v605_v8  ;;  %v713_v63 = vld [vmem:[%s5419_s5 + $0x360] sm:$0xff]  ;;  %v710_v8 = vld [vmem:[%s5419_s5 + $0x348] sm:$0xff] }
 0x188   :  { %872 = vmatprep.subr.mxu0 %v674_v1  ;;  %807 = vmatprep.subr.mxu1 %v668_v10  ;;  %v712_v1 = vld [vmem:[%s5419_s5 + $0x358] sm:$0xff]  ;;  %v709_v10 = vld [vmem:[%s5419_s5 + $0x340] sm:$0xff] }
 0x189   :  { %565 = vrot.lane.b32.xlu1 %v534_v61, %s3680_s11  ;;  %873 = vmatpush1.msra.mxu0 %v673_v5  ;;  %v711_v5 = vld [vmem:[%s5419_s5 + $0x350] sm:$0xff] }
 0x18a   :  { %874 = vmatprep.subr.mxu0 %v672_v7  ;;  %808 = vmatpush2.msra.mxu1 %v667_v12  ;;  %v643_v7 = vld [vmem:[%s5419_s5 + $0x130] sm:$0xff]  ;;  %v708_v12 = vld [vmem:[%s5419_s5 + $0x338] sm:$0xff] }
 0x18b   :  { %875 = vmatpush1.msra.mxu0 %v671_v9  ;;  %809 = vmatprep.subr.mxu1 %v666_v14  ;;  %v642_v9 = vld [vmem:[%s5419_s5 + $0x128] sm:$0xff]  ;;  %v640_v14 = vld [vmem:[%s5419_s5 + $0x118] sm:$0xff] }
 0x18c   :  { %876 = vmatprep.subr.mxu0 %v670_v11  ;;  %810 = vmatpush2.msra.mxu1 %v665_v16  ;;  %v641_v11 = vld [vmem:[%s5419_s5 + $0x120] sm:$0xff] }
 0x18d   :  { %877 = vmatpush1.msra.mxu0 %v669_v13  ;;  %811 = vmatprep.subr.mxu1 %v664_v18  ;;  %v639_v18 = vld [vmem:[%s5419_s5 + $0x110] sm:$0xff] }
 0x18e   :  { %878 = vmatprep.subr.mxu0 %v732_v15  ;;  %812 = vmatpush2.msra.mxu1 %v663_v20  ;;  %v707_v15 = vld [vmem:[%s5419_s5 + $0x330] sm:$0xff]  ;;  %v638_v20 = vld [vmem:[%s5419_s5 + $0x108] sm:$0xff] }
 0x18f   :  { %879 = vmatpush2.msra.mxu0 %v731_v17  ;;  %813 = vmatprep.subr.mxu1 %v662_v22  ;;  %v637_v22 = vld [vmem:[%s5419_s5 + $0x100] sm:$0xff] }
 0x190   :  { %880 = vmatprep.subr.mxu0 %v730_v19  ;;  %814 = vmatpush2.msra.mxu1 %v661_v24  ;;  %v706_v19 = vld [vmem:[%s5419_s5 + $0x328] sm:$0xff] }
 0x191   :  { %881 = vmatpush2.msra.mxu0 %v729_v21  ;;  %815 = vmatprep.subr.mxu1 %v660_v26  ;;  %v705_v21 = vld [vmem:[%s5419_s5 + $0x320] sm:$0xff]  ;;  %v764_v26 = vld [vmem:[%s5419_s5 + $0x4f8] sm:$0x7f] }
 0x192   :  { %882 = vmatprep.subr.mxu0 %v728_v23  ;;  %816 = vmatpush2.msra.mxu1 %v659_v28  ;;  %v704_v23 = vld [vmem:[%s5419_s5 + $0x318] sm:$0xff] }
 0x193   :  { %883 = vmatpush2.msra.mxu0 %v727_v25  ;;  %817 = vmatprep.subr.mxu1 %v658_v30  ;;  %v703_v25 = vld [vmem:[%s5419_s5 + $0x310] sm:$0xff]  ;;  %v702_v30 = vld [vmem:[%s5419_s5 + $0x308] sm:$0xff] }
 0x194   :  { %884 = vmatprep.subr.mxu0 %v726_v27  ;;  %818 = vmatpush2.msra.mxu1 %v657_v32 }
 0x195   :  { %885 = vmatpush2.msra.mxu0 %v725_v29  ;;  %819 = vmatprep.subr.mxu1 %v656_v34 }
 0x196   :  { %886 = vmatprep.subr.mxu0 %v724_v31  ;;  %820 = vmatpush2.msra.mxu1 %v655_v35  ;;  %v701_v31 = vld [vmem:[%s5419_s5 + $0x300] sm:$0xff] }
 0x197   :  { %887 = vmatpush2.msra.mxu0 %v723_v33  ;;  %821 = vmatprep.subr.mxu1 %v654_v37 }
 0x198   :  { %888 = vmatprep.subr.mxu0 %v722_v3  ;;  %822 = vmatpush2.msra.mxu1 %v653_v39 }
 0x199   :  { %889 = vmatpush2.msra.mxu0 %v721_v36  ;;  %823 = vmatprep.subr.mxu1 %v652_v41 }
 0x19a   :  { %890 = vmatprep.subr.mxu0 %v720_v38  ;;  %824 = vmatpush2.msra.mxu1 %v651_v43 }
 0x19b   :  { %891 = vmatpush2.msra.mxu0 %v719_v40  ;;  %825 = vmatprep.subr.mxu1 %v650_v46 }
 0x19c   :  { %892 = vmatprep.subr.mxu0 %v718_v42  ;;  %826 = vmatpush2.msra.mxu1 %v649_v50 }
 0x19d   :  { %893 = vmatpush2.msra.mxu0 %v717_v44  ;;  %827 = vmatprep.subr.mxu1 %v648_v57  ;;  %v762_v57 = vld [vmem:[%s5419_s5 + $0x4e8] sm:$0xff] }
 0x19e   :  { %894 = vmatprep.subr.mxu0 %v716_v48  ;;  %828 = vmatpush2.msra.mxu1 %v647_v62  ;;  %v760_v62 = vld [vmem:[%s5419_s5 + $0x4d8] sm:$0xff] }
 0x19f   :  { %895 = vmatpush2.msra.mxu0 %v715_v55  ;;  %829 = vmatprep.subr.mxu1 %v646_v0  ;;  %v758_v0 = vld [vmem:[%s5419_s5 + $0x4c8] sm:$0xff] }
 0x1a0   :  { %896 = vmatprep.subr.mxu0 %v714_v60  ;;  %830 = vmatpush2.msra.mxu1 %v645_v2  ;;  %v761_v60 = vld [vmem:[%s5419_s5 + $0x4e0] sm:$0xff]  ;;  %v756_v2 = vld [vmem:[%s5419_s5 + $0x4b8] sm:$0xff] }
 0x1a1   :  { %897 = vmatpush2.msra.mxu0 %v713_v63  ;;  %831 = vmatprep.subr.mxu1 %v644_v6  ;;  %v759_v63 = vld [vmem:[%s5419_s5 + $0x4d0] sm:$0xff]  ;;  %v754_v6 = vld [vmem:[%s5419_s5 + $0x4a8] sm:$0xff] }
 0x1a2   :  { %898 = vmatprep.subr.mxu0 %v712_v1  ;;  %832 = vmatpush2.msra.mxu1 %v643_v7  ;;  %v757_v1 = vld [vmem:[%s5419_s5 + $0x4c0] sm:$0xff] }
 0x1a3   :  { %899 = vmatpush2.msra.mxu0 %v711_v5  ;;  %833 = vmatprep.subr.mxu1 %v642_v9  ;;  %v755_v5 = vld [vmem:[%s5419_s5 + $0x4b0] sm:$0xff]  ;;  %v753_v7 = vld [vmem:[%s5419_s5 + $0x4a0] sm:$0xff] }
 0x1a4   :  { %900 = vmatprep.subr.mxu0 %v710_v8  ;;  %834 = vmatpush2.msra.mxu1 %v641_v11  ;;  %v752_v8 = vld [vmem:[%s5419_s5 + $0x498] sm:$0xff]  ;;  %v751_v9 = vld [vmem:[%s5419_s5 + $0x490] sm:$0xff]  ;;  %v749_v11 = vld [vmem:[%s5419_s5 + $0x480] sm:$0xff] }
 0x1a5   :  { %901 = vmatpush2.msra.mxu0 %v709_v10  ;;  %835 = vmatprep.subr.mxu1 %v640_v14  ;;  %v750_v10 = vld [vmem:[%s5419_s5 + $0x488] sm:$0xff] }
 0x1a6   :  { %902 = vmatprep.subr.mxu0 %v708_v12  ;;  %836 = vmatpush2.msra.mxu1 %v639_v18  ;;  %v748_v12 = vld [vmem:[%s5419_s5 + $0x478] sm:$0xff]  ;;  %v746_v14 = vld [vmem:[%s5419_s5 + $0x468] sm:$0xff] }
 0x1a7   :  { %903 = vmatpush2.msra.mxu0 %v707_v15  ;;  %837 = vmatprep.subr.mxu1 %v638_v20  ;;  %v745_v15 = vld [vmem:[%s5419_s5 + $0x460] sm:$0xff]  ;;  %v742_v18 = vld [vmem:[%s5419_s5 + $0x448] sm:$0xff]  ;;  %v740_v20 = vld [vmem:[%s5419_s5 + $0x438] sm:$0xff] }
 0x1a8   :  { %904 = vmatprep.subr.mxu0 %v706_v19  ;;  %838 = vmatpush2.msra.mxu1 %v637_v22  ;;  %v741_v19 = vld [vmem:[%s5419_s5 + $0x440] sm:$0xff]  ;;  %v738_v22 = vld [vmem:[%s5419_s5 + $0x428] sm:$0xff] }
 0x1a9   :  { %905 = vmatpush2.msra.mxu0 %v705_v21  ;;  %2846 = vmatprep.subr.msk.mxu1 %vm768_vm0, %v764_v26  ;;  %v739_v21 = vld [vmem:[%s5419_s5 + $0x430] sm:$0xff] }
 0x1aa   :  { %906 = vmatprep.subr.mxu0 %v704_v23  ;;  %v735_v26 = vld [vmem:[%s5419_s5 + $0x410] sm:$0xff] }
 0x1ab   :  { %907 = vmatpush2.msra.mxu0 %v703_v25  ;;  %v736_v25 = vld [vmem:[%s5419_s5 + $0x418] sm:$0xff] }
 0x1ac   :  { %908 = vmatprep.subr.mxu0 %v702_v30  ;;  %v733_v30 = vld [vmem:[%s5419_s5 + $0x400] sm:$0xff] }
 0x1ad   :  { %909 = vmatpush2.msra.mxu0 %v701_v31 }
 0x1ae   :  { %1300 = vmatprep.subr.mxu0 %v3688_v4 }
 0x1e9   :  { %v4325_v34 = vpop.permute.xlu0 %548 }
 0x1f3   :  { %v3629_v13 = vpop.permute.xlu1 %3628 }
 0x1f4   :  { %v3631_v16 = vunpack.i.h.bf16 %v3629_v13  ;;  %v3630_v17 = vunpack.i.l.bf16 %v3629_v13  ;;  %v747_v13 = vld [vmem:[%s5419_s5 + $0x470] sm:$0xff] }
 0x1f6   :  { %v551_v27 = vsel %vm49_vm3, %v3630_v17, %v3631_v16 }
 0x1f7   :  { %v3634_v24 = vpop.permute.xlu1 %3633  ;;  %v560_v36 = vmax.f32 %v530_v52, %v551_v27 }
 0x1f8   :  { %v3636_v28 = vunpack.i.h.bf16 %v3634_v24  ;;  %v3635_v29 = vunpack.i.l.bf16 %v3634_v24  ;;  %v737_v24 = vld [vmem:[%s5419_s5 + $0x420] sm:$0xff] }
 0x1fa   :  { %v552_v32 = vsel %vm49_vm3, %v3631_v16, %v3635_v29  ;;  %v550_v33 = vsel %vm49_vm3, %v3636_v28, %v3630_v17  ;;  %v553_v40 = vsel %vm49_vm3, %v3635_v29, %v4325_v34  ;;  %v744_v16 = vld [vmem:[%s5419_s5 + $0x458] sm:$0xff]  ;;  %v743_v17 = vld [vmem:[%s5419_s5 + $0x450] sm:$0xff]  ;;  %v734_v28 = vld [vmem:[%s5419_s5 + $0x408] sm:$0xff]  ;;  %v563_v29 = vmax.f32 %v3902_v45, %v4325_v34 }
 0x1fb   :  { %v566_v3 = vpop.permute.xlu1 %565  ;;  %v559_v35 = vmax.f32 %v529_v58, %v550_v33  ;;  %v561_v37 = vmax.f32 %v531_v53, %v552_v32  ;;  %v562_v47 = vmax.f32 %v532_v56, %v553_v40  ;;  %v1277_v40 = vld [vmem:[%s5418_s4] sm:$0xff] }
 0x1fc   :  { %v567_v38 = vsel %vm49_vm3, %v4325_v34, %v566_v3  ;;  %v571_v49 = vmax.f32 %v534_v61, %v566_v3  ;;  %v763_v61 = vld [vmem:[%s5419_s5 + $0x4f0] sm:$0x7f]  ;;  %s3690_s5 = smov 80  }
 0x1fd   :  { %578 = vrot.lane.b32.xlu1 %v559_v35, %s3684_s15  ;;  %v3637_v39 = vpack.i.bf16 %v561_v37, %v560_v36  ;;  %v570_v51 = vmax.f32 %v3902_v45, %v567_v38 }
 0x1ff   :  { %3638 = vrot.lane.b32.xlu0 %v3637_v39, %s3684_s15 }
 0x201   :  { %586 = vrot.lane.b32.xlu1 %v570_v51, %s3684_s15  ;;  %v1278_v51 = vld [vmem:[%s5418_s4 + $0x8] sm:$0xff] }
 0x203   :  { %584 = vrot.lane.b32.xlu0 %v562_v47, %s3684_s15 }
 0x207   :  { %588 = vrot.lane.b32.xlu0 %v571_v49, %s3684_s15 }
 0x26f   :  { %v579_v52 = vpop.permute.xlu1 %578 }
 0x271   :  { %v3639_v53 = vpop.permute.xlu0 %3638 }
 0x272   :  { %v3641_v58 = vunpack.i.h.bf16 %v3639_v53  ;;  %v3640_v41 = vunpack.i.l.bf16 %v3639_v53 }
 0x273   :  { %v4350_v46 = vpop.permute.xlu1 %586 }
 0x274   :  { %v590_v42 = vsel %vm85_vm8, %v579_v52, %v3640_v41  ;;  %v591_v43 = vsel %vm85_vm8, %v3640_v41, %v3641_v58 }
 0x275   :  { %v600_v44 = vmax.f32 %v559_v35, %v590_v42  ;;  %v585_v54 = vpop.permute.xlu0 %584  ;;  %v601_v56 = vmax.f32 %v560_v36, %v591_v43 }
 0x276   :  { %v592_v48 = vsel %vm85_vm8, %v3641_v58, %v585_v54  ;;  %v593_v59 = vsel %vm85_vm8, %v585_v54, %v4350_v46 }
 0x277   :  { %v602_v50 = vmax.f32 %v561_v37, %v592_v48  ;;  %v603_v55 = vmax.f32 %v562_v47, %v593_v59  ;;  %839 = vmatprep.mubr.f32.mxu1 %v601_v56  ;;  %v1255_v47 = vld [vmem:[%s5417_s3 + $0x8] sm:$0xff] }
 0x278   :  { %840 = vmatmul.mubr.f32.vlgmr.msra.gmra.mxu1 %v600_v44 }
 0x279   :  { %2847 = vmatpush1.msk.msra.mxu1 %vm768_vm0, %v763_v61  ;;  %910 = vmatprep.mubr.f32.mxu0 %v603_v55  ;;  %v589_v23 = vpop.permute.xlu0 %588 }
 0x27a   :  { %919 = vmatprep.subr.mxu1 %v762_v57  ;;  %911 = vmatmul.mubr.f32.vlgmr.msra.gmra.mxu0 %v602_v50  ;;  %v594_v27 = vsel %vm85_vm8, %v4350_v46, %v589_v23  ;;  %vm1112_vm8 = vcmask 629760  }
 0x27b   :  { %920 = vmatpush1.msra.mxu1 %v761_v60  ;;  %981 = vmatprep.mubr.f32.mxu1 %v3688_v4  ;;  %v604_v31 = vmax.f32 %v563_v29, %v594_v27 }
 0x27c   :  { %921 = vmatprep.subr.mxu1 %v760_v62 }
 0x27d   :  { %922 = vmatpush1.msra.mxu1 %v759_v63 }
 0x27e   :  { %923 = vmatprep.subr.mxu1 %v758_v0 }
 0x27f   :  { %924 = vmatpush1.msra.mxu1 %v757_v1 }
 0x280   :  { %925 = vmatprep.subr.mxu1 %v756_v2 }
 0x281   :  { %926 = vmatpush1.msra.mxu1 %v755_v5 }
 0x282   :  { %927 = vmatprep.subr.mxu1 %v754_v6 }
 0x283   :  { %928 = vmatpush1.msra.mxu1 %v753_v7 }
 0x284   :  { %929 = vmatprep.subr.mxu1 %v752_v8 }
 0x285   :  { %930 = vmatpush1.msra.mxu1 %v751_v9 }
 0x286   :  { %931 = vmatprep.subr.mxu1 %v750_v10 }
 0x287   :  { %932 = vmatpush1.msra.mxu1 %v749_v11 }
 0x288   :  { %933 = vmatprep.subr.mxu1 %v748_v12 }
 0x289   :  { %934 = vmatpush1.msra.mxu1 %v747_v13 }
 0x28a   :  { %935 = vmatprep.subr.mxu1 %v746_v14 }
 0x28b   :  { %936 = vmatpush1.msra.mxu1 %v745_v15 }
 0x28c   :  { %937 = vmatprep.subr.mxu1 %v744_v16 }
 0x28d   :  { %938 = vmatpush1.msra.mxu1 %v743_v17 }
 0x28e   :  { %939 = vmatprep.subr.mxu1 %v742_v18 }
 0x28f   :  { %940 = vmatpush1.msra.mxu1 %v741_v19 }
 0x290   :  { %941 = vmatprep.subr.mxu1 %v740_v20 }
 0x291   :  { %942 = vmatpush1.msra.mxu1 %v739_v21 }
 0x292   :  { %943 = vmatprep.subr.mxu1 %v738_v22 }
 0x293   :  { %944 = vmatpush1.msra.mxu1 %v737_v24 }
 0x294   :  { %945 = vmatprep.subr.mxu1 %v736_v25 }
 0x295   :  { %946 = vmatpush1.msra.mxu1 %v735_v26 }
 0x296   :  { %947 = vmatprep.subr.mxu1 %v734_v28 }
 0x297   :  { %948 = vmatpush1.msra.mxu1 %v733_v30 }
 0x298   :  { %2848 = vmatmul.mubr.msk.f32.vlgmr.msra.gmra.mxu1 %vm49_vm3, %v604_v31  ;;  %3210 = vmatprep.subr.mxu1 %v3688_v4  ;;  %vm1289_vm3 = vcmask 179200  }
 0x299   :  { %2850 = vmatprep.mubr.msk.f32.mxu0 %vm1289_vm3, %v1255_v47  ;;  %v1257_v47 = vld [vmem:[%s5417_s3 + $0x18] sm:$0xff] }
 0x338   :  { %v841_v32 = vpop.f32.mrf.mxu1 }
 0x33a   :  { %v912_v33 = vpop.f32.mrf.mxu0  ;;  %v843_v3 = vpop.f32.mrf.mxu1 }
 0x33b   :  { %v913_v35 = vadd.f32 %v912_v33, %v841_v32 }
 0x33c   :  { %v914_v36 = vpop.f32.mrf.mxu0 }
 0x33d   :  { %v915_v38 = vadd.f32 %v914_v36, %v843_v3 }
 0x358   :  { %v983_v45 = vpop.f32.mrf.mxu1 }
 0x359   :  { %v984_v34 = vadd.f32 %v983_v45, %v913_v35 }
 0x35a   :  { %v985_v37 = vpop.f32.mrf.mxu1 }
 0x35b   :  { %995 = vrot.lane.b32.xlu0 %v984_v34, %s3683_s14  ;;  %1084 = vrot.lane.b32.xlu1 %v984_v34, %s3690_s5  ;;  %989 = vst.msk [vmem:[#allocation3] sm:$0x1] %vm988_vm7, %v984_v34  ;;  %s3693_s14 = smov 92   ;;  %v986_v39 = vadd.f32 %v985_v37, %v915_v38 }
 0x35c   :  { %1125 = vst.msk [vmem:[#allocation3 + $0x18] sm:$0x2] %vm1124_vm13, %v984_v34 }
 0x35d   :  { %1151 = vst.msk [vmem:[#allocation3 + $0x30] sm:$0x4] %vm1150_vm14, %v984_v34 }
 0x35e   :  { %1177 = vst.msk [vmem:[#allocation3 + $0x48] sm:$0x8] %vm1176_vm15, %v984_v34 }
 0x35f   :  { %1203 = vst.msk [vmem:[#allocation3 + $0x60] sm:$0x10] %vm1202_vm1, %v984_v34  ;;  %1039 = vrot.lane.b32.xlu0 %v984_v34, %s3691_s19  ;;  %1092 = vrot.lane.b32.xlu1 %v984_v34, %s3692_s2 }
 0x360   :  { %1229 = vst.msk [vmem:[#allocation3 + $0x78] sm:$0x20] %vm1228_vm2, %v984_v34 }
 0x363   :  { %1047 = vrot.lane.b32.xlu0 %v984_v34, %s3693_s14  ;;  %1100 = vrot.lane.b32.xlu1 %v984_v34, %s3694_s0 }
 0x367   :  { %1007 = vrot.lane.b32.xlu0 %v984_v34, %s3695_s1  ;;  %1108 = vrot.lane.b32.xlu1 %v984_v34, %s3696_s20 }
 0x36b   :  { %1015 = vrot.lane.b32.xlu0 %v984_v34, %s3697_s21  ;;  %1116 = vrot.lane.b32.xlu1 %v984_v34, %s3698_s22  ;;  %s3710_s21 = smov 1  }
 0x36f   :  { %1023 = vrot.lane.b32.xlu0 %v984_v34, %s3699_s23  ;;  %991 = vrot.lane.b32.xlu1 %v984_v34, %s3680_s11 }
 0x373   :  { %1052 = vrot.lane.b32.xlu1 %v984_v34, %s3700_s24  ;;  %1086 = vrot.lane.b32.xlu0 %v986_v39, %s3690_s5 }
 0x377   :  { %1060 = vrot.lane.b32.xlu1 %v984_v34, %s3701_s25  ;;  %1094 = vrot.lane.b32.xlu0 %v986_v39, %s3692_s2 }
 0x37b   :  { %1068 = vrot.lane.b32.xlu1 %v984_v34, %s3702_s26  ;;  %1102 = vrot.lane.b32.xlu0 %v986_v39, %s3694_s0 }
 0x37f   :  { %1076 = vrot.lane.b32.xlu1 %v984_v34, %s3703_s27  ;;  %1110 = vrot.lane.b32.xlu0 %v986_v39, %s3696_s20 }
 0x383   :  { %1035 = vrot.lane.b32.xlu1 %v984_v34, %s3704_s28  ;;  %1118 = vrot.lane.b32.xlu0 %v986_v39, %s3698_s22  ;;  %s3711_s22 = smov [#allocation5]  }
 0x384   :  { %s2829_s23 = sshll.u32 %s3711_s22, 4  ;;  %s2830_s23 = int_to_ptr.vmem [resolvable:$true] %s2829_s23 }
 0x385   :  { %p3647_p1 = scmp.lt.s32.totalorder %s2830_s23, %s2830_s23 }
 0x387   :  { %1043 = vrot.lane.b32.xlu1 %v984_v34, %s3684_s15  ;;  %1054 = vrot.lane.b32.xlu0 %v986_v39, %s3700_s24  ;;  %s3646_s24 = scalar_lea.vmem %s2830_s23, 32 }
 0x38b   :  { %1003 = vrot.lane.b32.xlu1 %v984_v34, %s3685_s16  ;;  %1062 = vrot.lane.b32.xlu0 %v986_v39, %s3701_s25 }
 0x38f   :  { %1011 = vrot.lane.b32.xlu1 %v984_v34, %s3705_s29  ;;  %1070 = vrot.lane.b32.xlu0 %v986_v39, %s3702_s26 }
 0x393   :  { %1019 = vrot.lane.b32.xlu1 %v984_v34, %s3706_s30  ;;  %1078 = vrot.lane.b32.xlu0 %v986_v39, %s3703_s27 }
 0x397   :  { %1027 = vrot.lane.b32.xlu1 %v984_v34, %s3707_s12  ;;  %1031 = vrot.lane.b32.xlu0 %v984_v34, %s3708_s17 }
 0x39b   :  { %999 = vrot.lane.b32.xlu1 %v984_v34, %s3682_s13  ;;  %1281 = vperm.xlu0 %3626, %v1277_v40   ;;  %v1254_v40 = vld [vmem:[%s5417_s3] sm:$0xff] }
 0x39f   :  { %1286 = vperm.xlu0 %3626, %v1278_v51  }
 0x3cd   :  { %v996_v49 = vpop.permute.xlu0 %995  ;;  %v1085_v52 = vpop.permute.xlu1 %1084 }
 0x3ce   :  { %998 = vst.msk [vmem:[#allocation3 + $0x2] sm:$0x1] %vm988_vm7, %v996_v49 }
 0x3cf   :  { %1127 = vst.msk [vmem:[#allocation3 + $0x1a] sm:$0x2] %vm1124_vm13, %v996_v49 }
 0x3d0   :  { %1153 = vst.msk [vmem:[#allocation3 + $0x32] sm:$0x4] %vm1150_vm14, %v996_v49 }
 0x3d1   :  { %1179 = vst.msk [vmem:[#allocation3 + $0x4a] sm:$0x8] %vm1176_vm15, %v996_v49  ;;  %v1040_v53 = vpop.permute.xlu0 %1039  ;;  %v1093_v58 = vpop.permute.xlu1 %1092 }
 0x3d2   :  { %1205 = vst.msk [vmem:[#allocation3 + $0x62] sm:$0x10] %vm1202_vm1, %v996_v49  ;;  %1216 = vst.msk [vmem:[#allocation3 + $0x6d] sm:$0x10] %vm1202_vm1, %v1040_v53 }
 0x3d3   :  { %1231 = vst.msk [vmem:[#allocation3 + $0x7a] sm:$0x20] %vm1228_vm2, %v996_v49  ;;  %1242 = vst.msk [vmem:[#allocation3 + $0x85] sm:$0x20] %vm1228_vm2, %v1040_v53  ;;  %v1256_v49 = vld [vmem:[%s5417_s3 + $0x10] sm:$0xff] }
 0x3d4   :  { %1042 = vst.msk [vmem:[#allocation3 + $0xd] sm:$0x1] %vm988_vm7, %v1040_v53 }
 0x3d5   :  { %1138 = vst.msk [vmem:[#allocation3 + $0x25] sm:$0x2] %vm1124_vm13, %v1040_v53  ;;  %v1048_v41 = vpop.permute.xlu0 %1047  ;;  %v1101_v42 = vpop.permute.xlu1 %1100 }
 0x3d6   :  { %1164 = vst.msk [vmem:[#allocation3 + $0x3d] sm:$0x4] %vm1150_vm14, %v1040_v53  ;;  %1166 = vst.msk [vmem:[#allocation3 + $0x3f] sm:$0x4] %vm1150_vm14, %v1048_v41 }
 0x3d7   :  { %1190 = vst.msk [vmem:[#allocation3 + $0x55] sm:$0x8] %vm1176_vm15, %v1040_v53  ;;  %1192 = vst.msk [vmem:[#allocation3 + $0x57] sm:$0x8] %vm1176_vm15, %v1048_v41  ;;  %v1407_v53 = vld [vmem:[%s5420_s6 + $0x48] sm:$0x7f] }
 0x3d8   :  { %1050 = vst.msk [vmem:[#allocation3 + $0xf] sm:$0x1] %vm988_vm7, %v1048_v41  ;;  %3211 = vmatpush3.msk.msra.mxu1 %vm768_vm0, %v1407_v53  ;;  %v2896_v53 = vld [vmem:[%s5420_s6 + $0x170] sm:$0xff] }
 0x3d9   :  { %1140 = vst.msk [vmem:[#allocation3 + $0x27] sm:$0x2] %vm1124_vm13, %v1048_v41  ;;  %v1008_v43 = vpop.permute.xlu0 %1007  ;;  %v4498_v44 = vpop.permute.xlu1 %1108  ;;  %3212 = vmatprep.subr.mxu1 %v3688_v4 }
 0x3da   :  { %1218 = vst.msk [vmem:[#allocation3 + $0x6f] sm:$0x10] %vm1202_vm1, %v1048_v41  ;;  %1208 = vst.msk [vmem:[#allocation3 + $0x65] sm:$0x10] %vm1202_vm1, %v1008_v43 }
 0x3db   :  { %1244 = vst.msk [vmem:[#allocation3 + $0x87] sm:$0x20] %vm1228_vm2, %v1048_v41  ;;  %1234 = vst.msk [vmem:[#allocation3 + $0x7d] sm:$0x20] %vm1228_vm2, %v1008_v43  ;;  %v2863_v41 = vld [vmem:[%s5420_s6 + $0x98] sm:$0x7f] }
 0x3dc   :  { %1010 = vst.msk [vmem:[#allocation3 + $0x5] sm:$0x1] %vm988_vm7, %v1008_v43 }
 0x3dd   :  { %1130 = vst.msk [vmem:[#allocation3 + $0x1d] sm:$0x2] %vm1124_vm13, %v1008_v43  ;;  %v1016_v46 = vpop.permute.xlu0 %1015  ;;  %v4506_v54 = vpop.permute.xlu1 %1116 }
 0x3de   :  { %1156 = vst.msk [vmem:[#allocation3 + $0x35] sm:$0x4] %vm1150_vm14, %v1008_v43  ;;  %1158 = vst.msk [vmem:[#allocation3 + $0x37] sm:$0x4] %vm1150_vm14, %v1016_v46 }
 0x3df   :  { %1182 = vst.msk [vmem:[#allocation3 + $0x4d] sm:$0x8] %vm1176_vm15, %v1008_v43  ;;  %1184 = vst.msk [vmem:[#allocation3 + $0x4f] sm:$0x8] %vm1176_vm15, %v1016_v46 }
 0x3e0   :  { %1018 = vst.msk [vmem:[#allocation3 + $0x7] sm:$0x1] %vm988_vm7, %v1016_v46 }
 0x3e1   :  { %1132 = vst.msk [vmem:[#allocation3 + $0x1f] sm:$0x2] %vm1124_vm13, %v1016_v46  ;;  %v1024_v56 = vpop.permute.xlu0 %1023  ;;  %v992_v48 = vpop.permute.xlu1 %991 }
 0x3e2   :  { %1210 = vst.msk [vmem:[#allocation3 + $0x67] sm:$0x10] %vm1202_vm1, %v1016_v46  ;;  %1212 = vst.msk [vmem:[#allocation3 + $0x69] sm:$0x10] %vm1202_vm1, %v1024_v56 }
 0x3e3   :  { %1236 = vst.msk [vmem:[#allocation3 + $0x7f] sm:$0x20] %vm1228_vm2, %v1016_v46  ;;  %1238 = vst.msk [vmem:[#allocation3 + $0x81] sm:$0x20] %vm1228_vm2, %v1024_v56  ;;  %v2861_v46 = vld [vmem:[%s5420_s6 + $0x88] sm:$0xff] }
 0x3e4   :  { %1026 = vst.msk [vmem:[#allocation3 + $0x9] sm:$0x1] %vm988_vm7, %v1024_v56  ;;  %994 = vst.msk [vmem:[#allocation3 + $0x1] sm:$0x1] %vm988_vm7, %v992_v48 }
 0x3e5   :  { %1134 = vst.msk [vmem:[#allocation3 + $0x21] sm:$0x2] %vm1124_vm13, %v1024_v56  ;;  %1126 = vst.msk [vmem:[#allocation3 + $0x19] sm:$0x2] %vm1124_vm13, %v992_v48  ;;  %v4526_v59 = vpop.permute.xlu1 %1052  ;;  %v1087_v61 = vpop.permute.xlu0 %1086 }
 0x3e6   :  { %1160 = vst.msk [vmem:[#allocation3 + $0x39] sm:$0x4] %vm1150_vm14, %v1024_v56  ;;  %1152 = vst.msk [vmem:[#allocation3 + $0x31] sm:$0x4] %vm1150_vm14, %v992_v48  ;;  %v1089_v50 = vsel %vm1088_vm4, %v1085_v52, %v1087_v61  ;;  %vm1080_vm4 = vcmask 719872   ;;  %v2860_v61 = vld [vmem:[%s5420_s6 + $0x80] sm:$0xff] }
 0x3e7   :  { %1186 = vst.msk [vmem:[#allocation3 + $0x51] sm:$0x8] %vm1176_vm15, %v1024_v56  ;;  %1178 = vst.msk [vmem:[#allocation3 + $0x49] sm:$0x8] %vm1176_vm15, %v992_v48 }
 0x3e8   :  { %1204 = vst.msk [vmem:[#allocation3 + $0x61] sm:$0x10] %vm1202_vm1, %v992_v48  ;;  %1223 = vst.msk [vmem:[#allocation3 + $0x74] sm:$0x10] %vm1202_vm1, %v1089_v50 }
 0x3e9   :  { %1230 = vst.msk [vmem:[#allocation3 + $0x79] sm:$0x20] %vm1228_vm2, %v992_v48  ;;  %1249 = vst.msk [vmem:[#allocation3 + $0x8c] sm:$0x20] %vm1228_vm2, %v1089_v50  ;;  %v4534_v55 = vpop.permute.xlu1 %1060  ;;  %v1095_v57 = vpop.permute.xlu0 %1094  ;;  %v1404_v48 = vld [vmem:[%s5420_s6 + $0x30] sm:$0xff] }
 0x3ea   :  { %1091 = vst.msk [vmem:[#allocation3 + $0x14] sm:$0x1] %vm988_vm7, %v1089_v50  ;;  %v1097_v60 = vsel %vm1096_vm5, %v1093_v58, %v1095_v57  ;;  %v1406_v58 = vld [vmem:[%s5420_s6 + $0x40] sm:$0xff]  ;;  %v1403_v57 = vld [vmem:[%s5420_s6 + $0x28] sm:$0xff] }
 0x3eb   :  { %1145 = vst.msk [vmem:[#allocation3 + $0x2c] sm:$0x2] %vm1124_vm13, %v1089_v50  ;;  %1146 = vst.msk [vmem:[#allocation3 + $0x2d] sm:$0x2] %vm1124_vm13, %v1097_v60  ;;  %3213 = vmatpush3.msra.mxu1 %v1406_v58  ;;  %v2909_v58 = vld [vmem:[%s5420_s6 + $0x1c8] sm:$0xff] }
 0x3ec   :  { %1171 = vst.msk [vmem:[#allocation3 + $0x44] sm:$0x4] %vm1150_vm14, %v1089_v50  ;;  %1172 = vst.msk [vmem:[#allocation3 + $0x45] sm:$0x4] %vm1150_vm14, %v1097_v60  ;;  %3214 = vmatprep.subr.mxu1 %v3688_v4 }
 0x3ed   :  { %1197 = vst.msk [vmem:[#allocation3 + $0x5c] sm:$0x8] %vm1176_vm15, %v1089_v50  ;;  %1198 = vst.msk [vmem:[#allocation3 + $0x5d] sm:$0x8] %vm1176_vm15, %v1097_v60  ;;  %v4543_v62 = vpop.permute.xlu1 %1068  ;;  %v1103_v63 = vpop.permute.xlu0 %1102 }
 0x3ee   :  { %1099 = vst.msk [vmem:[#allocation3 + $0x15] sm:$0x1] %vm988_vm7, %v1097_v60  ;;  %v1105_v0 = vsel %vm1104_vm6, %v1101_v42, %v1103_v63  ;;  %v2862_v42 = vld [vmem:[%s5420_s6 + $0x90] sm:$0xff] }
 0x3ef   :  { %1224 = vst.msk [vmem:[#allocation3 + $0x75] sm:$0x10] %vm1202_vm1, %v1097_v60  ;;  %1225 = vst.msk [vmem:[#allocation3 + $0x76] sm:$0x10] %vm1202_vm1, %v1105_v0 }
 0x3f0   :  { %1250 = vst.msk [vmem:[#allocation3 + $0x8d] sm:$0x20] %vm1228_vm2, %v1097_v60  ;;  %1251 = vst.msk [vmem:[#allocation3 + $0x8e] sm:$0x20] %vm1228_vm2, %v1105_v0 }
 0x3f1   :  { %1107 = vst.msk [vmem:[#allocation3 + $0x16] sm:$0x1] %vm988_vm7, %v1105_v0  ;;  %v4551_v1 = vpop.permute.xlu1 %1076  ;;  %v1111_v2 = vpop.permute.xlu0 %1110 }
 0x3f2   :  { %1147 = vst.msk [vmem:[#allocation3 + $0x2e] sm:$0x2] %vm1124_vm13, %v1105_v0  ;;  %v1113_v5 = vsel %vm1112_vm8, %v4498_v44, %v1111_v2  ;;  %v1405_v44 = vld [vmem:[%s5420_s6 + $0x38] sm:$0xff] }
 0x3f3   :  { %1173 = vst.msk [vmem:[#allocation3 + $0x46] sm:$0x4] %vm1150_vm14, %v1105_v0  ;;  %1174 = vst.msk [vmem:[#allocation3 + $0x47] sm:$0x4] %vm1150_vm14, %v1113_v5  ;;  %3215 = vmatpush3.msra.mxu1 %v1405_v44  ;;  %v1401_v2 = vld [vmem:[%s5420_s6 + $0x18] sm:$0xff] }
 0x3f4   :  { %1199 = vst.msk [vmem:[#allocation3 + $0x5e] sm:$0x8] %vm1176_vm15, %v1105_v0  ;;  %1200 = vst.msk [vmem:[#allocation3 + $0x5f] sm:$0x8] %vm1176_vm15, %v1113_v5  ;;  %3216 = vmatprep.subr.mxu1 %v3688_v4  ;;  %v1402_v0 = vld [vmem:[%s5420_s6 + $0x20] sm:$0xff]  ;;  %v2907_v44 = vld [vmem:[%s5420_s6 + $0x1b8] sm:$0xff] }
 0x3f5   :  { %1115 = vst.msk [vmem:[#allocation3 + $0x17] sm:$0x1] %vm988_vm7, %v1113_v5  ;;  %v1036_v6 = vpop.permute.xlu1 %1035  ;;  %v1119_v7 = vpop.permute.xlu0 %1118  ;;  %3217 = vmatpush3.msra.mxu1 %v1404_v48  ;;  %v2905_v48 = vld [vmem:[%s5420_s6 + $0x1a8] sm:$0xff] }
 0x3f6   :  { %1148 = vst.msk [vmem:[#allocation3 + $0x2f] sm:$0x2] %vm1124_vm13, %v1113_v5  ;;  %1137 = vst.msk [vmem:[#allocation3 + $0x24] sm:$0x2] %vm1124_vm13, %v1036_v6  ;;  %v1121_v8 = vsel %vm1120_vm9, %v4506_v54, %v1119_v7  ;;  %3218 = vmatprep.subr.mxu1 %v3688_v4  ;;  %v2857_v7 = vld [vmem:[%s5420_s6 + $0x68] sm:$0xff] }
 0x3f7   :  { %1226 = vst.msk [vmem:[#allocation3 + $0x77] sm:$0x10] %vm1202_vm1, %v1113_v5  ;;  %1215 = vst.msk [vmem:[#allocation3 + $0x6c] sm:$0x10] %vm1202_vm1, %v1036_v6  ;;  %3219 = vmatpush3.msra.mxu1 %v1403_v57 }
 0x3f8   :  { %1252 = vst.msk [vmem:[#allocation3 + $0x8f] sm:$0x20] %vm1228_vm2, %v1113_v5  ;;  %1241 = vst.msk [vmem:[#allocation3 + $0x84] sm:$0x20] %vm1228_vm2, %v1036_v6  ;;  %3220 = vmatprep.subr.mxu1 %v3688_v4  ;;  %v2858_v5 = vld [vmem:[%s5420_s6 + $0x70] sm:$0xff] }
 0x3f9   :  { %1038 = vst.msk [vmem:[#allocation3 + $0xc] sm:$0x1] %vm988_vm7, %v1036_v6  ;;  %1123 = vst.msk [vmem:[#allocation3 + $0x18] sm:$0x1] %vm988_vm7, %v1121_v8  ;;  %v1044_v9 = vpop.permute.xlu1 %1043  ;;  %v1055_v10 = vpop.permute.xlu0 %1054  ;;  %3221 = vmatpush3.msra.mxu1 %v1402_v0  ;;  %v2922_v0 = vld [vmem:[%s5420_s6 + $0x220] sm:$0xff] }
 0x3fa   :  { %1163 = vst.msk [vmem:[#allocation3 + $0x3c] sm:$0x4] %vm1150_vm14, %v1036_v6  ;;  %1175 = vst.msk [vmem:[#allocation3 + $0x48] sm:$0x4] %vm1150_vm14, %v1121_v8  ;;  %v1057_v11 = vsel %vm1056_vm10, %v4526_v59, %v1055_v10  ;;  %3222 = vmatprep.subr.mxu1 %v3688_v4  ;;  %v1398_v10 = vld [vmem:[%s5420_s6] sm:$0xff] }
 0x3fb   :  { %1189 = vst.msk [vmem:[#allocation3 + $0x54] sm:$0x8] %vm1176_vm15, %v1036_v6  ;;  %1201 = vst.msk [vmem:[#allocation3 + $0x60] sm:$0x8] %vm1176_vm15, %v1121_v8  ;;  %v1400_v6 = vld [vmem:[%s5420_s6 + $0x10] sm:$0xff]  ;;  %3223 = vmatpush3.msra.mxu1 %v1401_v2  ;;  %v2921_v2 = vld [vmem:[%s5420_s6 + $0x218] sm:$0xff] }
 0x3fc   :  { %1149 = vst.msk [vmem:[#allocation3 + $0x30] sm:$0x2] %vm1124_vm13, %v1121_v8  ;;  %1139 = vst.msk [vmem:[#allocation3 + $0x26] sm:$0x2] %vm1124_vm13, %v1044_v9  ;;  %3224 = vmatprep.subr.mxu1 %v3688_v4 }
 0x3fd   :  { %1227 = vst.msk [vmem:[#allocation3 + $0x78] sm:$0x10] %vm1202_vm1, %v1121_v8  ;;  %1217 = vst.msk [vmem:[#allocation3 + $0x6e] sm:$0x10] %vm1202_vm1, %v1044_v9  ;;  %v1004_v12 = vpop.permute.xlu1 %1003  ;;  %v1063_v13 = vpop.permute.xlu0 %1062  ;;  %3225 = vmatpush3.msra.mxu1 %v1400_v6  ;;  %v2920_v6 = vld [vmem:[%s5420_s6 + $0x210] sm:$0xff] }
 0x3fe   :  { %1253 = vst.msk [vmem:[#allocation3 + $0x90] sm:$0x20] %vm1228_vm2, %v1121_v8  ;;  %1243 = vst.msk [vmem:[#allocation3 + $0x86] sm:$0x20] %vm1228_vm2, %v1044_v9  ;;  %v1065_v14 = vsel %vm1064_vm11, %v4534_v55, %v1063_v13  ;;  %v1399_v8 = vld [vmem:[%s5420_s6 + $0x8] sm:$0xff]  ;;  %3226 = vmatprep.subr.mxu1 %v3688_v4 }
 0x3ff   :  { %1046 = vst.msk [vmem:[#allocation3 + $0xe] sm:$0x1] %vm988_vm7, %v1044_v9  ;;  %1059 = vst.msk [vmem:[#allocation3 + $0x10] sm:$0x1] %vm988_vm7, %v1057_v11  ;;  %3227 = vmatpush3.msra.mxu1 %v1399_v8  ;;  %v2919_v8 = vld [vmem:[%s5420_s6 + $0x208] sm:$0xff] }
 0x400   :  { %1165 = vst.msk [vmem:[#allocation3 + $0x3e] sm:$0x4] %vm1150_vm14, %v1044_v9  ;;  %1167 = vst.msk [vmem:[#allocation3 + $0x40] sm:$0x4] %vm1150_vm14, %v1057_v11  ;;  %3228 = vmatprep.subr.mxu1 %v3688_v4 }
 0x401   :  { %1191 = vst.msk [vmem:[#allocation3 + $0x56] sm:$0x8] %vm1176_vm15, %v1044_v9  ;;  %1193 = vst.msk [vmem:[#allocation3 + $0x58] sm:$0x8] %vm1176_vm15, %v1057_v11  ;;  %v1012_v16 = vpop.permute.xlu1 %1011  ;;  %v1071_v17 = vpop.permute.xlu0 %1070  ;;  %v2856_v9 = vld [vmem:[%s5420_s6 + $0x60] sm:$0xff]  ;;  %3229 = vmatpush3.msra.mxu1 %v1398_v10 }
 0x402   :  { %1141 = vst.msk [vmem:[#allocation3 + $0x28] sm:$0x2] %vm1124_vm13, %v1057_v11  ;;  %1129 = vst.msk [vmem:[#allocation3 + $0x1c] sm:$0x2] %vm1124_vm13, %v1004_v12  ;;  %v1073_v18 = vsel %vm1072_vm12, %v4543_v62, %v1071_v17  ;;  %v2859_v62 = vld [vmem:[%s5420_s6 + $0x78] sm:$0xff]  ;;  %3256 = vmatprep.subr.mxu1 %v3688_v4  ;;  %v2918_v10 = vld [vmem:[%s5420_s6 + $0x200] sm:$0xff] }
 0x403   :  { %1219 = vst.msk [vmem:[#allocation3 + $0x70] sm:$0x10] %vm1202_vm1, %v1057_v11  ;;  %1207 = vst.msk [vmem:[#allocation3 + $0x64] sm:$0x10] %vm1202_vm1, %v1004_v12 }
 0x404   :  { %1245 = vst.msk [vmem:[#allocation3 + $0x88] sm:$0x20] %vm1228_vm2, %v1057_v11  ;;  %1233 = vst.msk [vmem:[#allocation3 + $0x7c] sm:$0x20] %vm1228_vm2, %v1004_v12  ;;  %v1273_v15 = vld [vmem:[#allocation3 + $0x78] sm:$0xff] }
 0x405   :  { %1006 = vst.msk [vmem:[#allocation3 + $0x4] sm:$0x1] %vm988_vm7, %v1004_v12  ;;  %1067 = vst.msk [vmem:[#allocation3 + $0x11] sm:$0x1] %vm988_vm7, %v1065_v14  ;;  %1301 = vmatpush1.msra.mxu0 %v1273_v15  ;;  %v1020_v19 = vpop.permute.xlu1 %1019  ;;  %v1079_v20 = vpop.permute.xlu0 %1078  ;;  %v2855_v11 = vld [vmem:[%s5420_s6 + $0x58] sm:$0xff] }
 0x406   :  { %1155 = vst.msk [vmem:[#allocation3 + $0x34] sm:$0x4] %vm1150_vm14, %v1004_v12  ;;  %1168 = vst.msk [vmem:[#allocation3 + $0x41] sm:$0x4] %vm1150_vm14, %v1065_v14  ;;  %1302 = vmatprep.subr.mxu0 %v3688_v4  ;;  %v1081_v21 = vsel %vm1080_vm4, %v4551_v1, %v1079_v20 }
 0x407   :  { %1181 = vst.msk [vmem:[#allocation3 + $0x4c] sm:$0x8] %vm1176_vm15, %v1004_v12  ;;  %1194 = vst.msk [vmem:[#allocation3 + $0x59] sm:$0x8] %vm1176_vm15, %v1065_v14  ;;  %v2854_v12 = vld [vmem:[%s5420_s6 + $0x50] sm:$0xff] }
 0x408   :  { %1142 = vst.msk [vmem:[#allocation3 + $0x29] sm:$0x2] %vm1124_vm13, %v1065_v14  ;;  %1131 = vst.msk [vmem:[#allocation3 + $0x1e] sm:$0x2] %vm1124_vm13, %v1012_v16 }
 0x409   :  { %1220 = vst.msk [vmem:[#allocation3 + $0x71] sm:$0x10] %vm1202_vm1, %v1065_v14  ;;  %1209 = vst.msk [vmem:[#allocation3 + $0x66] sm:$0x10] %vm1202_vm1, %v1012_v16  ;;  %v1028_v22 = vpop.permute.xlu1 %1027  ;;  %v1032_v23 = vpop.permute.xlu0 %1031 }
 0x40a   :  { %1246 = vst.msk [vmem:[#allocation3 + $0x89] sm:$0x20] %vm1228_vm2, %v1065_v14  ;;  %1235 = vst.msk [vmem:[#allocation3 + $0x7e] sm:$0x20] %vm1228_vm2, %v1012_v16 }
 0x40b   :  { %1014 = vst.msk [vmem:[#allocation3 + $0x6] sm:$0x1] %vm988_vm7, %v1012_v16  ;;  %1075 = vst.msk [vmem:[#allocation3 + $0x12] sm:$0x1] %vm988_vm7, %v1073_v18 }
 0x40c   :  { %1157 = vst.msk [vmem:[#allocation3 + $0x36] sm:$0x4] %vm1150_vm14, %v1012_v16  ;;  %1169 = vst.msk [vmem:[#allocation3 + $0x42] sm:$0x4] %vm1150_vm14, %v1073_v18 }
 0x40d   :  { %1183 = vst.msk [vmem:[#allocation3 + $0x4e] sm:$0x8] %vm1176_vm15, %v1012_v16  ;;  %1195 = vst.msk [vmem:[#allocation3 + $0x5a] sm:$0x8] %vm1176_vm15, %v1073_v18  ;;  %v1000_v24 = vpop.permute.xlu1 %999 }
 0x40e   :  { %1143 = vst.msk [vmem:[#allocation3 + $0x2a] sm:$0x2] %vm1124_vm13, %v1073_v18  ;;  %1133 = vst.msk [vmem:[#allocation3 + $0x20] sm:$0x2] %vm1124_vm13, %v1020_v19 }
 0x40f   :  { %1221 = vst.msk [vmem:[#allocation3 + $0x72] sm:$0x10] %vm1202_vm1, %v1073_v18  ;;  %1211 = vst.msk [vmem:[#allocation3 + $0x68] sm:$0x10] %vm1202_vm1, %v1020_v19 }
 0x410   :  { %1247 = vst.msk [vmem:[#allocation3 + $0x8a] sm:$0x20] %vm1228_vm2, %v1073_v18  ;;  %1237 = vst.msk [vmem:[#allocation3 + $0x80] sm:$0x20] %vm1228_vm2, %v1020_v19 }
 0x411   :  { %1022 = vst.msk [vmem:[#allocation3 + $0x8] sm:$0x1] %vm988_vm7, %v1020_v19  ;;  %1083 = vst.msk [vmem:[#allocation3 + $0x13] sm:$0x1] %vm988_vm7, %v1081_v21 }
 0x412   :  { %1159 = vst.msk [vmem:[#allocation3 + $0x38] sm:$0x4] %vm1150_vm14, %v1020_v19  ;;  %1170 = vst.msk [vmem:[#allocation3 + $0x43] sm:$0x4] %vm1150_vm14, %v1081_v21 }
 0x413   :  { %1185 = vst.msk [vmem:[#allocation3 + $0x50] sm:$0x8] %vm1176_vm15, %v1020_v19  ;;  %1196 = vst.msk [vmem:[#allocation3 + $0x5b] sm:$0x8] %vm1176_vm15, %v1081_v21  ;;  %v2875_v19 = vld [vmem:[%s5420_s6 + $0xe8] sm:$0x7f] }
 0x414   :  { %1144 = vst.msk [vmem:[#allocation3 + $0x2b] sm:$0x2] %vm1124_vm13, %v1081_v21  ;;  %1135 = vst.msk [vmem:[#allocation3 + $0x22] sm:$0x2] %vm1124_vm13, %v1028_v22 }
 0x415   :  { %1222 = vst.msk [vmem:[#allocation3 + $0x73] sm:$0x10] %vm1202_vm1, %v1081_v21  ;;  %1213 = vst.msk [vmem:[#allocation3 + $0x6a] sm:$0x10] %vm1202_vm1, %v1028_v22 }
 0x416   :  { %1248 = vst.msk [vmem:[#allocation3 + $0x8b] sm:$0x20] %vm1228_vm2, %v1081_v21  ;;  %1239 = vst.msk [vmem:[#allocation3 + $0x82] sm:$0x20] %vm1228_vm2, %v1028_v22  ;;  %v1282_v52 = vpop.permute.xlu0 %1281  ;;  %v2874_v21 = vld [vmem:[%s5420_s6 + $0xe0] sm:$0xff] }
 0x417   :  { %1030 = vst.msk [vmem:[#allocation3 + $0xa] sm:$0x1] %vm988_vm7, %v1028_v22  ;;  %1034 = vst.msk [vmem:[#allocation3 + $0xb] sm:$0x1] %vm988_vm7, %v1032_v23 }
 0x418   :  { %1161 = vst.msk [vmem:[#allocation3 + $0x3a] sm:$0x4] %vm1150_vm14, %v1028_v22  ;;  %1162 = vst.msk [vmem:[#allocation3 + $0x3b] sm:$0x4] %vm1150_vm14, %v1032_v23  ;;  %v1260_v34 = vld [vmem:[#allocation3 + $0x10] sm:$0xff] }
 0x419   :  { %1187 = vst.msk [vmem:[#allocation3 + $0x52] sm:$0x8] %vm1176_vm15, %v1028_v22  ;;  %1188 = vst.msk [vmem:[#allocation3 + $0x53] sm:$0x8] %vm1176_vm15, %v1032_v23  ;;  %v1266_v31 = vld [vmem:[#allocation3 + $0x40] sm:$0xff] }
 0x41a   :  { %1136 = vst.msk [vmem:[#allocation3 + $0x23] sm:$0x2] %vm1124_vm13, %v1032_v23  ;;  %1128 = vst.msk [vmem:[#allocation3 + $0x1b] sm:$0x2] %vm1124_vm13, %v1000_v24  ;;  %v1269_v28 = vld [vmem:[#allocation3 + $0x58] sm:$0xff]  ;;  %v1287_v50 = vpop.permute.xlu0 %1286  ;;  %vm3709_vm13 = vmmov 0  }
 0x41b   :  { %1214 = vst.msk [vmem:[#allocation3 + $0x6b] sm:$0x10] %vm1202_vm1, %v1032_v23  ;;  %1206 = vst.msk [vmem:[#allocation3 + $0x63] sm:$0x10] %vm1202_vm1, %v1000_v24  ;;  %v1263_v3 = vld [vmem:[#allocation3 + $0x28] sm:$0xff]  ;;  %3230 = vmatprep.mubr.msk.f32.mxu1 %vm3709_vm13, %v3688_v4 }
 0x41c   :  { %1240 = vst.msk [vmem:[#allocation3 + $0x83] sm:$0x20] %vm1228_vm2, %v1032_v23  ;;  %1232 = vst.msk [vmem:[#allocation3 + $0x7b] sm:$0x20] %vm1228_vm2, %v1000_v24  ;;  %v1272_v25 = vld [vmem:[#allocation3 + $0x70] sm:$0xff]  ;;  %v2873_v23 = vld [vmem:[%s5420_s6 + $0xd8] sm:$0xff] }
 0x41d   :  { %1002 = vst.msk [vmem:[#allocation3 + $0x3] sm:$0x1] %vm988_vm7, %v1000_v24  ;;  %1303 = vmatpush1.msra.mxu0 %v1272_v25  ;;  %vm1296_vm7 = vcmask 1045504   ;;  %v1276_v38 = vld [vmem:[#allocation3 + $0x90] sm:$0x3f] }
 0x41e   :  { %1154 = vst.msk [vmem:[#allocation3 + $0x33] sm:$0x4] %vm1150_vm14, %v1000_v24  ;;  %1304 = vmatprep.subr.mxu0 %v3688_v4  ;;  %v1259_v36 = vld [vmem:[#allocation3 + $0x8] sm:$0xff]  ;;  %v2887_v22 = vld [vmem:[%s5420_s6 + $0x138] sm:$0x7f]  ;;  %v2872_v25 = vld [vmem:[%s5420_s6 + $0xd0] sm:$0xff] }
 0x41f   :  { %1180 = vst.msk [vmem:[#allocation3 + $0x4b] sm:$0x8] %vm1176_vm15, %v1000_v24  ;;  %v1265_v32 = vld [vmem:[#allocation3 + $0x38] sm:$0xff]  ;;  %v2886_v24 = vld [vmem:[%s5420_s6 + $0x130] sm:$0xff]  ;;  %vm2814_vm14 = vcmask 0   ;;  %vm2821_vm15 = vcmask 8200  }
 0x420   :  { %v1268_v29 = vld [vmem:[#allocation3 + $0x50] sm:$0xff] }
 0x421   :  { %v1262_v35 = vld [vmem:[#allocation3 + $0x20] sm:$0xff]  ;;  %v1261_v45 = vld [vmem:[#allocation3 + $0x18] sm:$0xff] }
 0x422   :  { %v1271_v26 = vld [vmem:[#allocation3 + $0x68] sm:$0xff]  ;;  %v1270_v27 = vld [vmem:[#allocation3 + $0x60] sm:$0xff] }
 0x423   :  { %1305 = vmatpush1.msra.mxu0 %v1271_v26  ;;  %v1275_v39 = vld [vmem:[#allocation3 + $0x88] sm:$0xff]  ;;  %v1274_v51 = vld [vmem:[#allocation3 + $0x80] sm:$0xff] }
 0x424   :  { %1306 = vmatprep.subr.mxu0 %v3688_v4  ;;  %v1258_v37 = vld [vmem:[#allocation3] sm:$0xff]  ;;  %v2885_v26 = vld [vmem:[%s5420_s6 + $0x128] sm:$0xff] }
 0x425   :  { %1307 = vmatpush1.msra.mxu0 %v1270_v27  ;;  %v1264_v33 = vld [vmem:[#allocation3 + $0x30] sm:$0xff]  ;;  %v2871_v27 = vld [vmem:[%s5420_s6 + $0xc8] sm:$0xff] }
 0x426   :  { %1308 = vmatprep.subr.mxu0 %v3688_v4  ;;  %v1267_v30 = vld [vmem:[#allocation3 + $0x48] sm:$0xff] }
 0x427   :  { %1309 = vmatpush1.msra.mxu0 %v1269_v28  ;;  %v2884_v28 = vld [vmem:[%s5420_s6 + $0x120] sm:$0xff] }
 0x428   :  { %1310 = vmatprep.subr.mxu0 %v3688_v4 }
 0x429   :  { %1311 = vmatpush1.msra.mxu0 %v1268_v29  ;;  %v2870_v29 = vld [vmem:[%s5420_s6 + $0xc0] sm:$0xff] }
 0x42a   :  { %1312 = vmatprep.subr.mxu0 %v3688_v4 }
 0x42b   :  { %1313 = vmatpush1.msra.mxu0 %v1267_v30  ;;  %v2883_v30 = vld [vmem:[%s5420_s6 + $0x118] sm:$0xff] }
 0x42c   :  { %1314 = vmatprep.subr.mxu0 %v3688_v4 }
 0x42d   :  { %1315 = vmatpush1.msra.mxu0 %v1266_v31  ;;  %v2869_v31 = vld [vmem:[%s5420_s6 + $0xb8] sm:$0xff] }
 0x42e   :  { %1316 = vmatprep.subr.mxu0 %v3688_v4 }
 0x42f   :  { %1317 = vmatpush1.msra.mxu0 %v1265_v32  ;;  %v2882_v32 = vld [vmem:[%s5420_s6 + $0x110] sm:$0xff] }
 0x430   :  { %1318 = vmatprep.subr.mxu0 %v3688_v4 }
 0x431   :  { %1319 = vmatpush1.msra.mxu0 %v1264_v33  ;;  %v2868_v33 = vld [vmem:[%s5420_s6 + $0xb0] sm:$0xff] }
 0x432   :  { %1320 = vmatprep.subr.mxu0 %v3688_v4 }
 0x433   :  { %1321 = vmatpush1.msra.mxu0 %v1263_v3  ;;  %v2881_v3 = vld [vmem:[%s5420_s6 + $0x108] sm:$0xff] }
 0x434   :  { %1322 = vmatprep.subr.mxu0 %v3688_v4 }
 0x435   :  { %1323 = vmatpush1.msra.mxu0 %v1262_v35  ;;  %v2867_v35 = vld [vmem:[%s5420_s6 + $0xa8] sm:$0xff] }
 0x436   :  { %1324 = vmatprep.subr.mxu0 %v3688_v4 }
 0x437   :  { %1325 = vmatpush1.msra.mxu0 %v1261_v45  ;;  %v2880_v45 = vld [vmem:[%s5420_s6 + $0x100] sm:$0xff] }
 0x438   :  { %1326 = vmatprep.subr.mxu0 %v3688_v4 }
 0x439   :  { %1327 = vmatpush1.msra.mxu0 %v1260_v34  ;;  %v2866_v34 = vld [vmem:[%s5420_s6 + $0xa0] sm:$0xff] }
 0x43a   :  { %1328 = vmatprep.subr.mxu0 %v3688_v4 }
 0x43b   :  { %1329 = vmatpush1.msra.mxu0 %v1259_v36  ;;  %v2879_v36 = vld [vmem:[%s5420_s6 + $0xf8] sm:$0xff] }
 0x43c   :  { %1330 = vmatprep.subr.mxu0 %v3688_v4 }
 0x43d   :  { %1331 = vmatpush1.msra.mxu0 %v1258_v37 }
 0x43e   :  { %1358 = vmatprep.subr.mxu0 %v3688_v4 }
 0x43f   :  { %2849 = vmatpush2.msk.msra.mxu0 %vm1296_vm7, %v1276_v38  ;;  %v2878_v38 = vld [vmem:[%s5420_s6 + $0xf0] sm:$0xff] }
 0x440   :  { %1360 = vmatprep.subr.mxu0 %v3688_v4 }
 0x441   :  { %1361 = vmatpush2.msra.mxu0 %v1275_v39  ;;  %v2899_v39 = vld [vmem:[%s5420_s6 + $0x188] sm:$0x7f] }
 0x442   :  { %1362 = vmatprep.subr.mxu0 %v3688_v4 }
 0x443   :  { %1363 = vmatpush2.msra.mxu0 %v1274_v51  ;;  %v2898_v51 = vld [vmem:[%s5420_s6 + $0x180] sm:$0xff] }
 0x444   :  { %1365 = vmatmul.mubr.f32.vlgmr.msra.gmra.mxu0 %v1254_v40  ;;  %3233 = vmatprep.subr.mxu0 %v3688_v4 }
 0x445   :  { %2851 = vmatprep.mubr.msk.f32.mxu0 %vm1289_vm3, %v1257_v47  ;;  %3234 = vmatpush3.msk.msra.mxu0 %vm768_vm0, %v2863_v41  ;;  %v2911_v47 = vld [vmem:[%s5420_s6 + $0x1d8] sm:$0x7f]  ;;  %v2895_v41 = vld [vmem:[%s5420_s6 + $0x168] sm:$0xff] }
 0x446   :  { %3235 = vmatprep.subr.mxu0 %v3688_v4 }
 0x447   :  { %3236 = vmatpush3.msra.mxu0 %v2862_v42  ;;  %v2908_v42 = vld [vmem:[%s5420_s6 + $0x1c0] sm:$0xff] }
 0x448   :  { %1370 = vmatmul.mubr.f32.gmra.mxu0 %v1256_v49  ;;  %3237 = vmatprep.subr.mxu0 %v3688_v4  ;;  %v2897_v49 = vld [vmem:[%s5420_s6 + $0x178] sm:$0xff] }
 0x449   :  { %3238 = vmatpush3.msra.mxu0 %v2861_v46  ;;  %3253 = vmatprep.mubr.msk.f32.mxu0 %vm3709_vm13, %v3688_v4  ;;  %v2893_v46 = vld [vmem:[%s5420_s6 + $0x158] sm:$0xff] }
 0x44a   :  { %3239 = vmatprep.subr.mxu0 %v3688_v4 }
 0x44b   :  { %3240 = vmatpush3.msra.mxu0 %v2860_v61  ;;  %v2904_v61 = vld [vmem:[%s5420_s6 + $0x1a0] sm:$0xff] }
 0x44c   :  { %3241 = vmatprep.subr.mxu0 %v3688_v4 }
 0x44d   :  { %3242 = vmatpush3.msra.mxu0 %v2859_v62  ;;  %v2923_v62 = vld [vmem:[%s5420_s6 + $0x228] sm:$0x7f] }
 0x44e   :  { %3243 = vmatprep.subr.mxu0 %v3688_v4 }
 0x44f   :  { %3244 = vmatpush3.msra.mxu0 %v2858_v5  ;;  %v2934_v5 = vld [vmem:[%s5420_s6 + $0x270] sm:$0xff] }
 0x450   :  { %3245 = vmatprep.subr.mxu0 %v3688_v4 }
 0x451   :  { %3246 = vmatpush3.msra.mxu0 %v2857_v7  ;;  %v2933_v7 = vld [vmem:[%s5420_s6 + $0x268] sm:$0xff] }
 0x452   :  { %3247 = vmatprep.subr.mxu0 %v3688_v4 }
 0x453   :  { %3248 = vmatpush3.msra.mxu0 %v2856_v9  ;;  %v2932_v9 = vld [vmem:[%s5420_s6 + $0x260] sm:$0xff] }
 0x454   :  { %3249 = vmatprep.subr.mxu0 %v3688_v4 }
 0x455   :  { %3250 = vmatpush3.msra.mxu0 %v2855_v11  ;;  %v2931_v11 = vld [vmem:[%s5420_s6 + $0x258] sm:$0xff] }
 0x456   :  { %3251 = vmatprep.subr.mxu0 %v3688_v4 }
 0x457   :  { %3252 = vmatpush3.msra.mxu0 %v2854_v12  ;;  %v2917_v12 = vld [vmem:[%s5420_s6 + $0x1f8] sm:$0xff] }
 0x458   :  { %3279 = vmatprep.subr.mxu0 %v3688_v4 }
 0x504   :  { %v1366_v43 = vpop.f32.mrf.mxu0 }
 0x505   :  { %v4694_v54 = vadd.f32 %v1366_v43, %v1282_v52  ;;  %v2910_v52 = vld [vmem:[%s5420_s6 + $0x1d0] sm:$0xff]  ;;  %v2894_v43 = vld [vmem:[%s5420_s6 + $0x160] sm:$0xff] }
 0x506   :  { %v1368_v56 = vpop.f32.mrf.mxu0 }
 0x507   :  { %v1375_v59 = vmax.f32 %v4694_v54, 0.0  ;;  %v2906_v54 = vld [vmem:[%s5420_s6 + $0x1b0] sm:$0xff] }
 0x508   :  { %v1371_v55 = vpop.f32.mrf.mxu0  ;;  %v2892_v56 = vld [vmem:[%s5420_s6 + $0x150] sm:$0xff] }
 0x509   :  { %v1372_v60 = vadd.f32 %v1371_v55, %v1287_v50  ;;  %1379 = vrot.lane.b32.xlu1 %v1375_v59, %s3680_s11  ;;  %v2890_v50 = vld [vmem:[%s5420_s6 + $0x140] sm:$0xff]  ;;  %v2903_v55 = vld [vmem:[%s5420_s6 + $0x198] sm:$0xff] }
 0x50a   :  { %v1373_v63 = vpop.f32.mrf.mxu0 }
 0x50b   :  { %v1376_v1 = vmax.f32 %v1372_v60, 0.0  ;;  %v2902_v60 = vld [vmem:[%s5420_s6 + $0x190] sm:$0xff] }
 0x50d   :  { %1381 = vrot.lane.b32.xlu0 %v1376_v1, %s3680_s11 }
 0x57b   :  { %v1380_v13 = vpop.permute.xlu1 %1379 }
 0x57c   :  { %v1385_v14 = vmax.f32 %v1375_v59, %v1380_v13  ;;  %v2891_v59 = vld [vmem:[%s5420_s6 + $0x148] sm:$0xff]  ;;  %v2930_v13 = vld [vmem:[%s5420_s6 + $0x250] sm:$0xff] }
 0x57e   :  { %1389 = vrot.lane.b32.xlu1 %v1385_v14, %s3695_s1 }
 0x57f   :  { %v1382_v15 = vpop.permute.xlu0 %1381 }
 0x580   :  { %v4764_v16 = vmax.f32 %v1376_v1, %v1382_v15  ;;  %v2935_v1 = vld [vmem:[%s5420_s6 + $0x278] sm:$0x7f]  ;;  %v2929_v15 = vld [vmem:[%s5420_s6 + $0x248] sm:$0xff] }
 0x582   :  { %1391 = vrot.lane.b32.xlu1 %v4764_v16, %s3695_s1 }
 0x5f0   :  { %v1390_v17 = vpop.permute.xlu1 %1389 }
 0x5f1   :  { %v4768_v18 = vmax.f32 %v1385_v14, %v1390_v17  ;;  %v2916_v14 = vld [vmem:[%s5420_s6 + $0x1f0] sm:$0xff]  ;;  %v2915_v17 = vld [vmem:[%s5420_s6 + $0x1e8] sm:$0xff] }
 0x5f3   :  { %3231 = vmatmul.mubr.msk.f32.vlgmr.msra.gmra.mxu1 %vm1096_vm5, %v4768_v18  ;;  %v1496_v20 = vrot.slane %v4768_v18, 1  ;;  %v1584_v37 = vrot.slane %v4768_v18, 2  ;;  %v1672_v40 = vrot.slane %v4768_v18, 3  ;;  %v1760_v57 = vrot.slane %v4768_v18, 4 }
 0x5f4   :  { %3257 = vmatpush3.msk.msra.mxu1 %vm768_vm0, %v2875_v19  ;;  %3276 = vmatprep.mubr.msk.f32.mxu1 %vm3709_vm13, %v3688_v4  ;;  %v1848_v63 = vrot.slane %v4768_v18, 5  ;;  %v2928_v19 = vld [vmem:[%s5420_s6 + $0x240] sm:$0xff] }
 0x5f5   :  { %3258 = vmatprep.subr.mxu1 %v3688_v4  ;;  %3254 = vmatmul.mubr.msk.f32.vlgmr.msra.gmra.mxu0 %vm1096_vm5, %v1496_v20  ;;  %v2914_v20 = vld [vmem:[%s5420_s6 + $0x1e0] sm:$0xff] }
 0x5f6   :  { %3259 = vmatpush3.msra.mxu1 %v2874_v21  ;;  %3280 = vmatpush3.msk.msra.mxu0 %vm768_vm0, %v2887_v22  ;;  %v2927_v21 = vld [vmem:[%s5420_s6 + $0x238] sm:$0xff]  ;;  %v1936_v22 = vrot.slane %v4768_v18, 6 }
 0x5f7   :  { %3260 = vmatprep.subr.mxu1 %v3688_v4  ;;  %3281 = vmatprep.subr.mxu0 %v3688_v4 }
 0x5f8   :  { %3261 = vmatpush3.msra.mxu1 %v2873_v23  ;;  %3282 = vmatpush3.msra.mxu0 %v2886_v24  ;;  %v2926_v23 = vld [vmem:[%s5420_s6 + $0x230] sm:$0xff]  ;;  %v2947_v24 = vld [vmem:[%s5420_s6 + $0x2c8] sm:$0x7f] }
 0x5f9   :  { %3262 = vmatprep.subr.mxu1 %v3688_v4  ;;  %3283 = vmatprep.subr.mxu0 %v3688_v4 }
 0x5fa   :  { %3263 = vmatpush3.msra.mxu1 %v2872_v25  ;;  %3284 = vmatpush3.msra.mxu0 %v2885_v26  ;;  %v2024_v25 = vrot.slane %v4768_v18, 7  ;;  %v2946_v26 = vld [vmem:[%s5420_s6 + $0x2c0] sm:$0xff]  ;;  %v2945_v18 = vld [vmem:[%s5420_s6 + $0x2b8] sm:$0xff] }
 0x5fb   :  { %3264 = vmatprep.subr.mxu1 %v3688_v4  ;;  %3285 = vmatprep.subr.mxu0 %v3688_v4 }
 0x5fc   :  { %3265 = vmatpush3.msra.mxu1 %v2871_v27  ;;  %3286 = vmatpush3.msra.mxu0 %v2884_v28  ;;  %v2959_v27 = vld [vmem:[%s5420_s6 + $0x318] sm:$0x7f]  ;;  %v2958_v28 = vld [vmem:[%s5420_s6 + $0x310] sm:$0xff] }
 0x5fd   :  { %3266 = vmatprep.subr.mxu1 %v3688_v4  ;;  %3287 = vmatprep.subr.mxu0 %v3688_v4 }
 0x5fe   :  { %3267 = vmatpush3.msra.mxu1 %v2870_v29  ;;  %3288 = vmatpush3.msra.mxu0 %v2883_v30  ;;  %v2944_v29 = vld [vmem:[%s5420_s6 + $0x2b0] sm:$0xff]  ;;  %v2957_v30 = vld [vmem:[%s5420_s6 + $0x308] sm:$0xff] }
 0x5ff   :  { %3268 = vmatprep.subr.mxu1 %v3688_v4  ;;  %3289 = vmatprep.subr.mxu0 %v3688_v4 }
 0x600   :  { %3269 = vmatpush3.msra.mxu1 %v2869_v31  ;;  %3290 = vmatpush3.msra.mxu0 %v2882_v32  ;;  %v2943_v31 = vld [vmem:[%s5420_s6 + $0x2a8] sm:$0xff]  ;;  %v2956_v32 = vld [vmem:[%s5420_s6 + $0x300] sm:$0xff] }
 0x601   :  { %3270 = vmatprep.subr.mxu1 %v3688_v4  ;;  %3291 = vmatprep.subr.mxu0 %v3688_v4 }
 0x602   :  { %3271 = vmatpush3.msra.mxu1 %v2868_v33  ;;  %3292 = vmatpush3.msra.mxu0 %v2881_v3  ;;  %v2942_v33 = vld [vmem:[%s5420_s6 + $0x2a0] sm:$0xff]  ;;  %v2955_v3 = vld [vmem:[%s5420_s6 + $0x2f8] sm:$0xff] }
 0x603   :  { %3272 = vmatprep.subr.mxu1 %v3688_v4  ;;  %3293 = vmatprep.subr.mxu0 %v3688_v4 }
 0x604   :  { %3273 = vmatpush3.msra.mxu1 %v2867_v35  ;;  %3294 = vmatpush3.msra.mxu0 %v2880_v45  ;;  %v2941_v35 = vld [vmem:[%s5420_s6 + $0x298] sm:$0xff]  ;;  %v2954_v45 = vld [vmem:[%s5420_s6 + $0x2f0] sm:$0xff] }
 0x605   :  { %3274 = vmatprep.subr.mxu1 %v3688_v4  ;;  %3295 = vmatprep.subr.mxu0 %v3688_v4 }
 0x606   :  { %3275 = vmatpush3.msra.mxu1 %v2866_v34  ;;  %3296 = vmatpush3.msra.mxu0 %v2879_v36  ;;  %v2940_v34 = vld [vmem:[%s5420_s6 + $0x290] sm:$0xff]  ;;  %v2953_v36 = vld [vmem:[%s5420_s6 + $0x2e8] sm:$0xff] }
 0x607   :  { %3277 = vmatmul.mubr.msk.f32.vlgmr.msra.gmra.mxu1 %vm1096_vm5, %v1584_v37  ;;  %3297 = vmatprep.subr.mxu0 %v3688_v4  ;;  %v2939_v37 = vld [vmem:[%s5420_s6 + $0x288] sm:$0xff] }
 0x608   :  { %3302 = vmatprep.subr.mxu1 %v3688_v4  ;;  %3298 = vmatpush3.msra.mxu0 %v2878_v38  ;;  %v1392_v38 = vpop.permute.xlu1 %1391 }
 0x609   :  { %3299 = vmatprep.mubr.msk.f32.mxu0 %vm3709_vm13, %v3688_v4  ;;  %3303 = vmatpush3.msk.msra.mxu1 %vm768_vm0, %v2899_v39  ;;  %v2952_v39 = vld [vmem:[%s5420_s6 + $0x2e0] sm:$0xff] }
 0x60a   :  { %3300 = vmatmul.mubr.msk.f32.vlgmr.msra.gmra.mxu0 %vm1096_vm5, %v1672_v40  ;;  %3304 = vmatprep.subr.mxu1 %v3688_v4  ;;  %v2938_v40 = vld [vmem:[%s5420_s6 + $0x280] sm:$0xff] }
 0x60b   :  { %3325 = vmatprep.subr.mxu0 %v3688_v4  ;;  %3305 = vmatpush3.msra.mxu1 %v2898_v51  ;;  %v2951_v51 = vld [vmem:[%s5420_s6 + $0x2d8] sm:$0xff] }
 0x60c   :  { %3326 = vmatpush3.msk.msra.mxu0 %vm768_vm0, %v2911_v47  ;;  %3306 = vmatprep.subr.mxu1 %v3688_v4  ;;  %v5119_v47 = vmax.f32 %v4764_v16, %v1392_v38  ;;  %v3026_v38 = vld [vmem:[%s5420_s6 + $0x4d0] sm:$0xff] }
 0x60d   :  { %3327 = vmatprep.subr.mxu0 %v3688_v4  ;;  %3307 = vmatpush3.msra.mxu1 %v2897_v49  ;;  %v2950_v49 = vld [vmem:[%s5420_s6 + $0x2d0] sm:$0xff] }
 0x60e   :  { %3328 = vmatpush3.msra.mxu0 %v2910_v52  ;;  %3308 = vmatprep.subr.mxu1 %v3688_v4  ;;  %v2971_v52 = vld [vmem:[%s5420_s6 + $0x368] sm:$0x7f]  ;;  %v2200_v16 = vrot.slane %v5119_v47, 1 }
 0x60f   :  { %3329 = vmatprep.subr.mxu0 %v3688_v4  ;;  %3309 = vmatpush3.msra.mxu1 %v2896_v53  ;;  %v2970_v53 = vld [vmem:[%s5420_s6 + $0x360] sm:$0xff] }
 0x610   :  { %3330 = vmatpush3.msra.mxu0 %v2909_v58  ;;  %3310 = vmatprep.subr.mxu1 %v3688_v4  ;;  %v2983_v58 = vld [vmem:[%s5420_s6 + $0x3b8] sm:$0x7f] }
 0x611   :  { %3331 = vmatprep.subr.mxu0 %v3688_v4  ;;  %3311 = vmatpush3.msra.mxu1 %v2895_v41  ;;  %v2969_v41 = vld [vmem:[%s5420_s6 + $0x358] sm:$0xff] }
 0x612   :  { %3332 = vmatpush3.msra.mxu0 %v2908_v42  ;;  %3312 = vmatprep.subr.mxu1 %v3688_v4  ;;  %v2982_v42 = vld [vmem:[%s5420_s6 + $0x3b0] sm:$0xff] }
 0x613   :  { %3333 = vmatprep.subr.mxu0 %v3688_v4  ;;  %3313 = vmatpush3.msra.mxu1 %v2894_v43  ;;  %v2968_v43 = vld [vmem:[%s5420_s6 + $0x350] sm:$0xff] }
 0x614   :  { %3334 = vmatpush3.msra.mxu0 %v2907_v44  ;;  %3314 = vmatprep.subr.mxu1 %v3688_v4  ;;  %v2981_v44 = vld [vmem:[%s5420_s6 + $0x3a8] sm:$0xff] }
 0x615   :  { %3335 = vmatprep.subr.mxu0 %v3688_v4  ;;  %3315 = vmatpush3.msra.mxu1 %v2893_v46  ;;  %v2967_v46 = vld [vmem:[%s5420_s6 + $0x348] sm:$0xff] }
 0x616   :  { %3336 = vmatpush3.msra.mxu0 %v2906_v54  ;;  %3316 = vmatprep.subr.mxu1 %v3688_v4  ;;  %v2980_v54 = vld [vmem:[%s5420_s6 + $0x3a0] sm:$0xff] }
 0x617   :  { %3337 = vmatprep.subr.mxu0 %v3688_v4  ;;  %3317 = vmatpush3.msra.mxu1 %v2892_v56  ;;  %v2966_v56 = vld [vmem:[%s5420_s6 + $0x340] sm:$0xff] }
 0x618   :  { %3338 = vmatpush3.msra.mxu0 %v2905_v48  ;;  %3318 = vmatprep.subr.mxu1 %v3688_v4  ;;  %v2979_v48 = vld [vmem:[%s5420_s6 + $0x398] sm:$0xff] }
 0x619   :  { %3339 = vmatprep.subr.mxu0 %v3688_v4  ;;  %3319 = vmatpush3.msra.mxu1 %v2891_v59  ;;  %v2965_v59 = vld [vmem:[%s5420_s6 + $0x338] sm:$0xff] }
 0x61a   :  { %3340 = vmatpush3.msra.mxu0 %v2904_v61  ;;  %3320 = vmatprep.subr.mxu1 %v3688_v4  ;;  %v2978_v61 = vld [vmem:[%s5420_s6 + $0x390] sm:$0xff] }
 0x61b   :  { %3341 = vmatprep.subr.mxu0 %v3688_v4  ;;  %3321 = vmatpush3.msra.mxu1 %v2890_v50  ;;  %v2964_v50 = vld [vmem:[%s5420_s6 + $0x330] sm:$0xff] }
 0x61c   :  { %3322 = vmatprep.mubr.msk.f32.mxu1 %vm3709_vm13, %v3688_v4  ;;  %3342 = vmatpush3.msra.mxu0 %v2903_v55  ;;  %v2977_v55 = vld [vmem:[%s5420_s6 + $0x388] sm:$0xff] }
 0x61d   :  { %3323 = vmatmul.mubr.msk.f32.vlgmr.msra.gmra.mxu1 %vm1096_vm5, %v1760_v57  ;;  %3343 = vmatprep.subr.mxu0 %v3688_v4  ;;  %v2963_v57 = vld [vmem:[%s5420_s6 + $0x328] sm:$0xff] }
 0x61e   :  { %3348 = vmatprep.subr.mxu1 %v3688_v4  ;;  %3344 = vmatpush3.msra.mxu0 %v2902_v60  ;;  %v2976_v60 = vld [vmem:[%s5420_s6 + $0x380] sm:$0xff] }
 0x61f   :  { %3345 = vmatprep.mubr.msk.f32.mxu0 %vm3709_vm13, %v3688_v4  ;;  %3349 = vmatpush3.msk.msra.mxu1 %vm768_vm0, %v2923_v62  ;;  %v2962_v62 = vld [vmem:[%s5420_s6 + $0x320] sm:$0xff] }
 0x620   :  { %3346 = vmatmul.mubr.msk.f32.vlgmr.msra.gmra.mxu0 %vm1096_vm5, %v1848_v63  ;;  %3350 = vmatprep.subr.mxu1 %v3688_v4  ;;  %v2975_v63 = vld [vmem:[%s5420_s6 + $0x378] sm:$0xff] }
 0x621   :  { %3371 = vmatprep.subr.mxu0 %v3688_v4  ;;  %3351 = vmatpush3.msra.mxu1 %v2922_v0  ;;  %v2288_v0 = vrot.slane %v5119_v47, 2 }
 0x622   :  { %3372 = vmatpush3.msk.msra.mxu0 %vm768_vm0, %v2935_v1  ;;  %3352 = vmatprep.subr.mxu1 %v3688_v4  ;;  %v2974_v1 = vld [vmem:[%s5420_s6 + $0x370] sm:$0xff] }
 0x623   :  { %3373 = vmatprep.subr.mxu0 %v3688_v4  ;;  %3353 = vmatpush3.msra.mxu1 %v2921_v2  ;;  %v2995_v2 = vld [vmem:[%s5420_s6 + $0x408] sm:$0x7f] }
 0x624   :  { %3374 = vmatpush3.msra.mxu0 %v2934_v5  ;;  %3354 = vmatprep.subr.mxu1 %v3688_v4  ;;  %v2376_v5 = vrot.slane %v5119_v47, 3 }
 0x625   :  { %3375 = vmatprep.subr.mxu0 %v3688_v4  ;;  %3355 = vmatpush3.msra.mxu1 %v2920_v6  ;;  %v2994_v6 = vld [vmem:[%s5420_s6 + $0x400] sm:$0xff] }
 0x626   :  { %3376 = vmatpush3.msra.mxu0 %v2933_v7  ;;  %3356 = vmatprep.subr.mxu1 %v3688_v4  ;;  %v3007_v7 = vld [vmem:[%s5420_s6 + $0x458] sm:$0x7f] }
 0x627   :  { %3377 = vmatprep.subr.mxu0 %v3688_v4  ;;  %3357 = vmatpush3.msra.mxu1 %v2919_v8  ;;  %v2993_v8 = vld [vmem:[%s5420_s6 + $0x3f8] sm:$0xff] }
 0x628   :  { %3378 = vmatpush3.msra.mxu0 %v2932_v9  ;;  %3358 = vmatprep.subr.mxu1 %v3688_v4  ;;  %v3006_v9 = vld [vmem:[%s5420_s6 + $0x450] sm:$0xff] }
 0x629   :  { %3379 = vmatprep.subr.mxu0 %v3688_v4  ;;  %3359 = vmatpush3.msra.mxu1 %v2918_v10  ;;  %v2992_v10 = vld [vmem:[%s5420_s6 + $0x3f0] sm:$0xff] }
 0x62a   :  { %3380 = vmatpush3.msra.mxu0 %v2931_v11  ;;  %3360 = vmatprep.subr.mxu1 %v3688_v4  ;;  %v3005_v11 = vld [vmem:[%s5420_s6 + $0x448] sm:$0xff] }
 0x62b   :  { %3381 = vmatprep.subr.mxu0 %v3688_v4  ;;  %3361 = vmatpush3.msra.mxu1 %v2917_v12  ;;  %v2991_v12 = vld [vmem:[%s5420_s6 + $0x3e8] sm:$0xff] }
 0x62c   :  { %3382 = vmatpush3.msra.mxu0 %v2930_v13  ;;  %3362 = vmatprep.subr.mxu1 %v3688_v4  ;;  %v3004_v13 = vld [vmem:[%s5420_s6 + $0x440] sm:$0xff] }
 0x62d   :  { %3383 = vmatprep.subr.mxu0 %v3688_v4  ;;  %3363 = vmatpush3.msra.mxu1 %v2916_v14  ;;  %v2990_v14 = vld [vmem:[%s5420_s6 + $0x3e0] sm:$0xff] }
 0x62e   :  { %3384 = vmatpush3.msra.mxu0 %v2929_v15  ;;  %3364 = vmatprep.subr.mxu1 %v3688_v4  ;;  %v3003_v15 = vld [vmem:[%s5420_s6 + $0x438] sm:$0xff] }
 0x62f   :  { %3385 = vmatprep.subr.mxu0 %v3688_v4  ;;  %3365 = vmatpush3.msra.mxu1 %v2915_v17  ;;  %v2989_v17 = vld [vmem:[%s5420_s6 + $0x3d8] sm:$0xff] }
 0x630   :  { %3386 = vmatpush3.msra.mxu0 %v2928_v19  ;;  %3366 = vmatprep.subr.mxu1 %v3688_v4  ;;  %v3002_v19 = vld [vmem:[%s5420_s6 + $0x430] sm:$0xff] }
 0x631   :  { %3387 = vmatprep.subr.mxu0 %v3688_v4  ;;  %3367 = vmatpush3.msra.mxu1 %v2914_v20  ;;  %v2988_v20 = vld [vmem:[%s5420_s6 + $0x3d0] sm:$0xff] }
 0x632   :  { %3368 = vmatprep.mubr.msk.f32.mxu1 %vm3709_vm13, %v3688_v4  ;;  %3388 = vmatpush3.msra.mxu0 %v2927_v21  ;;  %v3001_v21 = vld [vmem:[%s5420_s6 + $0x428] sm:$0xff] }
 0x633   :  { %3369 = vmatmul.mubr.msk.f32.vlgmr.msra.gmra.mxu1 %vm1096_vm5, %v1936_v22  ;;  %3389 = vmatprep.subr.mxu0 %v3688_v4  ;;  %v2987_v22 = vld [vmem:[%s5420_s6 + $0x3c8] sm:$0xff] }
 0x634   :  { %3394 = vmatprep.subr.mxu1 %v3688_v4  ;;  %3390 = vmatpush3.msra.mxu0 %v2926_v23  ;;  %v3000_v23 = vld [vmem:[%s5420_s6 + $0x420] sm:$0xff] }
 0x635   :  { %3391 = vmatprep.mubr.msk.f32.mxu0 %vm3709_vm13, %v3688_v4  ;;  %3395 = vmatpush3.msk.msra.mxu1 %vm768_vm0, %v2947_v24  ;;  %v2986_v24 = vld [vmem:[%s5420_s6 + $0x3c0] sm:$0xff] }
 0x636   :  { %3392 = vmatmul.mubr.msk.f32.vlgmr.msra.gmra.mxu0 %vm1096_vm5, %v2024_v25  ;;  %3396 = vmatprep.subr.mxu1 %v3688_v4  ;;  %v2999_v25 = vld [vmem:[%s5420_s6 + $0x418] sm:$0xff] }
 0x637   :  { %3417 = vmatprep.subr.mxu0 %v3688_v4  ;;  %3397 = vmatpush3.msra.mxu1 %v2946_v26  ;;  %v2464_v26 = vrot.slane %v5119_v47, 4 }
 0x638   :  { %3418 = vmatpush3.msk.msra.mxu0 %vm768_vm0, %v2959_v27  ;;  %3398 = vmatprep.subr.mxu1 %v3688_v4  ;;  %v2998_v27 = vld [vmem:[%s5420_s6 + $0x410] sm:$0xff] }
 0x639   :  { %3419 = vmatprep.subr.mxu0 %v3688_v4  ;;  %3399 = vmatpush3.msra.mxu1 %v2945_v18  ;;  %v3019_v18 = vld [vmem:[%s5420_s6 + $0x4a8] sm:$0x7f] }
 0x63a   :  { %3420 = vmatpush3.msra.mxu0 %v2958_v28  ;;  %3400 = vmatprep.subr.mxu1 %v3688_v4  ;;  %v2552_v28 = vrot.slane %v5119_v47, 5 }
 0x63b   :  { %3421 = vmatprep.subr.mxu0 %v3688_v4  ;;  %3401 = vmatpush3.msra.mxu1 %v2944_v29  ;;  %v3018_v29 = vld [vmem:[%s5420_s6 + $0x4a0] sm:$0xff] }
 0x63c   :  { %3422 = vmatpush3.msra.mxu0 %v2957_v30  ;;  %3402 = vmatprep.subr.mxu1 %v3688_v4  ;;  %v3031_v30 = vld [vmem:[%s5420_s6 + $0x4f8] sm:$0x7f] }
 0x63d   :  { %3423 = vmatprep.subr.mxu0 %v3688_v4  ;;  %3403 = vmatpush3.msra.mxu1 %v2943_v31  ;;  %v3017_v31 = vld [vmem:[%s5420_s6 + $0x498] sm:$0xff] }
 0x63e   :  { %3424 = vmatpush3.msra.mxu0 %v2956_v32  ;;  %3404 = vmatprep.subr.mxu1 %v3688_v4  ;;  %v3030_v32 = vld [vmem:[%s5420_s6 + $0x4f0] sm:$0xff] }
 0x63f   :  { %3425 = vmatprep.subr.mxu0 %v3688_v4  ;;  %3405 = vmatpush3.msra.mxu1 %v2942_v33  ;;  %v3016_v33 = vld [vmem:[%s5420_s6 + $0x490] sm:$0xff] }
 0x640   :  { %3426 = vmatpush3.msra.mxu0 %v2955_v3  ;;  %3406 = vmatprep.subr.mxu1 %v3688_v4  ;;  %v3029_v3 = vld [vmem:[%s5420_s6 + $0x4e8] sm:$0xff] }
 0x641   :  { %3427 = vmatprep.subr.mxu0 %v3688_v4  ;;  %3407 = vmatpush3.msra.mxu1 %v2941_v35  ;;  %v3015_v35 = vld [vmem:[%s5420_s6 + $0x488] sm:$0xff] }
 0x642   :  { %3428 = vmatpush3.msra.mxu0 %v2954_v45  ;;  %3408 = vmatprep.subr.mxu1 %v3688_v4  ;;  %v3028_v45 = vld [vmem:[%s5420_s6 + $0x4e0] sm:$0xff] }
 0x643   :  { %3429 = vmatprep.subr.mxu0 %v3688_v4  ;;  %3409 = vmatpush3.msra.mxu1 %v2940_v34  ;;  %v3014_v34 = vld [vmem:[%s5420_s6 + $0x480] sm:$0xff] }
 0x644   :  { %3430 = vmatpush3.msra.mxu0 %v2953_v36  ;;  %3410 = vmatprep.subr.mxu1 %v3688_v4  ;;  %v3027_v36 = vld [vmem:[%s5420_s6 + $0x4d8] sm:$0xff] }
 0x645   :  { %3431 = vmatprep.subr.mxu0 %v3688_v4  ;;  %3411 = vmatpush3.msra.mxu1 %v2939_v37  ;;  %v3013_v37 = vld [vmem:[%s5420_s6 + $0x478] sm:$0xff] }
 0x646   :  { %3432 = vmatpush3.msra.mxu0 %v2952_v39  ;;  %3412 = vmatprep.subr.mxu1 %v3688_v4  ;;  %v3012_v39 = vld [vmem:[%s5420_s6 + $0x470] sm:$0xff] }
 0x647   :  { %3433 = vmatprep.subr.mxu0 %v3688_v4  ;;  %3413 = vmatpush3.msra.mxu1 %v2938_v40  ;;  %v3025_v40 = vld [vmem:[%s5420_s6 + $0x4c8] sm:$0xff] }
 0x648   :  { %3414 = vmatprep.mubr.msk.f32.mxu1 %vm3709_vm13, %v3688_v4  ;;  %3434 = vmatpush3.msra.mxu0 %v2951_v51  ;;  %v3011_v51 = vld [vmem:[%s5420_s6 + $0x468] sm:$0xff] }
 0x649   :  { %3415 = vmatmul.mubr.msk.f32.vlgmr.msra.gmra.mxu1 %vm1096_vm5, %v5119_v47  ;;  %3435 = vmatprep.subr.mxu0 %v3688_v4 }
 0x64a   :  { %3440 = vmatprep.subr.mxu1 %v3688_v4  ;;  %3436 = vmatpush3.msra.mxu0 %v2950_v49  ;;  %v3024_v49 = vld [vmem:[%s5420_s6 + $0x4c0] sm:$0xff] }
 0x64b   :  { %3437 = vmatprep.mubr.msk.f32.mxu0 %vm3709_vm13, %v3688_v4  ;;  %3441 = vmatpush3.msk.msra.mxu1 %vm768_vm0, %v2971_v52  ;;  %v3010_v52 = vld [vmem:[%s5420_s6 + $0x460] sm:$0xff] }
 0x64c   :  { %3438 = vmatmul.mubr.msk.f32.vlgmr.msra.gmra.mxu0 %vm1096_vm5, %v2200_v16  ;;  %3442 = vmatprep.subr.mxu1 %v3688_v4  ;;  %v3023_v16 = vld [vmem:[%s5420_s6 + $0x4b8] sm:$0xff] }
 0x64d   :  { %3463 = vmatprep.subr.mxu0 %v3688_v4  ;;  %3443 = vmatpush3.msra.mxu1 %v2970_v53  ;;  %v2640_v53 = vrot.slane %v5119_v47, 6 }
 0x64e   :  { %3464 = vmatpush3.msk.msra.mxu0 %vm768_vm0, %v2983_v58  ;;  %3444 = vmatprep.subr.mxu1 %v3688_v4  ;;  %v3022_v58 = vld [vmem:[%s5420_s6 + $0x4b0] sm:$0xff] }
 0x64f   :  { %3465 = vmatprep.subr.mxu0 %v3688_v4  ;;  %3445 = vmatpush3.msra.mxu1 %v2969_v41  ;;  %v2728_v41 = vrot.slane %v5119_v47, 7 }
 0x650   :  { %3466 = vmatpush3.msra.mxu0 %v2982_v42  ;;  %3446 = vmatprep.subr.mxu1 %v3688_v4  ;;  %v1397_v42 = vld [vmem:[%s5421_s7] sm:$0x1] }
 0x651   :  { %3467 = vmatprep.subr.mxu0 %v3688_v4  ;;  %3447 = vmatpush3.msra.mxu1 %v2968_v43 }
 0x652   :  { %3468 = vmatpush3.msra.mxu0 %v2981_v44  ;;  %3448 = vmatprep.subr.mxu1 %v3688_v4 }
 0x653   :  { %3469 = vmatprep.subr.mxu0 %v3688_v4  ;;  %3449 = vmatpush3.msra.mxu1 %v2967_v46 }
 0x654   :  { %3470 = vmatpush3.msra.mxu0 %v2980_v54  ;;  %3450 = vmatprep.subr.mxu1 %v3688_v4 }
 0x655   :  { %3471 = vmatprep.subr.mxu0 %v3688_v4  ;;  %3451 = vmatpush3.msra.mxu1 %v2966_v56 }
 0x656   :  { %3472 = vmatpush3.msra.mxu0 %v2979_v48  ;;  %3452 = vmatprep.subr.mxu1 %v3688_v4 }
 0x657   :  { %3473 = vmatprep.subr.mxu0 %v3688_v4  ;;  %3453 = vmatpush3.msra.mxu1 %v2965_v59 }
 0x658   :  { %3474 = vmatpush3.msra.mxu0 %v2978_v61  ;;  %3454 = vmatprep.subr.mxu1 %v3688_v4 }
 0x659   :  { %3475 = vmatprep.subr.mxu0 %v3688_v4  ;;  %3455 = vmatpush3.msra.mxu1 %v2964_v50 }
 0x65a   :  { %3476 = vmatpush3.msra.mxu0 %v2977_v55  ;;  %3456 = vmatprep.subr.mxu1 %v3688_v4 }
 0x65b   :  { %3477 = vmatprep.subr.mxu0 %v3688_v4  ;;  %3457 = vmatpush3.msra.mxu1 %v2963_v57 }
 0x65c   :  { %3478 = vmatpush3.msra.mxu0 %v2976_v60  ;;  %3458 = vmatprep.subr.mxu1 %v3688_v4 }
 0x65d   :  { %3479 = vmatprep.subr.mxu0 %v3688_v4  ;;  %3459 = vmatpush3.msra.mxu1 %v2962_v62 }
 0x65e   :  { %3460 = vmatprep.mubr.msk.f32.mxu1 %vm3709_vm13, %v3688_v4  ;;  %3480 = vmatpush3.msra.mxu0 %v2975_v63 }
 0x65f   :  { %3461 = vmatmul.mubr.msk.f32.vlgmr.msra.gmra.mxu1 %vm1096_vm5, %v2288_v0  ;;  %3481 = vmatprep.subr.mxu0 %v3688_v4 }
 0x660   :  { %3486 = vmatprep.subr.mxu1 %v3688_v4  ;;  %3482 = vmatpush3.msra.mxu0 %v2974_v1 }
 0x661   :  { %3483 = vmatprep.mubr.msk.f32.mxu0 %vm3709_vm13, %v3688_v4  ;;  %3487 = vmatpush3.msk.msra.mxu1 %vm768_vm0, %v2995_v2 }
 0x662   :  { %3484 = vmatmul.mubr.msk.f32.vlgmr.msra.gmra.mxu0 %vm1096_vm5, %v2376_v5  ;;  %3488 = vmatprep.subr.mxu1 %v3688_v4 }
 0x663   :  { %3509 = vmatprep.subr.mxu0 %v3688_v4  ;;  %3489 = vmatpush3.msra.mxu1 %v2994_v6 }
 0x664   :  { %3510 = vmatpush3.msk.msra.mxu0 %vm768_vm0, %v3007_v7  ;;  %3490 = vmatprep.subr.mxu1 %v3688_v4 }
 0x665   :  { %3511 = vmatprep.subr.mxu0 %v3688_v4  ;;  %3491 = vmatpush3.msra.mxu1 %v2993_v8 }
 0x666   :  { %3512 = vmatpush3.msra.mxu0 %v3006_v9  ;;  %3492 = vmatprep.subr.mxu1 %v3688_v4 }
 0x667   :  { %3513 = vmatprep.subr.mxu0 %v3688_v4  ;;  %3493 = vmatpush3.msra.mxu1 %v2992_v10 }
 0x668   :  { %3514 = vmatpush3.msra.mxu0 %v3005_v11  ;;  %3494 = vmatprep.subr.mxu1 %v3688_v4 }
 0x669   :  { %3515 = vmatprep.subr.mxu0 %v3688_v4  ;;  %3495 = vmatpush3.msra.mxu1 %v2991_v12 }
 0x66a   :  { %3516 = vmatpush3.msra.mxu0 %v3004_v13  ;;  %3496 = vmatprep.subr.mxu1 %v3688_v4 }
 0x66b   :  { %3517 = vmatprep.subr.mxu0 %v3688_v4  ;;  %3497 = vmatpush3.msra.mxu1 %v2990_v14 }
 0x66c   :  { %3518 = vmatpush3.msra.mxu0 %v3003_v15  ;;  %3498 = vmatprep.subr.mxu1 %v3688_v4 }
 0x66d   :  { %3519 = vmatprep.subr.mxu0 %v3688_v4  ;;  %3499 = vmatpush3.msra.mxu1 %v2989_v17 }
 0x66e   :  { %3520 = vmatpush3.msra.mxu0 %v3002_v19  ;;  %3500 = vmatprep.subr.mxu1 %v3688_v4 }
 0x66f   :  { %3521 = vmatprep.subr.mxu0 %v3688_v4  ;;  %3501 = vmatpush3.msra.mxu1 %v2988_v20 }
 0x670   :  { %3522 = vmatpush3.msra.mxu0 %v3001_v21  ;;  %3502 = vmatprep.subr.mxu1 %v3688_v4 }
 0x671   :  { %3523 = vmatprep.subr.mxu0 %v3688_v4  ;;  %3503 = vmatpush3.msra.mxu1 %v2987_v22 }
 0x672   :  { %3524 = vmatpush3.msra.mxu0 %v3000_v23  ;;  %3504 = vmatprep.subr.mxu1 %v3688_v4 }
 0x673   :  { %3525 = vmatprep.subr.mxu0 %v3688_v4  ;;  %3505 = vmatpush3.msra.mxu1 %v2986_v24 }
 0x674   :  { %3506 = vmatprep.mubr.msk.f32.mxu1 %vm3709_vm13, %v3688_v4  ;;  %3526 = vmatpush3.msra.mxu0 %v2999_v25 }
 0x675   :  { %3507 = vmatmul.mubr.msk.f32.vlgmr.msra.gmra.mxu1 %vm1096_vm5, %v2464_v26  ;;  %3527 = vmatprep.subr.mxu0 %v3688_v4 }
 0x676   :  { %3532 = vmatprep.subr.mxu1 %v3688_v4  ;;  %3528 = vmatpush3.msra.mxu0 %v2998_v27 }
 0x677   :  { %3529 = vmatprep.mubr.msk.f32.mxu0 %vm3709_vm13, %v3688_v4  ;;  %3533 = vmatpush3.msk.msra.mxu1 %vm768_vm0, %v3019_v18 }
 0x678   :  { %3530 = vmatmul.mubr.msk.f32.vlgmr.msra.gmra.mxu0 %vm1096_vm5, %v2552_v28  ;;  %3534 = vmatprep.subr.mxu1 %v3688_v4 }
 0x679   :  { %3555 = vmatprep.subr.mxu0 %v3688_v4  ;;  %3535 = vmatpush3.msra.mxu1 %v3018_v29 }
 0x67a   :  { %3556 = vmatpush3.msk.msra.mxu0 %vm768_vm0, %v3031_v30  ;;  %3536 = vmatprep.subr.mxu1 %v3688_v4  ;;  %vm2808_vm0 = vcmask 516096  }
 0x67b   :  { %3557 = vmatprep.subr.mxu0 %v3688_v4  ;;  %3537 = vmatpush3.msra.mxu1 %v3017_v31 }
 0x67c   :  { %3558 = vmatpush3.msra.mxu0 %v3030_v32  ;;  %3538 = vmatprep.subr.mxu1 %v3688_v4 }
 0x67d   :  { %3559 = vmatprep.subr.mxu0 %v3688_v4  ;;  %3539 = vmatpush3.msra.mxu1 %v3016_v33 }
 0x67e   :  { %3560 = vmatpush3.msra.mxu0 %v3029_v3  ;;  %3540 = vmatprep.subr.mxu1 %v3688_v4 }
 0x67f   :  { %3561 = vmatprep.subr.mxu0 %v3688_v4  ;;  %3541 = vmatpush3.msra.mxu1 %v3015_v35  ;;  %v2806_v35 = vld [vmem:[%s5422_s8] sm:$0x1]  ;;  %s3642_s8 = scalar_lea.vmem %s2830_s23, 16 }
 0x680   :  { %3562 = vmatpush3.msra.mxu0 %v3028_v45  ;;  %3542 = vmatprep.subr.mxu1 %v3688_v4  ;;  %p3643_p0 = scmp.ne.s32.totalorder %s2830_s23, %s3642_s8  ;;  %p3648_p2 = scmp.lt.s32.totalorder %s3646_s24, %s3642_s8 }
 0x681   :  { %3563 = vmatprep.subr.mxu0 %v3688_v4  ;;  %3543 = vmatpush3.msra.mxu1 %v3014_v34 }
 0x682   :  { %3564 = vmatpush3.msra.mxu0 %v3027_v36  ;;  %3544 = vmatprep.subr.mxu1 %v3688_v4  ;;  %p3649_p3 = por %p3648_p2, %p3647_p1 }
 0x683   :  { %3565 = vmatprep.subr.mxu0 %v3688_v4  ;;  %3545 = vmatpush3.msra.mxu1 %v3013_v37  ;;  %v2812_v37 = vld [vmem:[#allocation4] sm:$0x1] }
 0x684   :  { %3566 = vmatpush3.msra.mxu0 %v3026_v38  ;;  %3546 = vmatprep.subr.mxu1 %v3688_v4  ;;  %p3650_p4 = pnand %p3649_p3, %p3643_p0 }
 0x685   :  { %3567 = vmatprep.subr.mxu0 %v3688_v4  ;;  %3547 = vmatpush3.msra.mxu1 %v3012_v39 }
 0x686   :  { %3568 = vmatpush3.msra.mxu0 %v3025_v40  ;;  %3548 = vmatprep.subr.mxu1 %v3688_v4 }
 0x687   :  { %3569 = vmatprep.subr.mxu0 %v3688_v4  ;;  %3549 = vmatpush3.msra.mxu1 %v3011_v51 }
 0x688   :  { %3570 = vmatpush3.msra.mxu0 %v3024_v49  ;;  %3550 = vmatprep.subr.mxu1 %v3688_v4 }
 0x689   :  { %3571 = vmatprep.subr.mxu0 %v3688_v4  ;;  %3551 = vmatpush3.msra.mxu1 %v3010_v52 }
 0x68a   :  { %3552 = vmatprep.mubr.msk.f32.mxu1 %vm3709_vm13, %v3688_v4  ;;  %3572 = vmatpush3.msra.mxu0 %v3023_v16 }
 0x68b   :  { %3553 = vmatmul.mubr.msk.f32.vlgmr.msra.gmra.mxu1 %vm1096_vm5, %v2640_v53  ;;  %3573 = vmatprep.subr.mxu0 %v3688_v4 }
 0x68c   :  { %3574 = vmatpush3.msra.mxu0 %v3022_v58  ;;  %3575 = vmatprep.mubr.msk.f32.mxu0 %vm3709_vm13, %v3688_v4 }
 0x68d   :  { %3576 = vmatmul.mubr.msk.f32.vlgmr.msra.gmra.mxu0 %vm1096_vm5, %v2728_v41 }
 0x6b3   :  { %v1480_v43 = vpop.f32.mrf.mxu1 }
 0x6b4   :  { %v1484_v44 = vadd.f32 %v1480_v43, %v1397_v42 }
 0x6b5   :  { %v3232_v46 = vpop.f32.mrf.mxu1  ;;  %v1568_v54 = vpop.f32.mrf.mxu0 }
 0x6b6   :  { %v1572_v56 = vadd.f32 %v1568_v54, %v1484_v44 }
 0x6b7   :  { %v3255_v48 = vpop.f32.mrf.mxu0 }
 0x6c7   :  { %v1656_v59 = vpop.f32.mrf.mxu1 }
 0x6c8   :  { %v1660_v61 = vadd.f32 %v1656_v59, %v1572_v56 }
 0x6c9   :  { %v3278_v50 = vpop.f32.mrf.mxu1 }
 0x6ca   :  { %v1744_v47 = vpop.f32.mrf.mxu0 }
 0x6cb   :  { %v1748_v55 = vadd.f32 %v1744_v47, %v1660_v61 }
 0x6cc   :  { %v3301_v57 = vpop.f32.mrf.mxu0 }
 0x6dd   :  { %v1832_v60 = vpop.f32.mrf.mxu1 }
 0x6de   :  { %v1836_v4 = vadd.f32 %v1832_v60, %v1748_v55 }
 0x6df   :  { %v3324_v62 = vpop.f32.mrf.mxu1 }
 0x6e0   :  { %v1920_v63 = vpop.f32.mrf.mxu0 }
 0x6e1   :  { %v1924_v0 = vadd.f32 %v1920_v63, %v1836_v4 }
 0x6e2   :  { %v3347_v1 = vpop.f32.mrf.mxu0 }
 0x6f3   :  { %v2008_v2 = vpop.f32.mrf.mxu1 }
 0x6f4   :  { %v2012_v5 = vadd.f32 %v2008_v2, %v1924_v0 }
 0x6f5   :  { %v3370_v6 = vpop.f32.mrf.mxu1 }
 0x6f6   :  { %v2096_v7 = vpop.f32.mrf.mxu0 }
 0x6f7   :  { %v2100_v8 = vadd.f32 %v2096_v7, %v2012_v5 }
 0x6f8   :  { %v3393_v9 = vpop.f32.mrf.mxu0 }
 0x709   :  { %v2184_v10 = vpop.f32.mrf.mxu1 }
 0x70a   :  { %v2188_v23 = vadd.f32 %v2184_v10, %v2100_v8 }
 0x70b   :  { %v3416_v11 = vpop.f32.mrf.mxu1 }
 0x70c   :  { %v2272_v12 = vpop.f32.mrf.mxu0 }
 0x70d   :  { %v2276_v25 = vadd.f32 %v2272_v12, %v2188_v23 }
 0x70e   :  { %v3439_v13 = vpop.f32.mrf.mxu0 }
 0x71f   :  { %v2360_v14 = vpop.f32.mrf.mxu1 }
 0x720   :  { %v2364_v26 = vadd.f32 %v2360_v14, %v2276_v25 }
 0x721   :  { %v3462_v15 = vpop.f32.mrf.mxu1 }
 0x722   :  { %v2448_v17 = vpop.f32.mrf.mxu0 }
 0x723   :  { %v2452_v27 = vadd.f32 %v2448_v17, %v2364_v26 }
 0x724   :  { %v3485_v19 = vpop.f32.mrf.mxu0 }
 0x735   :  { %v2536_v20 = vpop.f32.mrf.mxu1 }
 0x736   :  { %v2540_v18 = vadd.f32 %v2536_v20, %v2452_v27 }
 0x737   :  { %v3508_v21 = vpop.f32.mrf.mxu1 }
 0x738   :  { %v2624_v22 = vpop.f32.mrf.mxu0 }
 0x739   :  { %v2628_v28 = vadd.f32 %v2624_v22, %v2540_v18 }
 0x73a   :  { %v3531_v24 = vpop.f32.mrf.mxu0 }
 0x74b   :  { %v2712_v29 = vpop.f32.mrf.mxu1 }
 0x74c   :  { %v2716_v30 = vadd.f32 %v2712_v29, %v2628_v28 }
 0x74d   :  { %v3554_v31 = vpop.f32.mrf.mxu1  ;;  %v2800_v32 = vpop.f32.mrf.mxu0 }
 0x74e   :  { %v2804_v33 = vadd.f32 %v2800_v32, %v2716_v30 }
 0x74f   :  { %v3577_v3 = vpop.f32.mrf.mxu0 }
 0x750   :  { %v2805_v45 = vmax.f32 %v2804_v33, 0.0 }
 0x752   :  { %v2807_v34 = vmul.f32 %v2806_v35, %v2805_v45 }
 0x754   :  { %v2809_v36 = vsel %vm2808_vm0, %v2807_v34, 0.0 }
 0x755   :  { %2810 = vadd.xlane.f32.xlu0 %v2809_v36 }
 0x7de   :  { %v2811_v38 = vpop.xlane.xlu0 %2810 }
 0x7df   :  { %v2813_v39 = vadd.f32 %v2812_v37, %v2811_v38 }
 0x7e1   :  { %2815 = vst.msk [vmem:[#allocation5] sm:$0x1] %vm2814_vm14, %v2813_v39  ;;  %v2816_v40 = vsub.f32 1.0, %v2813_v39 }
 0x7e3   :  { %2818 = vrot.lane.b32.xlu1 %v2816_v40, %s3710_s21 }
 0x855   :  { %v2819_v51 = vpop.permute.xlu1 %2818 }
 0x856   :  { %2822 = vst.msk [vmem:[#allocation5] sm:$0x1] %vm2821_vm15, %v2819_v51 }
 0x857   :  { %3653 = shalt.err (!%p3650_p4)
}
 0x858   :  { %2832 = dma.vmem_to_hbm [thread:$0]  %s2830_s23, 16, %s5424_s10, [#allocation6]  }
 0x859   :  { %3662 = dma.done.wait [#allocation6], 16  }
 0x85a   :  { %3663 = vsyncadd [#allocation6], 4294967280 }
 0x85b   :  { %2836 = vsyncpa [#allocation6], 1 }

</bundles_post_ra>
